<compile_context>
chip_gen: v7x
topology: tpu7x:2x2x1
jax: 0.10.0
libtpu: 0.0.40
codegen_flags: <defaults>
</compile_context>

<pallas_src>
import jax
import jax.numpy as jnp
from jax.experimental import pallas as pl
from jax.experimental.pallas import tpu as pltpu

# ----------------------------- model config ---------------------------------
D_IN = 16
D_HIDDEN = 128
D_OUT = 4
N_BLOCKS = 5
TM_MAX = 4096     # max rows per grid step (amortizes per-step overhead / MXU fill-drain)


def _round_up(v, m):
    return ((v + m - 1) // m) * m


# ------------------------------- kernel -------------------------------------
def resnetfc_kernel(x_ref, w_in_ref, b_in_ref,
                    w0_ref, b0_ref, w1_ref, b1_ref,
                    w_out_ref, b_out_ref, o_ref):
    # x_ref: (TM, D_IN) tile of input rows.  Weights are bf16; accumulation,
    # biases and the residual stream stay f32 (required: v5e VPU has no bf16).
    x = x_ref[...].astype(jnp.bfloat16)

    # lin_in
    h = jnp.dot(x, w_in_ref[...], preferred_element_type=jnp.float32) + b_in_ref[...]

    # n_blocks ResnetBlockFC, statically unrolled (N_BLOCKS is small; keeps LLO visibility)
    for k in range(N_BLOCKS):
        a = jnp.maximum(h, 0.0).astype(jnp.bfloat16)              # activation(x)
        net = jnp.dot(a, w0_ref[k], preferred_element_type=jnp.float32) + b0_ref[k]
        dx = jnp.dot(jnp.maximum(net, 0.0).astype(jnp.bfloat16), w1_ref[k],
                     preferred_element_type=jnp.float32) + b1_ref[k]
        h = h + dx                                                # x_s + dx (identity shortcut), f32

    # lin_out(activation(x))
    out = jnp.dot(jnp.maximum(h, 0.0).astype(jnp.bfloat16), w_out_ref[...],
                  preferred_element_type=jnp.float32) + b_out_ref[...]
    o_ref[...] = out.astype(o_ref.dtype)


# ------------------------------- wrapper -------------------------------------
@jax.jit
def resnetfc0_forward(zx, params):
    """zx: (..., D_IN) float32.  Returns (..., D_OUT) float32."""
    w_in, b_in, w0, b0, w1, b1, w_out, b_out = params

    # Cast matmul weights to bf16 once (biases stay f32 for exact adds).
    w_in_b = w_in.astype(jnp.bfloat16)
    w0_b = w0.astype(jnp.bfloat16)
    w1_b = w1.astype(jnp.bfloat16)
    w_out_b = w_out.astype(jnp.bfloat16)

    lead_shape = zx.shape[:-1]
    x2d = zx.reshape(-1, D_IN).astype(jnp.float32)
    n = x2d.shape[0]

    # --- grid / tile selection --------------------------------------------
    # Choose the number of grid steps first, then derive the row tile from it,
    # so padding is bounded by < 8 * g rows (never a full TM of wasted work).
    g = pl.cdiv(n, TM_MAX)
    if n > 512:
        # v7x has 2 TensorCores: force an even number of >= 2 "parallel" grid
        # steps so both cores get work.  Harmless on v5e/v6e (single TC).
        g = max(g, 2)
        if g % 2 != 0:
            g += 1
    tm = _round_up(pl.cdiv(n, g), 8)
    n_pad = g * tm
    if n_pad != n:
        x2d = jnp.pad(x2d, ((0, n_pad - n), (0, 0)))
    grid = (g,)

    # Advisory cost estimate (helps XLA schedule around the custom call).
    matmul_flops = 2 * n_pad * (D_IN * D_HIDDEN
                                + 2 * N_BLOCKS * D_HIDDEN * D_HIDDEN
                                + D_HIDDEN * D_OUT)
    weight_bytes = 2 * (D_IN * D_HIDDEN + 2 * N_BLOCKS * D_HIDDEN * D_HIDDEN
                        + D_HIDDEN * D_OUT)                        # bf16 weights
    bias_bytes = 4 * (D_HIDDEN + 2 * N_BLOCKS * D_HIDDEN + D_OUT)  # f32 biases
    io_bytes = 4 * n_pad * (D_IN + D_OUT)
    cost = pl.CostEstimate(flops=matmul_flops, transcendentals=0,
                           bytes_accessed=io_bytes + weight_bytes + bias_bytes)

    # Constant-index (resident) weight/bias blocks -> single-buffered.
    single = pl.Buffered(1)

    out = pl.pallas_call(
        resnetfc_kernel,
        out_shape=jax.ShapeDtypeStruct((n_pad, D_OUT), jnp.float32),
        grid_spec=pltpu.PrefetchScalarGridSpec(
            num_scalar_prefetch=0,
            grid=grid,
            in_specs=[
                pl.BlockSpec((tm, D_IN), lambda i: (i, 0)),                        # x tile
                pl.BlockSpec((D_IN, D_HIDDEN), lambda i: (0, 0),
                             pipeline_mode=single),                                # W_in^T (bf16)
                pl.BlockSpec((1, D_HIDDEN), lambda i: (0, 0),
                             pipeline_mode=single),                                # b_in
                pl.BlockSpec((N_BLOCKS, D_HIDDEN, D_HIDDEN), lambda i: (0, 0, 0),
                             pipeline_mode=single),                                # W0^T stack (bf16)
                pl.BlockSpec((N_BLOCKS, 1, D_HIDDEN), lambda i: (0, 0, 0),
                             pipeline_mode=single),                                # b0 stack
                pl.BlockSpec((N_BLOCKS, D_HIDDEN, D_HIDDEN), lambda i: (0, 0, 0),
                             pipeline_mode=single),                                # W1^T stack (bf16)
                pl.BlockSpec((N_BLOCKS, 1, D_HIDDEN), lambda i: (0, 0, 0),
                             pipeline_mode=single),                                # b1 stack
                pl.BlockSpec((D_HIDDEN, D_OUT), lambda i: (0, 0),
                             pipeline_mode=single),                                # W_out^T (bf16)
                pl.BlockSpec((1, D_OUT), lambda i: (0, 0),
                             pipeline_mode=single),                                # b_out
            ],
            out_specs=pl.BlockSpec((tm, D_OUT), lambda i: (i, 0)),
        ),
        compiler_params=pltpu.CompilerParams(
            dimension_semantics=("parallel",),
            vmem_limit_bytes=32 * 1024 * 1024,   # raise v5e's 16 MiB default; safe on v6e/v7x
        ),
        cost_estimate=cost,
    )(x2d, w_in_b, b_in, w0_b, b0, w1_b, b1, w_out_b, b_out)

    return out[:n].reshape(*lead_shape, D_OUT)


# ----------------------- deterministic parameter init ------------------------
def init_params(key):
    """Shapes follow ResnetFC0.__init__ (weights stored pre-transposed as (in, out)).

    lin_in / fc_0 / lin_out use kaiming-normal(fan_in) like the module; biases 0.
    NOTE: the module zero-inits fc_1 weights; here we use small random values
    instead so the residual-block matmuls contribute to the output.
    """
    ks = jax.random.split(key, 4)

    def kaiming(k, fan_in, fan_out):
        std = (2.0 / fan_in) ** 0.5
        return jax.random.normal(k, (fan_in, fan_out), jnp.float32) * std

    w_in = kaiming(ks[0], D_IN, D_HIDDEN)
    b_in = jnp.zeros((1, D_HIDDEN), jnp.float32)

    kb0 = jax.random.split(ks[1], N_BLOCKS)
    kb1 = jax.random.split(ks[2], N_BLOCKS)
    w0 = jnp.stack([kaiming(kb0[i], D_HIDDEN, D_HIDDEN) for i in range(N_BLOCKS)])
    w1 = jnp.stack([kaiming(kb1[i], D_HIDDEN, D_HIDDEN) * 0.01 for i in range(N_BLOCKS)])
    b0 = jnp.zeros((N_BLOCKS, 1, D_HIDDEN), jnp.float32)
    b1 = jnp.zeros((N_BLOCKS, 1, D_HIDDEN), jnp.float32)

    w_out = kaiming(ks[3], D_HIDDEN, D_OUT)
    b_out = jnp.zeros((1, D_OUT), jnp.float32)

    return (w_in, b_in, w0, b0, w1, b1, w_out, b_out)


# ------------------------------ reference ------------------------------------
def resnetfc0_reference(zx, params):
    """Pure f32 JAX reference matching the PyTorch default forward path."""
    w_in, b_in, w0, b0, w1, b1, w_out, b_out = params
    x = zx.reshape(-1, D_IN)
    h = x @ w_in + b_in
    for k in range(N_BLOCKS):
        a = jnp.maximum(h, 0.0)
        net = a @ w0[k] + b0[k]
        dx = jnp.maximum(net, 0.0) @ w1[k] + b1[k]
        h = h + dx
    out = jnp.maximum(h, 0.0) @ w_out + b_out
    return out.reshape(*zx.shape[:-1], D_OUT)


# --------------------------------- main ---------------------------------------
if __name__ == "__main__":
    key = jax.random.PRNGKey(0)
    k_param, k_x = jax.random.split(key)

    params = init_params(k_param)

    # zx: (batch=2, rays=8, samples=16, d_in=16) -> 256 rows of the MLP
    zx = jax.random.normal(k_x, (2, 8, 16, D_IN), jnp.float32)

    out = resnetfc0_forward(zx, params)
    out = jax.block_until_ready(out)

    ref = resnetfc0_reference(zx, params)
    assert out.shape == (2, 8, 16, D_OUT)
    # bf16 matmul operands with f32 accumulation -> relaxed tolerance vs f32 ref.
    assert jnp.allclose(out, ref, atol=3e-2, rtol=3e-2), "mismatch vs JAX reference"

    print("KERNEL_OK")
</pallas_src>

<mosaic_0001>
module attributes {stable_mosaic.version = 11 : i64} {
  func.func @resnetfc_kernel(%arg0: i32, %arg1: memref<256x16xf32, #tpu.memory_space<vmem>>, %arg2: memref<16x128xbf16, #tpu.memory_space<vmem>>, %arg3: memref<1x128xf32, #tpu.memory_space<vmem>>, %arg4: memref<5x128x128xbf16, #tpu.memory_space<vmem>>, %arg5: memref<5x1x128xf32, #tpu.memory_space<vmem>>, %arg6: memref<5x128x128xbf16, #tpu.memory_space<vmem>>, %arg7: memref<5x1x128xf32, #tpu.memory_space<vmem>>, %arg8: memref<128x4xbf16, #tpu.memory_space<vmem>>, %arg9: memref<1x4xf32, #tpu.memory_space<vmem>>, %arg10: memref<256x4xf32, #tpu.memory_space<vmem>>) attributes {dimension_semantics = [#tpu.dimension_semantics<parallel>], iteration_bounds = array<i64: 1>, scalar_prefetch = 0 : i64, scratch_operands = 0 : i64, tpu.core_type = #tpu.core_type<tc>, window_params = [{transform_indices = @transform_0, window_bounds = array<i64: 256, 16>}, {pipeline_mode = #tpu.pipeline_mode<synchronous>, transform_indices = @transform_1, window_bounds = array<i64: 16, 128>}, {pipeline_mode = #tpu.pipeline_mode<synchronous>, transform_indices = @transform_2, window_bounds = array<i64: 1, 128>}, {pipeline_mode = #tpu.pipeline_mode<synchronous>, transform_indices = @transform_3, window_bounds = array<i64: 5, 128, 128>}, {pipeline_mode = #tpu.pipeline_mode<synchronous>, transform_indices = @transform_4, window_bounds = array<i64: 5, 1, 128>}, {pipeline_mode = #tpu.pipeline_mode<synchronous>, transform_indices = @transform_5, window_bounds = array<i64: 5, 128, 128>}, {pipeline_mode = #tpu.pipeline_mode<synchronous>, transform_indices = @transform_6, window_bounds = array<i64: 5, 1, 128>}, {pipeline_mode = #tpu.pipeline_mode<synchronous>, transform_indices = @transform_7, window_bounds = array<i64: 128, 4>}, {pipeline_mode = #tpu.pipeline_mode<synchronous>, transform_indices = @transform_8, window_bounds = array<i64: 1, 4>}, {transform_indices = @transform_9, window_bounds = array<i64: 256, 4>}]} {
    %c0 = arith.constant 0 : index
    %c0_0 = arith.constant 0 : index
    %0 = vector.load %arg1[%c0, %c0_0] : memref<256x16xf32, #tpu.memory_space<vmem>>, vector<256x16xf32>
    %1 = arith.truncf %0 : vector<256x16xf32> to vector<256x16xbf16>
    %c0_1 = arith.constant 0 : index
    %c0_2 = arith.constant 0 : index
    %2 = vector.load %arg2[%c0_1, %c0_2] : memref<16x128xbf16, #tpu.memory_space<vmem>>, vector<16x128xbf16>
    %cst = arith.constant dense<0.000000e+00> : vector<256x128xf32>
    %3 = tpu.matmul %1, %2, %cst {dimension_numbers = #tpu.dot_dimension_numbers<[1], [0], [0], [1], [0, 0, 1, 1], [], []>} : vector<256x16xbf16>, vector<16x128xbf16>, vector<256x128xf32> -> vector<256x128xf32>
    %c0_3 = arith.constant 0 : index
    %c0_4 = arith.constant 0 : index
    %4 = vector.load %arg3[%c0_3, %c0_4] : memref<1x128xf32, #tpu.memory_space<vmem>>, vector<1x128xf32>
    %5 = vector.broadcast %4 : vector<1x128xf32> to vector<256x128xf32>
    %6 = arith.addf %3, %5 : vector<256x128xf32>
    %cst_5 = arith.constant 0.000000e+00 : f32
    %7 = vector.broadcast %cst_5 : f32 to vector<256x128xf32>
    %8 = arith.maximumf %6, %7 : vector<256x128xf32>
    %9 = arith.truncf %8 : vector<256x128xf32> to vector<256x128xbf16>
    %c0_6 = arith.constant 0 : index
    %c0_7 = arith.constant 0 : index
    %c0_8 = arith.constant 0 : index
    %10 = vector.load %arg4[%c0_6, %c0_7, %c0_8] : memref<5x128x128xbf16, #tpu.memory_space<vmem>>, vector<1x128x128xbf16>
    %11 = vector.shape_cast %10 : vector<1x128x128xbf16> to vector<128x128xbf16>
    %cst_9 = arith.constant dense<0.000000e+00> : vector<256x128xf32>
    %12 = tpu.matmul %9, %11, %cst_9 {dimension_numbers = #tpu.dot_dimension_numbers<[1], [0], [0], [1], [0, 0, 1, 1], [], []>} : vector<256x128xbf16>, vector<128x128xbf16>, vector<256x128xf32> -> vector<256x128xf32>
    %c0_10 = arith.constant 0 : index
    %c0_11 = arith.constant 0 : index
    %c0_12 = arith.constant 0 : index
    %13 = vector.load %arg5[%c0_10, %c0_11, %c0_12] : memref<5x1x128xf32, #tpu.memory_space<vmem>>, vector<1x1x128xf32>
    %14 = vector.shape_cast %13 : vector<1x1x128xf32> to vector<1x128xf32>
    %15 = vector.broadcast %14 : vector<1x128xf32> to vector<256x128xf32>
    %16 = arith.addf %12, %15 : vector<256x128xf32>
    %cst_13 = arith.constant 0.000000e+00 : f32
    %17 = vector.broadcast %cst_13 : f32 to vector<256x128xf32>
    %18 = arith.maximumf %16, %17 : vector<256x128xf32>
    %19 = arith.truncf %18 : vector<256x128xf32> to vector<256x128xbf16>
    %c0_14 = arith.constant 0 : index
    %c0_15 = arith.constant 0 : index
    %c0_16 = arith.constant 0 : index
    %20 = vector.load %arg6[%c0_14, %c0_15, %c0_16] : memref<5x128x128xbf16, #tpu.memory_space<vmem>>, vector<1x128x128xbf16>
    %21 = vector.shape_cast %20 : vector<1x128x128xbf16> to vector<128x128xbf16>
    %cst_17 = arith.constant dense<0.000000e+00> : vector<256x128xf32>
    %22 = tpu.matmul %19, %21, %cst_17 {dimension_numbers = #tpu.dot_dimension_numbers<[1], [0], [0], [1], [0, 0, 1, 1], [], []>} : vector<256x128xbf16>, vector<128x128xbf16>, vector<256x128xf32> -> vector<256x128xf32>
    %c0_18 = arith.constant 0 : index
    %c0_19 = arith.constant 0 : index
    %c0_20 = arith.constant 0 : index
    %23 = vector.load %arg7[%c0_18, %c0_19, %c0_20] : memref<5x1x128xf32, #tpu.memory_space<vmem>>, vector<1x1x128xf32>
    %24 = vector.shape_cast %23 : vector<1x1x128xf32> to vector<1x128xf32>
    %25 = vector.broadcast %24 : vector<1x128xf32> to vector<256x128xf32>
    %26 = arith.addf %22, %25 : vector<256x128xf32>
    %27 = arith.addf %6, %26 : vector<256x128xf32>
    %cst_21 = arith.constant 0.000000e+00 : f32
    %28 = vector.broadcast %cst_21 : f32 to vector<256x128xf32>
    %29 = arith.maximumf %27, %28 : vector<256x128xf32>
    %30 = arith.truncf %29 : vector<256x128xf32> to vector<256x128xbf16>
    %c1 = arith.constant 1 : index
    %c0_22 = arith.constant 0 : index
    %c0_23 = arith.constant 0 : index
    %31 = vector.load %arg4[%c1, %c0_22, %c0_23] : memref<5x128x128xbf16, #tpu.memory_space<vmem>>, vector<1x128x128xbf16>
    %32 = vector.shape_cast %31 : vector<1x128x128xbf16> to vector<128x128xbf16>
    %cst_24 = arith.constant dense<0.000000e+00> : vector<256x128xf32>
    %33 = tpu.matmul %30, %32, %cst_24 {dimension_numbers = #tpu.dot_dimension_numbers<[1], [0], [0], [1], [0, 0, 1, 1], [], []>} : vector<256x128xbf16>, vector<128x128xbf16>, vector<256x128xf32> -> vector<256x128xf32>
    %c1_25 = arith.constant 1 : index
    %c0_26 = arith.constant 0 : index
    %c0_27 = arith.constant 0 : index
    %34 = vector.load %arg5[%c1_25, %c0_26, %c0_27] : memref<5x1x128xf32, #tpu.memory_space<vmem>>, vector<1x1x128xf32>
    %35 = vector.shape_cast %34 : vector<1x1x128xf32> to vector<1x128xf32>
    %36 = vector.broadcast %35 : vector<1x128xf32> to vector<256x128xf32>
    %37 = arith.addf %33, %36 : vector<256x128xf32>
    %cst_28 = arith.constant 0.000000e+00 : f32
    %38 = vector.broadcast %cst_28 : f32 to vector<256x128xf32>
    %39 = arith.maximumf %37, %38 : vector<256x128xf32>
    %40 = arith.truncf %39 : vector<256x128xf32> to vector<256x128xbf16>
    %c1_29 = arith.constant 1 : index
    %c0_30 = arith.constant 0 : index
    %c0_31 = arith.constant 0 : index
    %41 = vector.load %arg6[%c1_29, %c0_30, %c0_31] : memref<5x128x128xbf16, #tpu.memory_space<vmem>>, vector<1x128x128xbf16>
    %42 = vector.shape_cast %41 : vector<1x128x128xbf16> to vector<128x128xbf16>
    %cst_32 = arith.constant dense<0.000000e+00> : vector<256x128xf32>
    %43 = tpu.matmul %40, %42, %cst_32 {dimension_numbers = #tpu.dot_dimension_numbers<[1], [0], [0], [1], [0, 0, 1, 1], [], []>} : vector<256x128xbf16>, vector<128x128xbf16>, vector<256x128xf32> -> vector<256x128xf32>
    %c1_33 = arith.constant 1 : index
    %c0_34 = arith.constant 0 : index
    %c0_35 = arith.constant 0 : index
    %44 = vector.load %arg7[%c1_33, %c0_34, %c0_35] : memref<5x1x128xf32, #tpu.memory_space<vmem>>, vector<1x1x128xf32>
    %45 = vector.shape_cast %44 : vector<1x1x128xf32> to vector<1x128xf32>
    %46 = vector.broadcast %45 : vector<1x128xf32> to vector<256x128xf32>
    %47 = arith.addf %43, %46 : vector<256x128xf32>
    %48 = arith.addf %27, %47 : vector<256x128xf32>
    %cst_36 = arith.constant 0.000000e+00 : f32
    %49 = vector.broadcast %cst_36 : f32 to vector<256x128xf32>
    %50 = arith.maximumf %48, %49 : vector<256x128xf32>
    %51 = arith.truncf %50 : vector<256x128xf32> to vector<256x128xbf16>
    %c2 = arith.constant 2 : index
    %c0_37 = arith.constant 0 : index
    %c0_38 = arith.constant 0 : index
    %52 = vector.load %arg4[%c2, %c0_37, %c0_38] : memref<5x128x128xbf16, #tpu.memory_space<vmem>>, vector<1x128x128xbf16>
    %53 = vector.shape_cast %52 : vector<1x128x128xbf16> to vector<128x128xbf16>
    %cst_39 = arith.constant dense<0.000000e+00> : vector<256x128xf32>
    %54 = tpu.matmul %51, %53, %cst_39 {dimension_numbers = #tpu.dot_dimension_numbers<[1], [0], [0], [1], [0, 0, 1, 1], [], []>} : vector<256x128xbf16>, vector<128x128xbf16>, vector<256x128xf32> -> vector<256x128xf32>
    %c2_40 = arith.constant 2 : index
    %c0_41 = arith.constant 0 : index
    %c0_42 = arith.constant 0 : index
    %55 = vector.load %arg5[%c2_40, %c0_41, %c0_42] : memref<5x1x128xf32, #tpu.memory_space<vmem>>, vector<1x1x128xf32>
    %56 = vector.shape_cast %55 : vector<1x1x128xf32> to vector<1x128xf32>
    %57 = vector.broadcast %56 : vector<1x128xf32> to vector<256x128xf32>
    %58 = arith.addf %54, %57 : vector<256x128xf32>
    %cst_43 = arith.constant 0.000000e+00 : f32
    %59 = vector.broadcast %cst_43 : f32 to vector<256x128xf32>
    %60 = arith.maximumf %58, %59 : vector<256x128xf32>
    %61 = arith.truncf %60 : vector<256x128xf32> to vector<256x128xbf16>
    %c2_44 = arith.constant 2 : index
    %c0_45 = arith.constant 0 : index
    %c0_46 = arith.constant 0 : index
    %62 = vector.load %arg6[%c2_44, %c0_45, %c0_46] : memref<5x128x128xbf16, #tpu.memory_space<vmem>>, vector<1x128x128xbf16>
    %63 = vector.shape_cast %62 : vector<1x128x128xbf16> to vector<128x128xbf16>
    %cst_47 = arith.constant dense<0.000000e+00> : vector<256x128xf32>
    %64 = tpu.matmul %61, %63, %cst_47 {dimension_numbers = #tpu.dot_dimension_numbers<[1], [0], [0], [1], [0, 0, 1, 1], [], []>} : vector<256x128xbf16>, vector<128x128xbf16>, vector<256x128xf32> -> vector<256x128xf32>
    %c2_48 = arith.constant 2 : index
    %c0_49 = arith.constant 0 : index
    %c0_50 = arith.constant 0 : index
    %65 = vector.load %arg7[%c2_48, %c0_49, %c0_50] : memref<5x1x128xf32, #tpu.memory_space<vmem>>, vector<1x1x128xf32>
    %66 = vector.shape_cast %65 : vector<1x1x128xf32> to vector<1x128xf32>
    %67 = vector.broadcast %66 : vector<1x128xf32> to vector<256x128xf32>
    %68 = arith.addf %64, %67 : vector<256x128xf32>
    %69 = arith.addf %48, %68 : vector<256x128xf32>
    %cst_51 = arith.constant 0.000000e+00 : f32
    %70 = vector.broadcast %cst_51 : f32 to vector<256x128xf32>
    %71 = arith.maximumf %69, %70 : vector<256x128xf32>
    %72 = arith.truncf %71 : vector<256x128xf32> to vector<256x128xbf16>
    %c3 = arith.constant 3 : index
    %c0_52 = arith.constant 0 : index
    %c0_53 = arith.constant 0 : index
    %73 = vector.load %arg4[%c3, %c0_52, %c0_53] : memref<5x128x128xbf16, #tpu.memory_space<vmem>>, vector<1x128x128xbf16>
    %74 = vector.shape_cast %73 : vector<1x128x128xbf16> to vector<128x128xbf16>
    %cst_54 = arith.constant dense<0.000000e+00> : vector<256x128xf32>
    %75 = tpu.matmul %72, %74, %cst_54 {dimension_numbers = #tpu.dot_dimension_numbers<[1], [0], [0], [1], [0, 0, 1, 1], [], []>} : vector<256x128xbf16>, vector<128x128xbf16>, vector<256x128xf32> -> vector<256x128xf32>
    %c3_55 = arith.constant 3 : index
    %c0_56 = arith.constant 0 : index
    %c0_57 = arith.constant 0 : index
    %76 = vector.load %arg5[%c3_55, %c0_56, %c0_57] : memref<5x1x128xf32, #tpu.memory_space<vmem>>, vector<1x1x128xf32>
    %77 = vector.shape_cast %76 : vector<1x1x128xf32> to vector<1x128xf32>
    %78 = vector.broadcast %77 : vector<1x128xf32> to vector<256x128xf32>
    %79 = arith.addf %75, %78 : vector<256x128xf32>
    %cst_58 = arith.constant 0.000000e+00 : f32
    %80 = vector.broadcast %cst_58 : f32 to vector<256x128xf32>
    %81 = arith.maximumf %79, %80 : vector<256x128xf32>
    %82 = arith.truncf %81 : vector<256x128xf32> to vector<256x128xbf16>
    %c3_59 = arith.constant 3 : index
    %c0_60 = arith.constant 0 : index
    %c0_61 = arith.constant 0 : index
    %83 = vector.load %arg6[%c3_59, %c0_60, %c0_61] : memref<5x128x128xbf16, #tpu.memory_space<vmem>>, vector<1x128x128xbf16>
    %84 = vector.shape_cast %83 : vector<1x128x128xbf16> to vector<128x128xbf16>
    %cst_62 = arith.constant dense<0.000000e+00> : vector<256x128xf32>
    %85 = tpu.matmul %82, %84, %cst_62 {dimension_numbers = #tpu.dot_dimension_numbers<[1], [0], [0], [1], [0, 0, 1, 1], [], []>} : vector<256x128xbf16>, vector<128x128xbf16>, vector<256x128xf32> -> vector<256x128xf32>
    %c3_63 = arith.constant 3 : index
    %c0_64 = arith.constant 0 : index
    %c0_65 = arith.constant 0 : index
    %86 = vector.load %arg7[%c3_63, %c0_64, %c0_65] : memref<5x1x128xf32, #tpu.memory_space<vmem>>, vector<1x1x128xf32>
    %87 = vector.shape_cast %86 : vector<1x1x128xf32> to vector<1x128xf32>
    %88 = vector.broadcast %87 : vector<1x128xf32> to vector<256x128xf32>
    %89 = arith.addf %85, %88 : vector<256x128xf32>
    %90 = arith.addf %69, %89 : vector<256x128xf32>
    %cst_66 = arith.constant 0.000000e+00 : f32
    %91 = vector.broadcast %cst_66 : f32 to vector<256x128xf32>
    %92 = arith.maximumf %90, %91 : vector<256x128xf32>
    %93 = arith.truncf %92 : vector<256x128xf32> to vector<256x128xbf16>
    %c4 = arith.constant 4 : index
    %c0_67 = arith.constant 0 : index
    %c0_68 = arith.constant 0 : index
    %94 = vector.load %arg4[%c4, %c0_67, %c0_68] : memref<5x128x128xbf16, #tpu.memory_space<vmem>>, vector<1x128x128xbf16>
    %95 = vector.shape_cast %94 : vector<1x128x128xbf16> to vector<128x128xbf16>
    %cst_69 = arith.constant dense<0.000000e+00> : vector<256x128xf32>
    %96 = tpu.matmul %93, %95, %cst_69 {dimension_numbers = #tpu.dot_dimension_numbers<[1], [0], [0], [1], [0, 0, 1, 1], [], []>} : vector<256x128xbf16>, vector<128x128xbf16>, vector<256x128xf32> -> vector<256x128xf32>
    %c4_70 = arith.constant 4 : index
    %c0_71 = arith.constant 0 : index
    %c0_72 = arith.constant 0 : index
    %97 = vector.load %arg5[%c4_70, %c0_71, %c0_72] : memref<5x1x128xf32, #tpu.memory_space<vmem>>, vector<1x1x128xf32>
    %98 = vector.shape_cast %97 : vector<1x1x128xf32> to vector<1x128xf32>
    %99 = vector.broadcast %98 : vector<1x128xf32> to vector<256x128xf32>
    %100 = arith.addf %96, %99 : vector<256x128xf32>
    %cst_73 = arith.constant 0.000000e+00 : f32
    %101 = vector.broadcast %cst_73 : f32 to vector<256x128xf32>
    %102 = arith.maximumf %100, %101 : vector<256x128xf32>
    %103 = arith.truncf %102 : vector<256x128xf32> to vector<256x128xbf16>
    %c4_74 = arith.constant 4 : index
    %c0_75 = arith.constant 0 : index
    %c0_76 = arith.constant 0 : index
    %104 = vector.load %arg6[%c4_74, %c0_75, %c0_76] : memref<5x128x128xbf16, #tpu.memory_space<vmem>>, vector<1x128x128xbf16>
    %105 = vector.shape_cast %104 : vector<1x128x128xbf16> to vector<128x128xbf16>
    %cst_77 = arith.constant dense<0.000000e+00> : vector<256x128xf32>
    %106 = tpu.matmul %103, %105, %cst_77 {dimension_numbers = #tpu.dot_dimension_numbers<[1], [0], [0], [1], [0, 0, 1, 1], [], []>} : vector<256x128xbf16>, vector<128x128xbf16>, vector<256x128xf32> -> vector<256x128xf32>
    %c4_78 = arith.constant 4 : index
    %c0_79 = arith.constant 0 : index
    %c0_80 = arith.constant 0 : index
    %107 = vector.load %arg7[%c4_78, %c0_79, %c0_80] : memref<5x1x128xf32, #tpu.memory_space<vmem>>, vector<1x1x128xf32>
    %108 = vector.shape_cast %107 : vector<1x1x128xf32> to vector<1x128xf32>
    %109 = vector.broadcast %108 : vector<1x128xf32> to vector<256x128xf32>
    %110 = arith.addf %106, %109 : vector<256x128xf32>
    %111 = arith.addf %90, %110 : vector<256x128xf32>
    %cst_81 = arith.constant 0.000000e+00 : f32
    %112 = vector.broadcast %cst_81 : f32 to vector<256x128xf32>
    %113 = arith.maximumf %111, %112 : vector<256x128xf32>
    %114 = arith.truncf %113 : vector<256x128xf32> to vector<256x128xbf16>
    %c0_82 = arith.constant 0 : index
    %c0_83 = arith.constant 0 : index
    %115 = vector.load %arg8[%c0_82, %c0_83] : memref<128x4xbf16, #tpu.memory_space<vmem>>, vector<128x4xbf16>
    %cst_84 = arith.constant dense<0.000000e+00> : vector<256x4xf32>
    %116 = tpu.matmul %114, %115, %cst_84 {dimension_numbers = #tpu.dot_dimension_numbers<[1], [0], [0], [1], [0, 0, 1, 1], [], []>} : vector<256x128xbf16>, vector<128x4xbf16>, vector<256x4xf32> -> vector<256x4xf32>
    %c0_85 = arith.constant 0 : index
    %c0_86 = arith.constant 0 : index
    %117 = vector.load %arg9[%c0_85, %c0_86] : memref<1x4xf32, #tpu.memory_space<vmem>>, vector<1x4xf32>
    %118 = vector.broadcast %117 : vector<1x4xf32> to vector<256x4xf32>
    %119 = arith.addf %116, %118 : vector<256x4xf32>
    %c0_87 = arith.constant 0 : index
    %c0_88 = arith.constant 0 : index
    %120 = vector.load %arg10[%c0_87, %c0_88] : memref<256x4xf32, #tpu.memory_space<vmem>>, vector<256x4xf32>
    tpu.vector_store %arg10[%c0_87, %c0_88], %119 {strides = array<i32>} : memref<256x4xf32, #tpu.memory_space<vmem>>, vector<256x4xf32>,
    return
  }
  func.func @transform_0(%arg0: i32) -> (i32, i32) {
    %c0_i32 = arith.constant 0 : i32
    %c0_i32_0 = arith.constant 0 : i32
    return %arg0, %c0_i32 : i32, i32
  }
  func.func @transform_1(%arg0: i32) -> (i32, i32) {
    %c0_i32 = arith.constant 0 : i32
    %c0_i32_0 = arith.constant 0 : i32
    %c0_i32_1 = arith.constant 0 : i32
    return %c0_i32, %c0_i32_0 : i32, i32
  }
  func.func @transform_2(%arg0: i32) -> (i32, i32) {
    %c0_i32 = arith.constant 0 : i32
    %c0_i32_0 = arith.constant 0 : i32
    %c0_i32_1 = arith.constant 0 : i32
    return %c0_i32, %c0_i32_0 : i32, i32
  }
  func.func @transform_3(%arg0: i32) -> (i32, i32, i32) {
    %c0_i32 = arith.constant 0 : i32
    %c0_i32_0 = arith.constant 0 : i32
    %c0_i32_1 = arith.constant 0 : i32
    %c0_i32_2 = arith.constant 0 : i32
    return %c0_i32, %c0_i32_0, %c0_i32_1 : i32, i32, i32
  }
  func.func @transform_4(%arg0: i32) -> (i32, i32, i32) {
    %c0_i32 = arith.constant 0 : i32
    %c0_i32_0 = arith.constant 0 : i32
    %c0_i32_1 = arith.constant 0 : i32
    %c0_i32_2 = arith.constant 0 : i32
    return %c0_i32, %c0_i32_0, %c0_i32_1 : i32, i32, i32
  }
  func.func @transform_5(%arg0: i32) -> (i32, i32, i32) {
    %c0_i32 = arith.constant 0 : i32
    %c0_i32_0 = arith.constant 0 : i32
    %c0_i32_1 = arith.constant 0 : i32
    %c0_i32_2 = arith.constant 0 : i32
    return %c0_i32, %c0_i32_0, %c0_i32_1 : i32, i32, i32
  }
  func.func @transform_6(%arg0: i32) -> (i32, i32, i32) {
    %c0_i32 = arith.constant 0 : i32
    %c0_i32_0 = arith.constant 0 : i32
    %c0_i32_1 = arith.constant 0 : i32
    %c0_i32_2 = arith.constant 0 : i32
    return %c0_i32, %c0_i32_0, %c0_i32_1 : i32, i32, i32
  }
  func.func @transform_7(%arg0: i32) -> (i32, i32) {
    %c0_i32 = arith.constant 0 : i32
    %c0_i32_0 = arith.constant 0 : i32
    %c0_i32_1 = arith.constant 0 : i32
    return %c0_i32, %c0_i32_0 : i32, i32
  }
  func.func @transform_8(%arg0: i32) -> (i32, i32) {
    %c0_i32 = arith.constant 0 : i32
    %c0_i32_0 = arith.constant 0 : i32
    %c0_i32_1 = arith.constant 0 : i32
    return %c0_i32, %c0_i32_0 : i32, i32
  }
  func.func @transform_9(%arg0: i32) -> (i32, i32) {
    %c0_i32 = arith.constant 0 : i32
    %c0_i32_0 = arith.constant 0 : i32
    return %arg0, %c0_i32 : i32, i32
  }
}

</mosaic_0001>

<bundles_post_ra>
// kernel: resnetfc0_forward.1
= control target key start
LH: loop header
LB: loop body
LE: loop exit
PB: predicated region body
PF: predicated region fallthrough
CT: control target
= control target key end

     0   :  { %vm96_vm0 = vcmask 130048   ;;  %vm3562_vm1 = vcmask 31744   ;;  %s6459_s1 = inlined_call_operand.vmem [shape: bf16[16,128], index: 1, kind: input, shape index: {}]   ;;  %s6460_s0 = inlined_call_operand.vmem [shape: f32[256,16], index: 0, kind: input, shape index: {}]   ;;  %s6461_s3 = inlined_call_operand.vmem [shape: bf16[5,128,128], index: 3, kind: input, shape index: {}]   ;;  %s6462_s5 = inlined_call_operand.vmem [shape: bf16[5,128,128], index: 5, kind: input, shape index: {}]   ;;  %s6463_s2 = inlined_call_operand.vmem [shape: f32[1,128], index: 2, kind: input, shape index: {}]   ;;  %s6464_s4 = inlined_call_operand.vmem [shape: f32[5,1,128], index: 4, kind: input, shape index: {}]   ;;  %s6465_s6 = inlined_call_operand.vmem [shape: f32[5,1,128], index: 6, kind: input, shape index: {}]   ;;  %s6466_s7 = inlined_call_operand.vmem [shape: bf16[128,4], index: 7, kind: input, shape index: {}]   ;;  %s6467_s8 = inlined_call_operand.vmem [shape: f32[1,4], index: 8, kind: input, shape index: {}]   ;;  %s6468_s9 = inlined_call_operand.vmem [shape: f32[256,4], index: 9, kind: output, shape index: {}]  }
   0x1   :  { %v4711_v0 = vld [vmem:[%s6459_s1] sm:$0xff]   ;;  %v34_v2 = vld [vmem:[%s6460_s0 + $0x8] sm:$0xff]  ;;  %v35_v3 = vld [vmem:[%s6460_s0 + $0x10] sm:$0xff] }
   0x2   :  { %v33_v1 = vld [vmem:[%s6460_s0] sm:$0xff]  ;;  %4133 = vmatprep.subr.bf16.mxu0 %v4711_v0  ;;  %v36_v5 = vld [vmem:[%s6460_s0 + $0x18] sm:$0xff]  ;;  %v38_v7 = vld [vmem:[%s6460_s0 + $0x28] sm:$0xff] }
   0x3   :  { %v65_v4 = vpack.c.bf16 %v34_v2, %v33_v1  ;;  %v37_v6 = vld [vmem:[%s6460_s0 + $0x20] sm:$0xff]  ;;  %4134 = vmatpush3.bf16.msra.mxu0 %v4711_v0  ;;  %v66_v8 = vpack.c.bf16 %v36_v5, %v35_v3  ;;  %v39_v10 = vld [vmem:[%s6460_s0 + $0x30] sm:$0xff]  ;;  %v40_v11 = vld [vmem:[%s6460_s0 + $0x38] sm:$0xff] }
   0x4   :  { %v67_v9 = vpack.c.bf16 %v38_v7, %v37_v6  ;;  %v41_v12 = vld [vmem:[%s6460_s0 + $0x40] sm:$0xff]  ;;  %v42_v13 = vld [vmem:[%s6460_s0 + $0x48] sm:$0xff]  ;;  %v68_v14 = vpack.c.bf16 %v40_v11, %v39_v10  ;;  %v43_v17 = vld [vmem:[%s6460_s0 + $0x50] sm:$0xff] }
   0x5   :  { %4135 = vmatprep.mubr.msk.bf16.mxu0 %vm96_vm0, %v65_v4  ;;  %v69_v15 = vpack.c.bf16 %v42_v13, %v41_v12  ;;  %v4712_v16 = vld [vmem:[%s6461_s3] sm:$0xff]   ;;  %v44_v18 = vld [vmem:[%s6460_s0 + $0x58] sm:$0xff]  ;;  %v4713_v19 = vld [vmem:[%s6461_s3 + $0x8] sm:$0xff]  }
   0x6   :  { %4136 = vmatmul.mubr.msk.bf16.vlgmr.msra.gmra.mrb[0].mxu0 %vm96_vm0, %v66_v8  ;;  %v45_v20 = vld [vmem:[%s6460_s0 + $0x60] sm:$0xff]  ;;  %4167 = vmatprep.subr.bf16.mxu1 %v4712_v16  ;;  %v46_v21 = vld [vmem:[%s6460_s0 + $0x68] sm:$0xff]  ;;  %v4714_v22 = vld [vmem:[%s6461_s3 + $0x10] sm:$0xff]   ;;  %v70_v23 = vpack.c.bf16 %v44_v18, %v43_v17 }
   0x7   :  { %4139 = vmatprep.mubr.msk.bf16.mxu0 %vm96_vm0, %v67_v9  ;;  %4168 = vmatpush3.bf16.msra.mxu1 %v4712_v16  ;;  %v4715_v24 = vld [vmem:[%s6461_s3 + $0x18] sm:$0xff]   ;;  %v71_v25 = vpack.c.bf16 %v46_v21, %v45_v20  ;;  %v47_v26 = vld [vmem:[%s6460_s0 + $0x70] sm:$0xff]  ;;  %v49_v28 = vld [vmem:[%s6460_s0 + $0x80] sm:$0xff] }
   0x8   :  { %4169 = vmatprep.subr.bf16.mxu1 %v4713_v19  ;;  %v48_v27 = vld [vmem:[%s6460_s0 + $0x78] sm:$0xff]  ;;  %v50_v29 = vld [vmem:[%s6460_s0 + $0x88] sm:$0xff]  ;;  %v4716_v30 = vld [vmem:[%s6461_s3 + $0x20] sm:$0xff]  }
   0x9   :  { %v72_v31 = vpack.c.bf16 %v48_v27, %v47_v26  ;;  %v4717_v32 = vld [vmem:[%s6461_s3 + $0x28] sm:$0xff]   ;;  %v73_v33 = vpack.c.bf16 %v50_v29, %v49_v28  ;;  %v51_v34 = vld [vmem:[%s6460_s0 + $0x90] sm:$0xff]  ;;  %v52_v35 = vld [vmem:[%s6460_s0 + $0x98] sm:$0xff] }
   0xa   :  { %v53_v36 = vld [vmem:[%s6460_s0 + $0xa0] sm:$0xff]  ;;  %v54_v37 = vld [vmem:[%s6460_s0 + $0xa8] sm:$0xff]  ;;  %v74_v38 = vpack.c.bf16 %v52_v35, %v51_v34  ;;  %v55_v40 = vld [vmem:[%s6460_s0 + $0xb0] sm:$0xff] }
   0xb   :  { %4170 = vmatpush3.bf16.msra.mxu1 %v4713_v19  ;;  %v75_v39 = vpack.c.bf16 %v54_v37, %v53_v36  ;;  %v56_v41 = vld [vmem:[%s6460_s0 + $0xb8] sm:$0xff]  ;;  %v57_v42 = vld [vmem:[%s6460_s0 + $0xc0] sm:$0xff]  ;;  %v58_v43 = vld [vmem:[%s6460_s0 + $0xc8] sm:$0xff] }
   0xc   :  { %4171 = vmatprep.subr.bf16.mxu1 %v4714_v22  ;;  %v76_v44 = vpack.c.bf16 %v56_v41, %v55_v40  ;;  %v77_v45 = vpack.c.bf16 %v58_v43, %v57_v42  ;;  %v59_v46 = vld [vmem:[%s6460_s0 + $0xd0] sm:$0xff]  ;;  %v60_v47 = vld [vmem:[%s6460_s0 + $0xd8] sm:$0xff]  ;;  %v61_v48 = vld [vmem:[%s6460_s0 + $0xe0] sm:$0xff] }
   0xd   :  { %v62_v49 = vld [vmem:[%s6460_s0 + $0xe8] sm:$0xff]  ;;  %v78_v50 = vpack.c.bf16 %v60_v47, %v59_v46  ;;  %v63_v52 = vld [vmem:[%s6460_s0 + $0xf0] sm:$0xff]  ;;  %v64_v53 = vld [vmem:[%s6460_s0 + $0xf8] sm:$0xff] }
   0xe   :  { %4140 = vmatmul.mubr.msk.bf16.gmra.mrb[4].mxu0 %vm96_vm0, %v68_v14  ;;  %v79_v51 = vpack.c.bf16 %v62_v49, %v61_v48  ;;  %v80_v54 = vpack.c.bf16 %v64_v53, %v63_v52  ;;  %v4718_v55 = vld [vmem:[%s6461_s3 + $0x30] sm:$0xff]   ;;  %v4719_v56 = vld [vmem:[%s6461_s3 + $0x38] sm:$0xff]   ;;  %v4720_v57 = vld [vmem:[%s6462_s5] sm:$0xff]  }
   0xf   :  { %4143 = vmatprep.mubr.msk.bf16.mxu0 %vm96_vm0, %v69_v15  ;;  %4172 = vmatpush3.bf16.msra.mxu1 %v4714_v22  ;;  %v4721_v58 = vld [vmem:[%s6462_s5 + $0x8] sm:$0xff]   ;;  %v4722_v59 = vld [vmem:[%s6462_s5 + $0x10] sm:$0xff]   ;;  %v4723_v60 = vld [vmem:[%s6462_s5 + $0x18] sm:$0xff]  }
  0x10   :  { %4173 = vmatprep.subr.bf16.mxu1 %v4715_v24  ;;  %4215 = vmatprep.subr.bf16.mxu0 %v4720_v57  ;;  %v4724_v61 = vld [vmem:[%s6462_s5 + $0x20] sm:$0xff]   ;;  %v4725_v62 = vld [vmem:[%s6462_s5 + $0x28] sm:$0xff]   ;;  %v4726_v63 = vld [vmem:[%s6462_s5 + $0x30] sm:$0xff]  }
  0x11   :  { %4216 = vmatpush3.bf16.msra.mxu0 %v4720_v57  ;;  %v5013_v0 = vld [vmem:[%s6463_s2] ss:$0 sm:$0xff] }
  0x12   :  { %4217 = vmatprep.subr.bf16.mxu0 %v4721_v58 }
  0x13   :  { %4174 = vmatpush3.bf16.msra.mxu1 %v4715_v24 }
  0x14   :  { %4175 = vmatprep.subr.bf16.mxu1 %v4716_v30 }
  0x15   :  { %4218 = vmatpush3.bf16.msra.mxu0 %v4721_v58 }
  0x16   :  { %4144 = vmatmul.mubr.msk.bf16.gmra.mrb[8].mxu0 %vm96_vm0, %v70_v23  ;;  %4219 = vmatprep.subr.bf16.mxu0 %v4722_v59 }
  0x17   :  { %4147 = vmatprep.mubr.msk.bf16.mxu0 %vm96_vm0, %v71_v25  ;;  %4176 = vmatpush3.bf16.msra.mxu1 %v4716_v30 }
  0x18   :  { %4177 = vmatprep.subr.bf16.mxu1 %v4717_v32 }
  0x19   :  { %4220 = vmatpush3.bf16.msra.mxu0 %v4722_v59 }
  0x1a   :  { %4221 = vmatprep.subr.bf16.mxu0 %v4723_v60 }
  0x1b   :  { %4178 = vmatpush3.bf16.msra.mxu1 %v4717_v32 }
  0x1c   :  { %4179 = vmatprep.subr.bf16.mxu1 %v4718_v55 }
  0x1d   :  { %4222 = vmatpush3.bf16.msra.mxu0 %v4723_v60 }
  0x1e   :  { %4148 = vmatmul.mubr.msk.bf16.gmra.mrb[12].mxu0 %vm96_vm0, %v72_v31  ;;  %4223 = vmatprep.subr.bf16.mxu0 %v4724_v61 }
  0x1f   :  { %4151 = vmatprep.mubr.msk.bf16.mxu0 %vm96_vm0, %v73_v33  ;;  %4180 = vmatpush3.bf16.msra.mxu1 %v4718_v55 }
  0x20   :  { %4181 = vmatprep.subr.bf16.mxu1 %v4719_v56 }
  0x21   :  { %4224 = vmatpush3.bf16.msra.mxu0 %v4724_v61 }
  0x22   :  { %4225 = vmatprep.subr.bf16.mxu0 %v4725_v62 }
  0x23   :  { %4182 = vmatpush3.bf16.msra.mxu1 %v4719_v56 }
  0x25   :  { %4226 = vmatpush3.bf16.msra.mxu0 %v4725_v62 }
  0x26   :  { %4152 = vmatmul.mubr.msk.bf16.gmra.mrb[16].mxu0 %vm96_vm0, %v74_v38  ;;  %4227 = vmatprep.subr.bf16.mxu0 %v4726_v63 }
  0x27   :  { %4155 = vmatprep.mubr.msk.bf16.mxu0 %vm96_vm0, %v75_v39 }
  0x29   :  { %4228 = vmatpush3.bf16.msra.mxu0 %v4726_v63 }
  0x2e   :  { %4156 = vmatmul.mubr.msk.bf16.gmra.mrb[20].mxu0 %vm96_vm0, %v76_v44 }
  0x2f   :  { %4159 = vmatprep.mubr.msk.bf16.mxu0 %vm96_vm0, %v77_v45 }
  0x36   :  { %4160 = vmatmul.mubr.msk.bf16.gmra.mrb[24].mxu0 %vm96_vm0, %v78_v50 }
  0x37   :  { %4163 = vmatprep.mubr.msk.bf16.mxu0 %vm96_vm0, %v79_v51 }
  0x3e   :  { %4164 = vmatmul.mubr.msk.bf16.gmra.mrb[28].mxu0 %vm96_vm0, %v80_v54 }
  0xd9   :  { %v4137_v1 = vpop.f32.mrb[0].mxu0 }
  0xda   :  { %v179_v2 = vpop.f32.mrb[1].mxu0  ;;  %v5019_v5 = vadd.f32 %v4137_v1, %v5013_v0 }
  0xdb   :  { %v5016_v3 = vadd.f32 %v5013_v0, %v179_v2  ;;  %v4138_v4 = vpop.f32.mrb[2].mxu0 }
  0xdc   :  { %v5022_v6 = vadd.f32 %v4138_v4, %v5013_v0  ;;  %v182_v7 = vpop.f32.mrb[3].mxu0  ;;  %v308_v12 = vmax.f32 %v5019_v5, 0.0 }
  0xdd   :  { %v5025_v8 = vadd.f32 %v5013_v0, %v182_v7  ;;  %v306_v10 = vmax.f32 %v5016_v3, 0.0 }
  0xde   :  { %v309_v9 = vmax.f32 %v5022_v6, 0.0 }
  0xdf   :  { %v307_v11 = vmax.f32 %v5025_v8, 0.0 }
  0xe0   :  { %v339_v16 = vpack.c.bf16 %v309_v9, %v308_v12 }
  0xe1   :  { %v4141_v13 = vpop.f32.mrb[4].mxu0  ;;  %v338_v14 = vpack.c.bf16 %v307_v11, %v306_v10 }
  0xe2   :  { %v195_v15 = vpop.f32.mrb[5].mxu0  ;;  %v5035_v19 = vadd.f32 %v4141_v13, %v5013_v0 }
  0xe3   :  { %v5032_v17 = vadd.f32 %v5013_v0, %v195_v15  ;;  %v4142_v18 = vpop.f32.mrb[6].mxu0  ;;  %4183 = vmatprep.mubr.bf16.mxu1 %v338_v14 }
  0xe4   :  { %v5038_v20 = vadd.f32 %v4142_v18, %v5013_v0  ;;  %v198_v21 = vpop.f32.mrb[7].mxu0  ;;  %4184 = vmatmul.mubr.bf16.vlgmr.msra.gmra.mrb[0].mxu1 %v339_v16  ;;  %v312_v26 = vmax.f32 %v5035_v19, 0.0 }
  0xe5   :  { %v5041_v22 = vadd.f32 %v5013_v0, %v198_v21  ;;  %v310_v24 = vmax.f32 %v5032_v17, 0.0 }
  0xe6   :  { %v313_v23 = vmax.f32 %v5038_v20, 0.0 }
  0xe7   :  { %v311_v25 = vmax.f32 %v5041_v22, 0.0 }
  0xe8   :  { %v341_v30 = vpack.c.bf16 %v313_v23, %v312_v26 }
  0xe9   :  { %v4145_v27 = vpop.f32.mrb[8].mxu0  ;;  %v340_v28 = vpack.c.bf16 %v311_v25, %v310_v24 }
  0xea   :  { %v211_v29 = vpop.f32.mrb[9].mxu0  ;;  %v5051_v33 = vadd.f32 %v4145_v27, %v5013_v0 }
  0xeb   :  { %v5048_v31 = vadd.f32 %v5013_v0, %v211_v29  ;;  %v4146_v32 = vpop.f32.mrb[10].mxu0  ;;  %4187 = vmatprep.mubr.bf16.mxu1 %v340_v28 }
  0xec   :  { %v5054_v34 = vadd.f32 %v4146_v32, %v5013_v0  ;;  %v214_v35 = vpop.f32.mrb[11].mxu0  ;;  %4188 = vmatmul.mubr.bf16.gmra.mrb[4].mxu1 %v341_v30  ;;  %v316_v40 = vmax.f32 %v5051_v33, 0.0 }
  0xed   :  { %v5057_v36 = vadd.f32 %v5013_v0, %v214_v35  ;;  %v314_v38 = vmax.f32 %v5048_v31, 0.0 }
  0xee   :  { %v317_v37 = vmax.f32 %v5054_v34, 0.0 }
  0xef   :  { %v315_v39 = vmax.f32 %v5057_v36, 0.0 }
  0xf0   :  { %v343_v44 = vpack.c.bf16 %v317_v37, %v316_v40 }
  0xf1   :  { %v4149_v41 = vpop.f32.mrb[12].mxu0  ;;  %v342_v42 = vpack.c.bf16 %v315_v39, %v314_v38 }
  0xf2   :  { %v227_v43 = vpop.f32.mrb[13].mxu0  ;;  %v5067_v47 = vadd.f32 %v4149_v41, %v5013_v0 }
  0xf3   :  { %v5064_v45 = vadd.f32 %v5013_v0, %v227_v43  ;;  %v4150_v46 = vpop.f32.mrb[14].mxu0  ;;  %4191 = vmatprep.mubr.bf16.mxu1 %v342_v42 }
  0xf4   :  { %v5070_v48 = vadd.f32 %v4150_v46, %v5013_v0  ;;  %v230_v49 = vpop.f32.mrb[15].mxu0  ;;  %4192 = vmatmul.mubr.bf16.gmra.mrb[8].mxu1 %v343_v44  ;;  %v320_v54 = vmax.f32 %v5067_v47, 0.0 }
  0xf5   :  { %v5073_v50 = vadd.f32 %v5013_v0, %v230_v49  ;;  %v318_v52 = vmax.f32 %v5064_v45, 0.0 }
  0xf6   :  { %v321_v51 = vmax.f32 %v5070_v48, 0.0 }
  0xf7   :  { %v319_v53 = vmax.f32 %v5073_v50, 0.0 }
  0xf8   :  { %v345_v58 = vpack.c.bf16 %v321_v51, %v320_v54 }
  0xf9   :  { %v4153_v55 = vpop.f32.mrb[16].mxu0  ;;  %v344_v56 = vpack.c.bf16 %v319_v53, %v318_v52 }
  0xfa   :  { %v243_v57 = vpop.f32.mrb[17].mxu0  ;;  %v5083_v61 = vadd.f32 %v4153_v55, %v5013_v0 }
  0xfb   :  { %v5080_v59 = vadd.f32 %v5013_v0, %v243_v57  ;;  %v4154_v60 = vpop.f32.mrb[18].mxu0  ;;  %4195 = vmatprep.mubr.bf16.mxu1 %v344_v56 }
  0xfc   :  { %v5086_v62 = vadd.f32 %v4154_v60, %v5013_v0  ;;  %v246_v63 = vpop.f32.mrb[19].mxu0  ;;  %4196 = vmatmul.mubr.bf16.gmra.mrb[12].mxu1 %v345_v58  ;;  %v324_v9 = vmax.f32 %v5083_v61, 0.0 }
  0xfd   :  { %v5089_v1 = vadd.f32 %v5013_v0, %v246_v63  ;;  %v322_v4 = vmax.f32 %v5080_v59, 0.0 }
  0xfe   :  { %v325_v2 = vmax.f32 %v5086_v62, 0.0 }
  0xff   :  { %v323_v7 = vmax.f32 %v5089_v1, 0.0 }
 0x100   :  { %v347_v13 = vpack.c.bf16 %v325_v2, %v324_v9 }
 0x101   :  { %v4157_v10 = vpop.f32.mrb[20].mxu0  ;;  %v346_v11 = vpack.c.bf16 %v323_v7, %v322_v4 }
 0x102   :  { %v259_v12 = vpop.f32.mrb[21].mxu0  ;;  %v5099_v16 = vadd.f32 %v4157_v10, %v5013_v0 }
 0x103   :  { %v5096_v14 = vadd.f32 %v5013_v0, %v259_v12  ;;  %v4158_v15 = vpop.f32.mrb[22].mxu0  ;;  %4199 = vmatprep.mubr.bf16.mxu1 %v346_v11  ;;  %v4727_v11 = vld [vmem:[%s6462_s5 + $0x38] sm:$0xff]   ;;  %v4729_v12 = vld [vmem:[%s6461_s3 + $0x48] sm:$0xff]  }
 0x104   :  { %v5102_v18 = vadd.f32 %v4158_v15, %v5013_v0  ;;  %v262_v21 = vpop.f32.mrb[23].mxu0  ;;  %4200 = vmatmul.mubr.bf16.gmra.mrb[16].mxu1 %v347_v13  ;;  %v328_v27 = vmax.f32 %v5099_v16, 0.0  ;;  %4229 = vmatprep.subr.bf16.mxu0 %v4727_v11  ;;  %v4730_v13 = vld [vmem:[%s6461_s3 + $0x50] sm:$0xff]   ;;  %v4731_v15 = vld [vmem:[%s6461_s3 + $0x58] sm:$0xff]  }
 0x105   :  { %v5105_v23 = vadd.f32 %v5013_v0, %v262_v21  ;;  %v326_v25 = vmax.f32 %v5096_v14, 0.0  ;;  %4230 = vmatpush3.bf16.msra.mxu0 %v4727_v11  ;;  %v4732_v21 = vld [vmem:[%s6461_s3 + $0x60] sm:$0xff]  }
 0x106   :  { %v329_v24 = vmax.f32 %v5102_v18, 0.0 }
 0x107   :  { %v327_v26 = vmax.f32 %v5105_v23, 0.0 }
 0x108   :  { %v349_v32 = vpack.c.bf16 %v329_v24, %v328_v27  ;;  %v4733_v24 = vld [vmem:[%s6461_s3 + $0x68] sm:$0xff]  }
 0x109   :  { %v4161_v28 = vpop.f32.mrb[24].mxu0  ;;  %v348_v29 = vpack.c.bf16 %v327_v26, %v326_v25  ;;  %v4734_v25 = vld [vmem:[%s6461_s3 + $0x70] sm:$0xff]   ;;  %v5170_v26 = vld [vmem:[%s6464_s4] ss:$0 sm:$0xff] }
 0x10a   :  { %v275_v30 = vpop.f32.mrb[25].mxu0  ;;  %v5115_v38 = vadd.f32 %v4161_v28, %v5013_v0 }
 0x10b   :  { %v5112_v35 = vadd.f32 %v5013_v0, %v275_v30  ;;  %v4162_v37 = vpop.f32.mrb[26].mxu0  ;;  %4203 = vmatprep.mubr.bf16.mxu1 %v348_v29 }
 0x10c   :  { %v5118_v39 = vadd.f32 %v4162_v37, %v5013_v0  ;;  %v278_v40 = vpop.f32.mrb[27].mxu0  ;;  %4204 = vmatmul.mubr.bf16.gmra.mrb[20].mxu1 %v349_v32  ;;  %v332_v46 = vmax.f32 %v5115_v38, 0.0 }
 0x10d   :  { %v5121_v41 = vadd.f32 %v5013_v0, %v278_v40  ;;  %v330_v43 = vmax.f32 %v5112_v35, 0.0 }
 0x10e   :  { %v333_v42 = vmax.f32 %v5118_v39, 0.0 }
 0x10f   :  { %v331_v44 = vmax.f32 %v5121_v41, 0.0 }
 0x110   :  { %v351_v53 = vpack.c.bf16 %v333_v42, %v332_v46 }
 0x111   :  { %v4165_v49 = vpop.f32.mrb[28].mxu0  ;;  %v350_v51 = vpack.c.bf16 %v331_v44, %v330_v43 }
 0x112   :  { %v291_v52 = vpop.f32.mrb[29].mxu0  ;;  %v5131_v56 = vadd.f32 %v4165_v49, %v5013_v0 }
 0x113   :  { %v5128_v54 = vadd.f32 %v5013_v0, %v291_v52  ;;  %v4166_v55 = vpop.f32.mrb[30].mxu0  ;;  %4207 = vmatprep.mubr.bf16.mxu1 %v350_v51 }
 0x114   :  { %v5134_v57 = vadd.f32 %v4166_v55, %v5013_v0  ;;  %v294_v58 = vpop.f32.mrb[31].mxu0  ;;  %4208 = vmatmul.mubr.bf16.gmra.mrb[24].mxu1 %v351_v53  ;;  %v336_v7 = vmax.f32 %v5131_v56, 0.0 }
 0x115   :  { %v5137_v60 = vadd.f32 %v5013_v0, %v294_v58  ;;  %v334_v2 = vmax.f32 %v5128_v54, 0.0  ;;  %v4728_v0 = vld [vmem:[%s6461_s3 + $0x40] sm:$0xff]  }
 0x116   :  { %v337_v63 = vmax.f32 %v5134_v57, 0.0  ;;  %4263 = vmatprep.subr.bf16.mxu1 %v4728_v0 }
 0x117   :  { %v335_v4 = vmax.f32 %v5137_v60, 0.0  ;;  %4264 = vmatpush3.bf16.msra.mxu1 %v4728_v0 }
 0x118   :  { %v353_v10 = vpack.c.bf16 %v337_v63, %v336_v7  ;;  %4265 = vmatprep.subr.bf16.mxu1 %v4729_v12 }
 0x119   :  { %v352_v9 = vpack.c.bf16 %v335_v4, %v334_v2 }
 0x11b   :  { %4211 = vmatprep.mubr.bf16.mxu1 %v352_v9  ;;  %4266 = vmatpush3.bf16.msra.mxu1 %v4729_v12 }
 0x11c   :  { %4212 = vmatmul.mubr.bf16.gmra.mrb[28].mxu1 %v353_v10  ;;  %4267 = vmatprep.subr.bf16.mxu1 %v4730_v13 }
 0x11f   :  { %4268 = vmatpush3.bf16.msra.mxu1 %v4730_v13 }
 0x120   :  { %4269 = vmatprep.subr.bf16.mxu1 %v4731_v15 }
 0x123   :  { %4270 = vmatpush3.bf16.msra.mxu1 %v4731_v15 }
 0x124   :  { %4271 = vmatprep.subr.bf16.mxu1 %v4732_v21 }
 0x127   :  { %4272 = vmatpush3.bf16.msra.mxu1 %v4732_v21 }
 0x128   :  { %4273 = vmatprep.subr.bf16.mxu1 %v4733_v24 }
 0x12b   :  { %4274 = vmatpush3.bf16.msra.mxu1 %v4733_v24 }
 0x12c   :  { %4275 = vmatprep.subr.bf16.mxu1 %v4734_v25 }
 0x12f   :  { %4276 = vmatpush3.bf16.msra.mxu1 %v4734_v25 }
 0x1b7   :  { %v4185_v27 = vpop.f32.mrb[0].mxu1 }
 0x1b8   :  { %v468_v28 = vadd.f32 %v4185_v27, %v5170_v26  ;;  %v459_v29 = vpop.f32.mrb[1].mxu1 }
 0x1b9   :  { %v460_v30 = vadd.f32 %v5170_v26, %v459_v29  ;;  %v4186_v32 = vpop.f32.mrb[2].mxu1 }
 0x1ba   :  { %v471_v37 = vadd.f32 %v4186_v32, %v5170_v26  ;;  %v462_v40 = vpop.f32.mrb[3].mxu1  ;;  %v588_v43 = vmax.f32 %v468_v28, 0.0 }
 0x1bb   :  { %v463_v42 = vadd.f32 %v5170_v26, %v462_v40  ;;  %v586_v46 = vmax.f32 %v460_v30, 0.0 }
 0x1bc   :  { %v589_v44 = vmax.f32 %v471_v37, 0.0 }
 0x1bd   :  { %v587_v49 = vmax.f32 %v463_v42, 0.0 }
 0x1be   :  { %v619_v51 = vpack.c.bf16 %v589_v44, %v588_v43 }
 0x1bf   :  { %v618_v52 = vpack.c.bf16 %v587_v49, %v586_v46  ;;  %v4189_v53 = vpop.f32.mrb[4].mxu1 }
 0x1c0   :  { %v484_v55 = vadd.f32 %v4189_v53, %v5170_v26  ;;  %v475_v58 = vpop.f32.mrb[5].mxu1 }
 0x1c1   :  { %v476_v63 = vadd.f32 %v5170_v26, %v475_v58  ;;  %v4190_v2 = vpop.f32.mrb[6].mxu1  ;;  %4231 = vmatprep.mubr.bf16.mxu0 %v618_v52 }
 0x1c2   :  { %v487_v4 = vadd.f32 %v4190_v2, %v5170_v26  ;;  %v478_v7 = vpop.f32.mrb[7].mxu1  ;;  %4232 = vmatmul.mubr.bf16.vlgmr.msra.gmra.mrb[32].mxu0 %v619_v51  ;;  %v592_v10 = vmax.f32 %v484_v55, 0.0 }
 0x1c3   :  { %v479_v9 = vadd.f32 %v5170_v26, %v478_v7  ;;  %v590_v0 = vmax.f32 %v476_v63, 0.0 }
 0x1c4   :  { %v593_v11 = vmax.f32 %v487_v4, 0.0 }
 0x1c5   :  { %v591_v12 = vmax.f32 %v479_v9, 0.0 }
 0x1c6   :  { %v621_v13 = vpack.c.bf16 %v593_v11, %v592_v10 }
 0x1c7   :  { %v620_v15 = vpack.c.bf16 %v591_v12, %v590_v0  ;;  %v4193_v21 = vpop.f32.mrb[8].mxu1 }
 0x1c8   :  { %v500_v24 = vadd.f32 %v4193_v21, %v5170_v26  ;;  %v491_v25 = vpop.f32.mrb[9].mxu1 }
 0x1c9   :  { %v492_v27 = vadd.f32 %v5170_v26, %v491_v25  ;;  %v4194_v28 = vpop.f32.mrb[10].mxu1  ;;  %4235 = vmatprep.mubr.bf16.mxu0 %v620_v15 }
 0x1ca   :  { %v503_v29 = vadd.f32 %v4194_v28, %v5170_v26  ;;  %v494_v30 = vpop.f32.mrb[11].mxu1  ;;  %4236 = vmatmul.mubr.bf16.gmra.mrb[36].mxu0 %v621_v13  ;;  %v596_v37 = vmax.f32 %v500_v24, 0.0 }
 0x1cb   :  { %v495_v32 = vadd.f32 %v5170_v26, %v494_v30  ;;  %v594_v42 = vmax.f32 %v492_v27, 0.0 }
 0x1cc   :  { %v597_v40 = vmax.f32 %v503_v29, 0.0 }
 0x1cd   :  { %v595_v43 = vmax.f32 %v495_v32, 0.0 }
 0x1ce   :  { %v623_v44 = vpack.c.bf16 %v597_v40, %v596_v37 }
 0x1cf   :  { %v622_v46 = vpack.c.bf16 %v595_v43, %v594_v42  ;;  %v4197_v49 = vpop.f32.mrb[12].mxu1 }
 0x1d0   :  { %v516_v51 = vadd.f32 %v4197_v49, %v5170_v26  ;;  %v507_v52 = vpop.f32.mrb[13].mxu1 }
 0x1d1   :  { %v508_v53 = vadd.f32 %v5170_v26, %v507_v52  ;;  %v4198_v55 = vpop.f32.mrb[14].mxu1  ;;  %4239 = vmatprep.mubr.bf16.mxu0 %v622_v46 }
 0x1d2   :  { %v519_v58 = vadd.f32 %v4198_v55, %v5170_v26  ;;  %v510_v63 = vpop.f32.mrb[15].mxu1  ;;  %4240 = vmatmul.mubr.bf16.gmra.mrb[40].mxu0 %v623_v44  ;;  %v600_v4 = vmax.f32 %v516_v51, 0.0 }
 0x1d3   :  { %v511_v2 = vadd.f32 %v5170_v26, %v510_v63  ;;  %v598_v9 = vmax.f32 %v508_v53, 0.0 }
 0x1d4   :  { %v601_v7 = vmax.f32 %v519_v58, 0.0 }
 0x1d5   :  { %v599_v10 = vmax.f32 %v511_v2, 0.0 }
 0x1d6   :  { %v625_v11 = vpack.c.bf16 %v601_v7, %v600_v4 }
 0x1d7   :  { %v624_v0 = vpack.c.bf16 %v599_v10, %v598_v9  ;;  %v4201_v12 = vpop.f32.mrb[16].mxu1 }
 0x1d8   :  { %v532_v13 = vadd.f32 %v4201_v12, %v5170_v26  ;;  %v523_v15 = vpop.f32.mrb[17].mxu1 }
 0x1d9   :  { %v524_v21 = vadd.f32 %v5170_v26, %v523_v15  ;;  %v4202_v24 = vpop.f32.mrb[18].mxu1  ;;  %4243 = vmatprep.mubr.bf16.mxu0 %v624_v0 }
 0x1da   :  { %v535_v25 = vadd.f32 %v4202_v24, %v5170_v26  ;;  %v526_v27 = vpop.f32.mrb[19].mxu1  ;;  %4244 = vmatmul.mubr.bf16.gmra.mrb[44].mxu0 %v625_v11  ;;  %v604_v29 = vmax.f32 %v532_v13, 0.0 }
 0x1db   :  { %v527_v28 = vadd.f32 %v5170_v26, %v526_v27  ;;  %v602_v32 = vmax.f32 %v524_v21, 0.0 }
 0x1dc   :  { %v605_v30 = vmax.f32 %v535_v25, 0.0 }
 0x1dd   :  { %v603_v37 = vmax.f32 %v527_v28, 0.0 }
 0x1de   :  { %v627_v40 = vpack.c.bf16 %v605_v30, %v604_v29 }
 0x1df   :  { %v626_v42 = vpack.c.bf16 %v603_v37, %v602_v32  ;;  %v4205_v43 = vpop.f32.mrb[20].mxu1 }
 0x1e0   :  { %v548_v44 = vadd.f32 %v4205_v43, %v5170_v26  ;;  %v539_v46 = vpop.f32.mrb[21].mxu1 }
 0x1e1   :  { %v540_v49 = vadd.f32 %v5170_v26, %v539_v46  ;;  %v4206_v51 = vpop.f32.mrb[22].mxu1  ;;  %4247 = vmatprep.mubr.bf16.mxu0 %v626_v42 }
 0x1e2   :  { %v551_v52 = vadd.f32 %v4206_v51, %v5170_v26  ;;  %v542_v53 = vpop.f32.mrb[23].mxu1  ;;  %4248 = vmatmul.mubr.bf16.gmra.mrb[48].mxu0 %v627_v40  ;;  %v608_v58 = vmax.f32 %v548_v44, 0.0 }
 0x1e3   :  { %v543_v55 = vadd.f32 %v5170_v26, %v542_v53  ;;  %v606_v2 = vmax.f32 %v540_v49, 0.0 }
 0x1e4   :  { %v609_v63 = vmax.f32 %v551_v52, 0.0 }
 0x1e5   :  { %v607_v4 = vmax.f32 %v543_v55, 0.0 }
 0x1e6   :  { %v629_v7 = vpack.c.bf16 %v609_v63, %v608_v58 }
 0x1e7   :  { %v628_v9 = vpack.c.bf16 %v607_v4, %v606_v2  ;;  %v4209_v10 = vpop.f32.mrb[24].mxu1  ;;  %v4735_v4 = vld [vmem:[%s6461_s3 + $0x78] sm:$0xff]  }
 0x1e8   :  { %v564_v11 = vadd.f32 %v4209_v10, %v5170_v26  ;;  %v555_v0 = vpop.f32.mrb[25].mxu1  ;;  %4277 = vmatprep.subr.bf16.mxu1 %v4735_v4  ;;  %v4739_v10 = vld [vmem:[%s6462_s5 + $0x58] sm:$0xff]  }
 0x1e9   :  { %v556_v12 = vadd.f32 %v5170_v26, %v555_v0  ;;  %v4210_v13 = vpop.f32.mrb[26].mxu1  ;;  %4251 = vmatprep.mubr.bf16.mxu0 %v628_v9  ;;  %4278 = vmatpush3.bf16.msra.mxu1 %v4735_v4  ;;  %v4738_v9 = vld [vmem:[%s6462_s5 + $0x50] sm:$0xff]   ;;  %v4741_v0 = vld [vmem:[%s6462_s5 + $0x68] sm:$0xff]  }
 0x1ea   :  { %v567_v15 = vadd.f32 %v4210_v13, %v5170_v26  ;;  %v558_v21 = vpop.f32.mrb[27].mxu1  ;;  %4252 = vmatmul.mubr.bf16.gmra.mrb[52].mxu0 %v629_v7  ;;  %v612_v25 = vmax.f32 %v564_v11, 0.0  ;;  %v4736_v7 = vld [vmem:[%s6462_s5 + $0x40] sm:$0xff]  }
 0x1eb   :  { %v559_v24 = vadd.f32 %v5170_v26, %v558_v21  ;;  %v610_v28 = vmax.f32 %v556_v12, 0.0  ;;  %4311 = vmatprep.subr.bf16.mxu0 %v4736_v7  ;;  %v4740_v11 = vld [vmem:[%s6462_s5 + $0x60] sm:$0xff]   ;;  %v4742_v12 = vld [vmem:[%s6462_s5 + $0x70] sm:$0xff]  }
 0x1ec   :  { %v613_v27 = vmax.f32 %v567_v15, 0.0  ;;  %4312 = vmatpush3.bf16.msra.mxu0 %v4736_v7  ;;  %v5231_v13 = vld [vmem:[%s6465_s6] ss:$0 sm:$0xff] }
 0x1ed   :  { %v611_v29 = vmax.f32 %v559_v24, 0.0 }
 0x1ee   :  { %v631_v30 = vpack.c.bf16 %v613_v27, %v612_v25 }
 0x1ef   :  { %v630_v32 = vpack.c.bf16 %v611_v29, %v610_v28  ;;  %v4213_v37 = vpop.f32.mrb[28].mxu1 }
 0x1f0   :  { %v580_v40 = vadd.f32 %v4213_v37, %v5170_v26  ;;  %v571_v42 = vpop.f32.mrb[29].mxu1 }
 0x1f1   :  { %v572_v43 = vadd.f32 %v5170_v26, %v571_v42  ;;  %v4214_v44 = vpop.f32.mrb[30].mxu1  ;;  %4255 = vmatprep.mubr.bf16.mxu0 %v630_v32 }
 0x1f2   :  { %v583_v46 = vadd.f32 %v4214_v44, %v5170_v26  ;;  %v574_v49 = vpop.f32.mrb[31].mxu1  ;;  %4256 = vmatmul.mubr.bf16.gmra.mrb[56].mxu0 %v631_v30  ;;  %v616_v52 = vmax.f32 %v580_v40, 0.0 }
 0x1f3   :  { %v575_v51 = vadd.f32 %v5170_v26, %v574_v49  ;;  %v614_v55 = vmax.f32 %v572_v43, 0.0  ;;  %v4737_v26 = vld [vmem:[%s6462_s5 + $0x48] sm:$0xff]  }
 0x1f4   :  { %v617_v53 = vmax.f32 %v583_v46, 0.0  ;;  %4313 = vmatprep.subr.bf16.mxu0 %v4737_v26 }
 0x1f5   :  { %v615_v58 = vmax.f32 %v575_v51, 0.0  ;;  %4314 = vmatpush3.bf16.msra.mxu0 %v4737_v26 }
 0x1f6   :  { %v633_v63 = vpack.c.bf16 %v617_v53, %v616_v52  ;;  %4315 = vmatprep.subr.bf16.mxu0 %v4738_v9 }
 0x1f7   :  { %v632_v2 = vpack.c.bf16 %v615_v58, %v614_v55 }
 0x1f9   :  { %4259 = vmatprep.mubr.bf16.mxu0 %v632_v2  ;;  %4316 = vmatpush3.bf16.msra.mxu0 %v4738_v9 }
 0x1fa   :  { %4260 = vmatmul.mubr.bf16.gmra.mrb[60].mxu0 %v633_v63  ;;  %4317 = vmatprep.subr.bf16.mxu0 %v4739_v10 }
 0x1fd   :  { %4318 = vmatpush3.bf16.msra.mxu0 %v4739_v10 }
 0x1fe   :  { %4319 = vmatprep.subr.bf16.mxu0 %v4740_v11 }
 0x201   :  { %4320 = vmatpush3.bf16.msra.mxu0 %v4740_v11 }
 0x202   :  { %4321 = vmatprep.subr.bf16.mxu0 %v4741_v0 }
 0x205   :  { %4322 = vmatpush3.bf16.msra.mxu0 %v4741_v0 }
 0x206   :  { %4323 = vmatprep.subr.bf16.mxu0 %v4742_v12 }
 0x209   :  { %4324 = vmatpush3.bf16.msra.mxu0 %v4742_v12 }
 0x295   :  { %v4233_v15 = vpop.f32.mrb[32].mxu0 }
 0x296   :  { %v748_v21 = vadd.f32 %v4233_v15, %v5231_v13  ;;  %v739_v24 = vpop.f32.mrb[33].mxu0 }
 0x297   :  { %v740_v25 = vadd.f32 %v5231_v13, %v739_v24  ;;  %v4234_v27 = vpop.f32.mrb[34].mxu0 }
 0x298   :  { %v751_v28 = vadd.f32 %v4234_v27, %v5231_v13  ;;  %v742_v29 = vpop.f32.mrb[35].mxu0  ;;  %v5241_v37 = vadd.f32 %v748_v21, %v5019_v5 }
 0x299   :  { %v5237_v30 = vadd.f32 %v740_v25, %v5016_v3  ;;  %v743_v32 = vadd.f32 %v5231_v13, %v742_v29 }
 0x29a   :  { %v5244_v40 = vadd.f32 %v751_v28, %v5022_v6  ;;  %v900_v3 = vmax.f32 %v5241_v37, 0.0 }
 0x29b   :  { %v5247_v42 = vadd.f32 %v743_v32, %v5025_v8  ;;  %v898_v44 = vmax.f32 %v5237_v30, 0.0 }
 0x29c   :  { %v901_v43 = vmax.f32 %v5244_v40, 0.0 }
 0x29d   :  { %v899_v46 = vmax.f32 %v5247_v42, 0.0  ;;  %v4237_v49 = vpop.f32.mrb[36].mxu0 }
 0x29e   :  { %v764_v51 = vadd.f32 %v4237_v49, %v5231_v13  ;;  %v755_v52 = vpop.f32.mrb[37].mxu0  ;;  %v931_v55 = vpack.c.bf16 %v901_v43, %v900_v3 }
 0x29f   :  { %v756_v5 = vadd.f32 %v5231_v13, %v755_v52  ;;  %v4238_v53 = vpop.f32.mrb[38].mxu0  ;;  %v930_v6 = vpack.c.bf16 %v899_v46, %v898_v44 }
 0x2a0   :  { %v767_v8 = vadd.f32 %v4238_v53, %v5231_v13  ;;  %v758_v58 = vpop.f32.mrb[39].mxu0  ;;  %v5261_v4 = vadd.f32 %v764_v51, %v5035_v19 }
 0x2a1   :  { %v5257_v63 = vadd.f32 %v756_v5, %v5032_v17  ;;  %v759_v2 = vadd.f32 %v5231_v13, %v758_v58  ;;  %4279 = vmatprep.mubr.bf16.mxu1 %v930_v6 }
 0x2a2   :  { %v5264_v7 = vadd.f32 %v767_v8, %v5038_v20  ;;  %4280 = vmatmul.mubr.bf16.vlgmr.msra.gmra.mrb[32].mxu1 %v931_v55  ;;  %v904_v0 = vmax.f32 %v5261_v4, 0.0 }
 0x2a3   :  { %v5267_v26 = vadd.f32 %v759_v2, %v5041_v22  ;;  %v902_v10 = vmax.f32 %v5257_v63, 0.0 }
 0x2a4   :  { %v905_v9 = vmax.f32 %v5264_v7, 0.0 }
 0x2a5   :  { %v903_v17 = vmax.f32 %v5267_v26, 0.0  ;;  %v4241_v11 = vpop.f32.mrb[40].mxu0 }
 0x2a6   :  { %v780_v12 = vadd.f32 %v4241_v11, %v5231_v13  ;;  %v771_v19 = vpop.f32.mrb[41].mxu0  ;;  %v933_v25 = vpack.c.bf16 %v905_v9, %v904_v0 }
 0x2a7   :  { %v772_v15 = vadd.f32 %v5231_v13, %v771_v19  ;;  %v4242_v20 = vpop.f32.mrb[42].mxu0  ;;  %v932_v21 = vpack.c.bf16 %v903_v17, %v902_v10 }
 0x2a8   :  { %v783_v24 = vadd.f32 %v4242_v20, %v5231_v13  ;;  %v774_v22 = vpop.f32.mrb[43].mxu0  ;;  %v5281_v29 = vadd.f32 %v780_v12, %v5051_v33 }
 0x2a9   :  { %v5277_v27 = vadd.f32 %v772_v15, %v5048_v31  ;;  %v775_v28 = vadd.f32 %v5231_v13, %v774_v22  ;;  %4283 = vmatprep.mubr.bf16.mxu1 %v932_v21 }
 0x2aa   :  { %v5284_v32 = vadd.f32 %v783_v24, %v5054_v34  ;;  %4284 = vmatmul.mubr.bf16.gmra.mrb[36].mxu1 %v933_v25  ;;  %v908_v3 = vmax.f32 %v5281_v29, 0.0 }
 0x2ab   :  { %v5287_v43 = vadd.f32 %v775_v28, %v5057_v36  ;;  %v906_v46 = vmax.f32 %v5277_v27, 0.0 }
 0x2ac   :  { %v909_v44 = vmax.f32 %v5284_v32, 0.0 }
 0x2ad   :  { %v907_v31 = vmax.f32 %v5287_v43, 0.0  ;;  %v4245_v49 = vpop.f32.mrb[44].mxu0 }
 0x2ae   :  { %v796_v51 = vadd.f32 %v4245_v49, %v5231_v13  ;;  %v787_v33 = vpop.f32.mrb[45].mxu0  ;;  %v935_v6 = vpack.c.bf16 %v909_v44, %v908_v3 }
 0x2af   :  { %v788_v52 = vadd.f32 %v5231_v13, %v787_v33  ;;  %v4246_v34 = vpop.f32.mrb[46].mxu0  ;;  %v934_v5 = vpack.c.bf16 %v907_v31, %v906_v46 }
 0x2b0   :  { %v799_v53 = vadd.f32 %v4246_v34, %v5231_v13  ;;  %v790_v36 = vpop.f32.mrb[47].mxu0  ;;  %v5301_v58 = vadd.f32 %v796_v51, %v5067_v47 }
 0x2b1   :  { %v5297_v55 = vadd.f32 %v788_v52, %v5064_v45  ;;  %v791_v8 = vadd.f32 %v5231_v13, %v790_v36  ;;  %4287 = vmatprep.mubr.bf16.mxu1 %v934_v5 }
 0x2b2   :  { %v5304_v2 = vadd.f32 %v799_v53, %v5070_v48  ;;  %4288 = vmatmul.mubr.bf16.gmra.mrb[40].mxu1 %v935_v6  ;;  %v912_v0 = vmax.f32 %v5301_v58, 0.0 }
 0x2b3   :  { %v5307_v9 = vadd.f32 %v791_v8, %v5073_v50  ;;  %v910_v17 = vmax.f32 %v5297_v55, 0.0 }
 0x2b4   :  { %v913_v10 = vmax.f32 %v5304_v2, 0.0 }
 0x2b5   :  { %v911_v45 = vmax.f32 %v5307_v9, 0.0  ;;  %v4249_v11 = vpop.f32.mrb[48].mxu0 }
 0x2b6   :  { %v812_v12 = vadd.f32 %v4249_v11, %v5231_v13  ;;  %v803_v47 = vpop.f32.mrb[49].mxu0  ;;  %v937_v21 = vpack.c.bf16 %v913_v10, %v912_v0 }
 0x2b7   :  { %v804_v19 = vadd.f32 %v5231_v13, %v803_v47  ;;  %v4250_v48 = vpop.f32.mrb[50].mxu0  ;;  %v936_v15 = vpack.c.bf16 %v911_v45, %v910_v17 }
 0x2b8   :  { %v815_v20 = vadd.f32 %v4250_v48, %v5231_v13  ;;  %v806_v50 = vpop.f32.mrb[51].mxu0  ;;  %v5321_v25 = vadd.f32 %v812_v12, %v5083_v61 }
 0x2b9   :  { %v5317_v24 = vadd.f32 %v804_v19, %v5080_v59  ;;  %v807_v22 = vadd.f32 %v5231_v13, %v806_v50  ;;  %4291 = vmatprep.mubr.bf16.mxu1 %v936_v15 }
 0x2ba   :  { %v5324_v28 = vadd.f32 %v815_v20, %v5086_v62  ;;  %4292 = vmatmul.mubr.bf16.gmra.mrb[44].mxu1 %v937_v21  ;;  %v916_v3 = vmax.f32 %v5321_v25, 0.0 }
 0x2bb   :  { %v5327_v44 = vadd.f32 %v807_v22, %v5089_v1  ;;  %v914_v31 = vmax.f32 %v5317_v24, 0.0 }
 0x2bc   :  { %v917_v46 = vmax.f32 %v5324_v28, 0.0 }
 0x2bd   :  { %v915_v59 = vmax.f32 %v5327_v44, 0.0  ;;  %v4253_v49 = vpop.f32.mrb[52].mxu0 }
 0x2be   :  { %v828_v51 = vadd.f32 %v4253_v49, %v5231_v13  ;;  %v819_v61 = vpop.f32.mrb[53].mxu0  ;;  %v939_v5 = vpack.c.bf16 %v917_v46, %v916_v3 }
 0x2bf   :  { %v820_v33 = vadd.f32 %v5231_v13, %v819_v61  ;;  %v4254_v62 = vpop.f32.mrb[54].mxu0  ;;  %v938_v52 = vpack.c.bf16 %v915_v59, %v914_v31 }
 0x2c0   :  { %v831_v34 = vadd.f32 %v4254_v62, %v5231_v13  ;;  %v822_v1 = vpop.f32.mrb[55].mxu0  ;;  %v5341_v6 = vadd.f32 %v828_v51, %v5099_v16 }
 0x2c1   :  { %v5337_v53 = vadd.f32 %v820_v33, %v5096_v14  ;;  %v823_v36 = vadd.f32 %v5231_v13, %v822_v1  ;;  %4295 = vmatprep.mubr.bf16.mxu1 %v938_v52 }
 0x2c2   :  { %v5344_v8 = vadd.f32 %v831_v34, %v5102_v18  ;;  %4296 = vmatmul.mubr.bf16.gmra.mrb[48].mxu1 %v939_v5  ;;  %v920_v0 = vmax.f32 %v5341_v6, 0.0 }
 0x2c3   :  { %v5347_v10 = vadd.f32 %v823_v36, %v5105_v23  ;;  %v918_v45 = vmax.f32 %v5337_v53, 0.0 }
 0x2c4   :  { %v921_v17 = vmax.f32 %v5344_v8, 0.0 }
 0x2c5   :  { %v919_v14 = vmax.f32 %v5347_v10, 0.0  ;;  %v4257_v11 = vpop.f32.mrb[56].mxu0 }
 0x2c6   :  { %v844_v12 = vadd.f32 %v4257_v11, %v5231_v13  ;;  %v835_v16 = vpop.f32.mrb[57].mxu0  ;;  %v941_v15 = vpack.c.bf16 %v921_v17, %v920_v0 }
 0x2c7   :  { %v836_v47 = vadd.f32 %v5231_v13, %v835_v16  ;;  %v4258_v18 = vpop.f32.mrb[58].mxu0  ;;  %v940_v19 = vpack.c.bf16 %v919_v14, %v918_v45  ;;  %v4747_v16 = vld [vmem:[%s6461_s3 + $0x98] sm:$0xff]  }
 0x2c8   :  { %v847_v48 = vadd.f32 %v4258_v18, %v5231_v13  ;;  %v838_v23 = vpop.f32.mrb[59].mxu0  ;;  %v5361_v21 = vadd.f32 %v844_v12, %v5115_v38  ;;  %v4746_v12 = vld [vmem:[%s6461_s3 + $0x90] sm:$0xff]   ;;  %v4749_v18 = vld [vmem:[%s6461_s3 + $0xa8] sm:$0xff]  }
 0x2c9   :  { %v5357_v20 = vadd.f32 %v836_v47, %v5112_v35  ;;  %v839_v50 = vadd.f32 %v5231_v13, %v838_v23  ;;  %4299 = vmatprep.mubr.bf16.mxu1 %v940_v19  ;;  %v4748_v47 = vld [vmem:[%s6461_s3 + $0xa0] sm:$0xff]   ;;  %v4750_v19 = vld [vmem:[%s6461_s3 + $0xb0] sm:$0xff]  }
 0x2ca   :  { %v5364_v22 = vadd.f32 %v847_v48, %v5118_v39  ;;  %4300 = vmatmul.mubr.bf16.gmra.mrb[52].mxu1 %v941_v15  ;;  %v924_v3 = vmax.f32 %v5361_v21, 0.0  ;;  %v5420_v48 = vld [vmem:[%s6464_s4 + $0x1] ss:$0 sm:$0xff] }
 0x2cb   :  { %v5367_v46 = vadd.f32 %v839_v50, %v5121_v41  ;;  %v922_v59 = vmax.f32 %v5357_v20, 0.0 }
 0x2cc   :  { %v925_v31 = vmax.f32 %v5364_v22, 0.0 }
 0x2cd   :  { %v923_v35 = vmax.f32 %v5367_v46, 0.0  ;;  %v4261_v49 = vpop.f32.mrb[60].mxu0 }
 0x2ce   :  { %v860_v51 = vadd.f32 %v4261_v49, %v5231_v13  ;;  %v851_v38 = vpop.f32.mrb[61].mxu0  ;;  %v943_v52 = vpack.c.bf16 %v925_v31, %v924_v3 }
 0x2cf   :  { %v852_v61 = vadd.f32 %v5231_v13, %v851_v38  ;;  %v4262_v39 = vpop.f32.mrb[62].mxu0  ;;  %v942_v33 = vpack.c.bf16 %v923_v35, %v922_v59 }
 0x2d0   :  { %v863_v62 = vadd.f32 %v4262_v39, %v5231_v13  ;;  %v854_v41 = vpop.f32.mrb[63].mxu0  ;;  %v5381_v5 = vadd.f32 %v860_v51, %v5131_v56  ;;  %v4743_v56 = vld [vmem:[%s6462_s5 + $0x78] sm:$0xff]  }
 0x2d1   :  { %v5377_v34 = vadd.f32 %v852_v61, %v5128_v54  ;;  %v855_v1 = vadd.f32 %v5231_v13, %v854_v41  ;;  %4303 = vmatprep.mubr.bf16.mxu1 %v942_v33  ;;  %4325 = vmatprep.subr.bf16.mxu0 %v4743_v56 }
 0x2d2   :  { %v5384_v36 = vadd.f32 %v863_v62, %v5134_v57  ;;  %4304 = vmatmul.mubr.bf16.gmra.mrb[56].mxu1 %v943_v52  ;;  %v928_v11 = vmax.f32 %v5381_v5, 0.0  ;;  %4326 = vmatpush3.bf16.msra.mxu0 %v4743_v56  ;;  %v4744_v57 = vld [vmem:[%s6461_s3 + $0x80] sm:$0xff]  }
 0x2d3   :  { %v5387_v17 = vadd.f32 %v855_v1, %v5137_v60  ;;  %v926_v14 = vmax.f32 %v5377_v34, 0.0  ;;  %v4745_v60 = vld [vmem:[%s6461_s3 + $0x88] sm:$0xff]   ;;  %4359 = vmatprep.subr.bf16.mxu1 %v4744_v57 }
 0x2d4   :  { %v929_v45 = vmax.f32 %v5384_v36, 0.0  ;;  %4360 = vmatpush3.bf16.msra.mxu1 %v4744_v57 }
 0x2d5   :  { %v927_v54 = vmax.f32 %v5387_v17, 0.0  ;;  %4361 = vmatprep.subr.bf16.mxu1 %v4745_v60 }
 0x2d6   :  { %v945_v0 = vpack.c.bf16 %v929_v45, %v928_v11 }
 0x2d7   :  { %v944_v13 = vpack.c.bf16 %v927_v54, %v926_v14 }
 0x2d8   :  { %4362 = vmatpush3.bf16.msra.mxu1 %v4745_v60 }
 0x2d9   :  { %4307 = vmatprep.mubr.bf16.mxu1 %v944_v13  ;;  %4363 = vmatprep.subr.bf16.mxu1 %v4746_v12 }
 0x2da   :  { %4308 = vmatmul.mubr.bf16.gmra.mrb[60].mxu1 %v945_v0 }
 0x2dc   :  { %4364 = vmatpush3.bf16.msra.mxu1 %v4746_v12 }
 0x2dd   :  { %4365 = vmatprep.subr.bf16.mxu1 %v4747_v16 }
 0x2e0   :  { %4366 = vmatpush3.bf16.msra.mxu1 %v4747_v16 }
 0x2e1   :  { %4367 = vmatprep.subr.bf16.mxu1 %v4748_v47 }
 0x2e4   :  { %4368 = vmatpush3.bf16.msra.mxu1 %v4748_v47 }
 0x2e5   :  { %4369 = vmatprep.subr.bf16.mxu1 %v4749_v18 }
 0x2e8   :  { %4370 = vmatpush3.bf16.msra.mxu1 %v4749_v18 }
 0x2e9   :  { %4371 = vmatprep.subr.bf16.mxu1 %v4750_v19 }
 0x2ec   :  { %4372 = vmatpush3.bf16.msra.mxu1 %v4750_v19 }
 0x375   :  { %v4281_v23 = vpop.f32.mrb[32].mxu1 }
 0x376   :  { %v1062_v15 = vadd.f32 %v4281_v23, %v5420_v48  ;;  %v1053_v50 = vpop.f32.mrb[33].mxu1 }
 0x377   :  { %v1054_v31 = vadd.f32 %v5420_v48, %v1053_v50  ;;  %v4282_v59 = vpop.f32.mrb[34].mxu1 }
 0x378   :  { %v1065_v35 = vadd.f32 %v4282_v59, %v5420_v48  ;;  %v1056_v49 = vpop.f32.mrb[35].mxu1  ;;  %v1182_v51 = vmax.f32 %v1062_v15, 0.0 }
 0x379   :  { %v1057_v3 = vadd.f32 %v5420_v48, %v1056_v49  ;;  %v1180_v61 = vmax.f32 %v1054_v31, 0.0 }
 0x37a   :  { %v1183_v38 = vmax.f32 %v1065_v35, 0.0 }
 0x37b   :  { %v1181_v39 = vmax.f32 %v1057_v3, 0.0 }
 0x37c   :  { %v1213_v33 = vpack.c.bf16 %v1183_v38, %v1182_v51 }
 0x37d   :  { %v1212_v62 = vpack.c.bf16 %v1181_v39, %v1180_v61  ;;  %v4285_v41 = vpop.f32.mrb[36].mxu1 }
 0x37e   :  { %v1078_v52 = vadd.f32 %v4285_v41, %v5420_v48  ;;  %v1069_v1 = vpop.f32.mrb[37].mxu1 }
 0x37f   :  { %v1070_v45 = vadd.f32 %v5420_v48, %v1069_v1  ;;  %v4286_v14 = vpop.f32.mrb[38].mxu1  ;;  %4327 = vmatprep.mubr.bf16.mxu0 %v1212_v62 }
 0x380   :  { %v1081_v54 = vadd.f32 %v4286_v14, %v5420_v48  ;;  %v1072_v11 = vpop.f32.mrb[39].mxu1  ;;  %4328 = vmatmul.mubr.bf16.vlgmr.msra.gmra.mrb[64].mxu0 %v1213_v33  ;;  %v1186_v0 = vmax.f32 %v1078_v52, 0.0 }
 0x381   :  { %v1073_v13 = vadd.f32 %v5420_v48, %v1072_v11  ;;  %v1184_v57 = vmax.f32 %v1070_v45, 0.0 }
 0x382   :  { %v1187_v56 = vmax.f32 %v1081_v54, 0.0 }
 0x383   :  { %v1185_v60 = vmax.f32 %v1073_v13, 0.0 }
 0x384   :  { %v1215_v12 = vpack.c.bf16 %v1187_v56, %v1186_v0 }
 0x385   :  { %v1214_v16 = vpack.c.bf16 %v1185_v60, %v1184_v57  ;;  %v4289_v47 = vpop.f32.mrb[40].mxu1 }
 0x386   :  { %v1094_v18 = vadd.f32 %v4289_v47, %v5420_v48  ;;  %v1085_v19 = vpop.f32.mrb[41].mxu1 }
 0x387   :  { %v1086_v23 = vadd.f32 %v5420_v48, %v1085_v19  ;;  %v4290_v15 = vpop.f32.mrb[42].mxu1  ;;  %4331 = vmatprep.mubr.bf16.mxu0 %v1214_v16 }
 0x388   :  { %v1097_v50 = vadd.f32 %v4290_v15, %v5420_v48  ;;  %v1088_v31 = vpop.f32.mrb[43].mxu1  ;;  %4332 = vmatmul.mubr.bf16.gmra.mrb[68].mxu0 %v1215_v12  ;;  %v1190_v35 = vmax.f32 %v1094_v18, 0.0 }
 0x389   :  { %v1089_v59 = vadd.f32 %v5420_v48, %v1088_v31  ;;  %v1188_v3 = vmax.f32 %v1086_v23, 0.0 }
 0x38a   :  { %v1191_v49 = vmax.f32 %v1097_v50, 0.0 }
 0x38b   :  { %v1189_v51 = vmax.f32 %v1089_v59, 0.0 }
 0x38c   :  { %v1217_v38 = vpack.c.bf16 %v1191_v49, %v1190_v35 }
 0x38d   :  { %v1216_v61 = vpack.c.bf16 %v1189_v51, %v1188_v3  ;;  %v4293_v39 = vpop.f32.mrb[44].mxu1 }
 0x38e   :  { %v1110_v33 = vadd.f32 %v4293_v39, %v5420_v48  ;;  %v1101_v62 = vpop.f32.mrb[45].mxu1 }
 0x38f   :  { %v1102_v41 = vadd.f32 %v5420_v48, %v1101_v62  ;;  %v4294_v52 = vpop.f32.mrb[46].mxu1  ;;  %4335 = vmatprep.mubr.bf16.mxu0 %v1216_v61 }
 0x390   :  { %v1113_v1 = vadd.f32 %v4294_v52, %v5420_v48  ;;  %v1104_v45 = vpop.f32.mrb[47].mxu1  ;;  %4336 = vmatmul.mubr.bf16.gmra.mrb[72].mxu0 %v1217_v38  ;;  %v1194_v54 = vmax.f32 %v1110_v33, 0.0 }
 0x391   :  { %v1105_v14 = vadd.f32 %v5420_v48, %v1104_v45  ;;  %v1192_v13 = vmax.f32 %v1102_v41, 0.0 }
 0x392   :  { %v1195_v11 = vmax.f32 %v1113_v1, 0.0 }
 0x393   :  { %v1193_v0 = vmax.f32 %v1105_v14, 0.0 }
 0x394   :  { %v1219_v56 = vpack.c.bf16 %v1195_v11, %v1194_v54 }
 0x395   :  { %v1218_v57 = vpack.c.bf16 %v1193_v0, %v1192_v13  ;;  %v4297_v60 = vpop.f32.mrb[48].mxu1 }
 0x396   :  { %v1126_v12 = vadd.f32 %v4297_v60, %v5420_v48  ;;  %v1117_v16 = vpop.f32.mrb[49].mxu1 }
 0x397   :  { %v1118_v47 = vadd.f32 %v5420_v48, %v1117_v16  ;;  %v4298_v18 = vpop.f32.mrb[50].mxu1  ;;  %4339 = vmatprep.mubr.bf16.mxu0 %v1218_v57 }
 0x398   :  { %v1129_v19 = vadd.f32 %v4298_v18, %v5420_v48  ;;  %v1120_v23 = vpop.f32.mrb[51].mxu1  ;;  %4340 = vmatmul.mubr.bf16.gmra.mrb[76].mxu0 %v1219_v56  ;;  %v1198_v50 = vmax.f32 %v1126_v12, 0.0 }
 0x399   :  { %v1121_v15 = vadd.f32 %v5420_v48, %v1120_v23  ;;  %v1196_v59 = vmax.f32 %v1118_v47, 0.0 }
 0x39a   :  { %v1199_v31 = vmax.f32 %v1129_v19, 0.0 }
 0x39b   :  { %v1197_v35 = vmax.f32 %v1121_v15, 0.0 }
 0x39c   :  { %v1221_v49 = vpack.c.bf16 %v1199_v31, %v1198_v50 }
 0x39d   :  { %v1220_v3 = vpack.c.bf16 %v1197_v35, %v1196_v59  ;;  %v4301_v51 = vpop.f32.mrb[52].mxu1 }
 0x39e   :  { %v1142_v38 = vadd.f32 %v4301_v51, %v5420_v48  ;;  %v1133_v61 = vpop.f32.mrb[53].mxu1 }
 0x39f   :  { %v1134_v39 = vadd.f32 %v5420_v48, %v1133_v61  ;;  %v4302_v33 = vpop.f32.mrb[54].mxu1  ;;  %4343 = vmatprep.mubr.bf16.mxu0 %v1220_v3 }
 0x3a0   :  { %v1145_v62 = vadd.f32 %v4302_v33, %v5420_v48  ;;  %v1136_v41 = vpop.f32.mrb[55].mxu1  ;;  %4344 = vmatmul.mubr.bf16.gmra.mrb[80].mxu0 %v1221_v49  ;;  %v1202_v1 = vmax.f32 %v1142_v38, 0.0 }
 0x3a1   :  { %v1137_v52 = vadd.f32 %v5420_v48, %v1136_v41  ;;  %v1200_v14 = vmax.f32 %v1134_v39, 0.0 }
 0x3a2   :  { %v1203_v45 = vmax.f32 %v1145_v62, 0.0 }
 0x3a3   :  { %v1201_v54 = vmax.f32 %v1137_v52, 0.0 }
 0x3a4   :  { %v1223_v11 = vpack.c.bf16 %v1203_v45, %v1202_v1 }
 0x3a5   :  { %v1222_v13 = vpack.c.bf16 %v1201_v54, %v1200_v14  ;;  %v4305_v0 = vpop.f32.mrb[56].mxu1  ;;  %v4751_v54 = vld [vmem:[%s6461_s3 + $0xb8] sm:$0xff]  }
 0x3a6   :  { %v1158_v56 = vadd.f32 %v4305_v0, %v5420_v48  ;;  %v1149_v57 = vpop.f32.mrb[57].mxu1  ;;  %4373 = vmatprep.subr.bf16.mxu1 %v4751_v54  ;;  %v4755_v0 = vld [vmem:[%s6462_s5 + $0x98] sm:$0xff]  }
 0x3a7   :  { %v1150_v60 = vadd.f32 %v5420_v48, %v1149_v57  ;;  %v4306_v12 = vpop.f32.mrb[58].mxu1  ;;  %4347 = vmatprep.mubr.bf16.mxu0 %v1222_v13  ;;  %4374 = vmatpush3.bf16.msra.mxu1 %v4751_v54  ;;  %v4754_v13 = vld [vmem:[%s6462_s5 + $0x90] sm:$0xff]   ;;  %v4757_v57 = vld [vmem:[%s6462_s5 + $0xa8] sm:$0xff]  }
 0x3a8   :  { %v1161_v16 = vadd.f32 %v4306_v12, %v5420_v48  ;;  %v1152_v47 = vpop.f32.mrb[59].mxu1  ;;  %4348 = vmatmul.mubr.bf16.gmra.mrb[84].mxu0 %v1223_v11  ;;  %v1206_v19 = vmax.f32 %v1158_v56, 0.0  ;;  %v4752_v11 = vld [vmem:[%s6462_s5 + $0x80] sm:$0xff]  }
 0x3a9   :  { %v1153_v18 = vadd.f32 %v5420_v48, %v1152_v47  ;;  %v1204_v15 = vmax.f32 %v1150_v60, 0.0  ;;  %4407 = vmatprep.subr.bf16.mxu0 %v4752_v11  ;;  %v4756_v56 = vld [vmem:[%s6462_s5 + $0xa0] sm:$0xff]   ;;  %v4758_v60 = vld [vmem:[%s6462_s5 + $0xb0] sm:$0xff]  }
 0x3aa   :  { %v1207_v23 = vmax.f32 %v1161_v16, 0.0  ;;  %4408 = vmatpush3.bf16.msra.mxu0 %v4752_v11  ;;  %v5481_v12 = vld [vmem:[%s6465_s6 + $0x1] ss:$0 sm:$0xff] }
 0x3ab   :  { %v1205_v50 = vmax.f32 %v1153_v18, 0.0 }
 0x3ac   :  { %v1225_v31 = vpack.c.bf16 %v1207_v23, %v1206_v19 }
 0x3ad   :  { %v1224_v59 = vpack.c.bf16 %v1205_v50, %v1204_v15  ;;  %v4309_v35 = vpop.f32.mrb[60].mxu1 }
 0x3ae   :  { %v1174_v49 = vadd.f32 %v4309_v35, %v5420_v48  ;;  %v1165_v3 = vpop.f32.mrb[61].mxu1 }
 0x3af   :  { %v1166_v51 = vadd.f32 %v5420_v48, %v1165_v3  ;;  %v4310_v38 = vpop.f32.mrb[62].mxu1  ;;  %4351 = vmatprep.mubr.bf16.mxu0 %v1224_v59 }
 0x3b0   :  { %v1177_v61 = vadd.f32 %v4310_v38, %v5420_v48  ;;  %v1168_v39 = vpop.f32.mrb[63].mxu1  ;;  %4352 = vmatmul.mubr.bf16.gmra.mrb[88].mxu0 %v1225_v31  ;;  %v1210_v62 = vmax.f32 %v1174_v49, 0.0 }
 0x3b1   :  { %v1169_v33 = vadd.f32 %v5420_v48, %v1168_v39  ;;  %v1208_v52 = vmax.f32 %v1166_v51, 0.0  ;;  %v4753_v48 = vld [vmem:[%s6462_s5 + $0x88] sm:$0xff]  }
 0x3b2   :  { %v1211_v41 = vmax.f32 %v1177_v61, 0.0  ;;  %4409 = vmatprep.subr.bf16.mxu0 %v4753_v48 }
 0x3b3   :  { %v1209_v1 = vmax.f32 %v1169_v33, 0.0  ;;  %4410 = vmatpush3.bf16.msra.mxu0 %v4753_v48 }
 0x3b4   :  { %v1227_v45 = vpack.c.bf16 %v1211_v41, %v1210_v62  ;;  %4411 = vmatprep.subr.bf16.mxu0 %v4754_v13 }
 0x3b5   :  { %v1226_v14 = vpack.c.bf16 %v1209_v1, %v1208_v52 }
 0x3b7   :  { %4355 = vmatprep.mubr.bf16.mxu0 %v1226_v14  ;;  %4412 = vmatpush3.bf16.msra.mxu0 %v4754_v13 }
 0x3b8   :  { %4356 = vmatmul.mubr.bf16.gmra.mrb[92].mxu0 %v1227_v45  ;;  %4413 = vmatprep.subr.bf16.mxu0 %v4755_v0 }
 0x3bb   :  { %4414 = vmatpush3.bf16.msra.mxu0 %v4755_v0 }
 0x3bc   :  { %4415 = vmatprep.subr.bf16.mxu0 %v4756_v56 }
 0x3bf   :  { %4416 = vmatpush3.bf16.msra.mxu0 %v4756_v56 }
 0x3c0   :  { %4417 = vmatprep.subr.bf16.mxu0 %v4757_v57 }
 0x3c3   :  { %4418 = vmatpush3.bf16.msra.mxu0 %v4757_v57 }
 0x3c4   :  { %4419 = vmatprep.subr.bf16.mxu0 %v4758_v60 }
 0x3c7   :  { %4420 = vmatpush3.bf16.msra.mxu0 %v4758_v60 }
 0x453   :  { %v4329_v16 = vpop.f32.mrb[64].mxu0 }
 0x454   :  { %v1344_v47 = vadd.f32 %v4329_v16, %v5481_v12  ;;  %v1335_v18 = vpop.f32.mrb[65].mxu0 }
 0x455   :  { %v1336_v19 = vadd.f32 %v5481_v12, %v1335_v18  ;;  %v4330_v23 = vpop.f32.mrb[66].mxu0 }
 0x456   :  { %v1347_v15 = vadd.f32 %v4330_v23, %v5481_v12  ;;  %v1338_v50 = vpop.f32.mrb[67].mxu0  ;;  %v5491_v35 = vadd.f32 %v1344_v47, %v5241_v37 }
 0x457   :  { %v5487_v31 = vadd.f32 %v1336_v19, %v5237_v30  ;;  %v1339_v59 = vadd.f32 %v5481_v12, %v1338_v50 }
 0x458   :  { %v5494_v49 = vadd.f32 %v1347_v15, %v5244_v40  ;;  %v1496_v30 = vmax.f32 %v5491_v35, 0.0 }
 0x459   :  { %v5497_v3 = vadd.f32 %v1339_v59, %v5247_v42  ;;  %v1494_v38 = vmax.f32 %v5487_v31, 0.0 }
 0x45a   :  { %v1497_v51 = vmax.f32 %v5494_v49, 0.0 }
 0x45b   :  { %v1495_v61 = vmax.f32 %v5497_v3, 0.0  ;;  %v4333_v39 = vpop.f32.mrb[68].mxu0 }
 0x45c   :  { %v1360_v33 = vadd.f32 %v4333_v39, %v5481_v12  ;;  %v1351_v62 = vpop.f32.mrb[69].mxu0  ;;  %v1527_v52 = vpack.c.bf16 %v1497_v51, %v1496_v30 }
 0x45d   :  { %v1352_v37 = vadd.f32 %v5481_v12, %v1351_v62  ;;  %v4334_v41 = vpop.f32.mrb[70].mxu0  ;;  %v1526_v40 = vpack.c.bf16 %v1495_v61, %v1494_v38 }
 0x45e   :  { %v1363_v42 = vadd.f32 %v4334_v41, %v5481_v12  ;;  %v1354_v1 = vpop.f32.mrb[71].mxu0  ;;  %v5511_v54 = vadd.f32 %v1360_v33, %v5261_v4 }
 0x45f   :  { %v5507_v45 = vadd.f32 %v1352_v37, %v5257_v63  ;;  %v1355_v14 = vadd.f32 %v5481_v12, %v1354_v1  ;;  %4375 = vmatprep.mubr.bf16.mxu1 %v1526_v40 }
 0x460   :  { %v5514_v11 = vadd.f32 %v1363_v42, %v5264_v7  ;;  %4376 = vmatmul.mubr.bf16.vlgmr.msra.gmra.mrb[64].mxu1 %v1527_v52  ;;  %v1500_v57 = vmax.f32 %v5511_v54, 0.0 }
 0x461   :  { %v5517_v48 = vadd.f32 %v1355_v14, %v5267_v26  ;;  %v1498_v0 = vmax.f32 %v5507_v45, 0.0 }
 0x462   :  { %v1501_v13 = vmax.f32 %v5514_v11, 0.0 }
 0x463   :  { %v1499_v63 = vmax.f32 %v5517_v48, 0.0  ;;  %v4337_v56 = vpop.f32.mrb[72].mxu0 }
 0x464   :  { %v1376_v60 = vadd.f32 %v4337_v56, %v5481_v12  ;;  %v1367_v4 = vpop.f32.mrb[73].mxu0  ;;  %v1529_v19 = vpack.c.bf16 %v1501_v13, %v1500_v57 }
 0x465   :  { %v1368_v16 = vadd.f32 %v5481_v12, %v1367_v4  ;;  %v4338_v7 = vpop.f32.mrb[74].mxu0  ;;  %v1528_v47 = vpack.c.bf16 %v1499_v63, %v1498_v0 }
 0x466   :  { %v1379_v18 = vadd.f32 %v4338_v7, %v5481_v12  ;;  %v1370_v26 = vpop.f32.mrb[75].mxu0  ;;  %v5531_v50 = vadd.f32 %v1376_v60, %v5281_v29 }
 0x467   :  { %v5527_v23 = vadd.f32 %v1368_v16, %v5277_v27  ;;  %v1371_v15 = vadd.f32 %v5481_v12, %v1370_v26  ;;  %4379 = vmatprep.mubr.bf16.mxu1 %v1528_v47 }
 0x468   :  { %v5534_v59 = vadd.f32 %v1379_v18, %v5284_v32  ;;  %4380 = vmatmul.mubr.bf16.gmra.mrb[68].mxu1 %v1529_v19  ;;  %v1504_v30 = vmax.f32 %v5531_v50, 0.0 }
 0x469   :  { %v5537_v51 = vadd.f32 %v1371_v15, %v5287_v43  ;;  %v1502_v61 = vmax.f32 %v5527_v23, 0.0 }
 0x46a   :  { %v1505_v38 = vmax.f32 %v5534_v59, 0.0 }
 0x46b   :  { %v1503_v27 = vmax.f32 %v5537_v51, 0.0  ;;  %v4341_v39 = vpop.f32.mrb[76].mxu0 }
 0x46c   :  { %v1392_v33 = vadd.f32 %v4341_v39, %v5481_v12  ;;  %v1383_v29 = vpop.f32.mrb[77].mxu0  ;;  %v1531_v40 = vpack.c.bf16 %v1505_v38, %v1504_v30 }
 0x46d   :  { %v1384_v62 = vadd.f32 %v5481_v12, %v1383_v29  ;;  %v4342_v32 = vpop.f32.mrb[78].mxu0  ;;  %v1530_v37 = vpack.c.bf16 %v1503_v27, %v1502_v61 }
 0x46e   :  { %v1395_v41 = vadd.f32 %v4342_v32, %v5481_v12  ;;  %v1386_v43 = vpop.f32.mrb[79].mxu0  ;;  %v5551_v1 = vadd.f32 %v1392_v33, %v5301_v58 }
 0x46f   :  { %v5547_v52 = vadd.f32 %v1384_v62, %v5297_v55  ;;  %v1387_v42 = vadd.f32 %v5481_v12, %v1386_v43  ;;  %4383 = vmatprep.mubr.bf16.mxu1 %v1530_v37 }
 0x470   :  { %v5554_v14 = vadd.f32 %v1395_v41, %v5304_v2  ;;  %4384 = vmatmul.mubr.bf16.gmra.mrb[72].mxu1 %v1531_v40  ;;  %v1508_v57 = vmax.f32 %v5551_v1, 0.0 }
 0x471   :  { %v5557_v13 = vadd.f32 %v1387_v42, %v5307_v9  ;;  %v1506_v63 = vmax.f32 %v5547_v52, 0.0 }
 0x472   :  { %v1509_v0 = vmax.f32 %v5554_v14, 0.0 }
 0x473   :  { %v1507_v55 = vmax.f32 %v5557_v13, 0.0  ;;  %v4345_v56 = vpop.f32.mrb[80].mxu0 }
 0x474   :  { %v1408_v60 = vadd.f32 %v4345_v56, %v5481_v12  ;;  %v1399_v58 = vpop.f32.mrb[81].mxu0  ;;  %v1533_v47 = vpack.c.bf16 %v1509_v0, %v1508_v57 }
 0x475   :  { %v1400_v4 = vadd.f32 %v5481_v12, %v1399_v58  ;;  %v4346_v2 = vpop.f32.mrb[82].mxu0  ;;  %v1532_v16 = vpack.c.bf16 %v1507_v55, %v1506_v63 }
 0x476   :  { %v1411_v7 = vadd.f32 %v4346_v2, %v5481_v12  ;;  %v1402_v9 = vpop.f32.mrb[83].mxu0  ;;  %v5571_v19 = vadd.f32 %v1408_v60, %v5321_v25 }
 0x477   :  { %v5567_v18 = vadd.f32 %v1400_v4, %v5317_v24  ;;  %v1403_v26 = vadd.f32 %v5481_v12, %v1402_v9  ;;  %4387 = vmatprep.mubr.bf16.mxu1 %v1532_v16 }
 0x478   :  { %v5574_v15 = vadd.f32 %v1411_v7, %v5324_v28  ;;  %4388 = vmatmul.mubr.bf16.gmra.mrb[76].mxu1 %v1533_v47  ;;  %v1512_v30 = vmax.f32 %v5571_v19, 0.0 }
 0x479   :  { %v5577_v38 = vadd.f32 %v1403_v26, %v5327_v44  ;;  %v1510_v27 = vmax.f32 %v5567_v18, 0.0 }
 0x47a   :  { %v1513_v61 = vmax.f32 %v5574_v15, 0.0 }
 0x47b   :  { %v1511_v24 = vmax.f32 %v5577_v38, 0.0  ;;  %v4349_v39 = vpop.f32.mrb[84].mxu0 }
 0x47c   :  { %v1424_v33 = vadd.f32 %v4349_v39, %v5481_v12  ;;  %v1415_v25 = vpop.f32.mrb[85].mxu0  ;;  %v1535_v37 = vpack.c.bf16 %v1513_v61, %v1512_v30 }
 0x47d   :  { %v1416_v29 = vadd.f32 %v5481_v12, %v1415_v25  ;;  %v4350_v28 = vpop.f32.mrb[86].mxu0  ;;  %v1534_v62 = vpack.c.bf16 %v1511_v24, %v1510_v27 }
 0x47e   :  { %v1427_v32 = vadd.f32 %v4350_v28, %v5481_v12  ;;  %v1418_v44 = vpop.f32.mrb[87].mxu0  ;;  %v5591_v40 = vadd.f32 %v1424_v33, %v5341_v6 }
 0x47f   :  { %v5587_v41 = vadd.f32 %v1416_v29, %v5337_v53  ;;  %v1419_v43 = vadd.f32 %v5481_v12, %v1418_v44  ;;  %4391 = vmatprep.mubr.bf16.mxu1 %v1534_v62 }
 0x480   :  { %v5594_v42 = vadd.f32 %v1427_v32, %v5344_v8  ;;  %4392 = vmatmul.mubr.bf16.gmra.mrb[80].mxu1 %v1535_v37  ;;  %v1516_v57 = vmax.f32 %v5591_v40, 0.0 }
 0x481   :  { %v5597_v0 = vadd.f32 %v1419_v43, %v5347_v10  ;;  %v1514_v55 = vmax.f32 %v5587_v41, 0.0 }
 0x482   :  { %v1517_v63 = vmax.f32 %v5594_v42, 0.0 }
 0x483   :  { %v1515_v53 = vmax.f32 %v5597_v0, 0.0  ;;  %v4353_v56 = vpop.f32.mrb[88].mxu0 }
 0x484   :  { %v1440_v60 = vadd.f32 %v4353_v56, %v5481_v12  ;;  %v1431_v6 = vpop.f32.mrb[89].mxu0  ;;  %v1537_v16 = vpack.c.bf16 %v1517_v63, %v1516_v57 }
 0x485   :  { %v1432_v58 = vadd.f32 %v5481_v12, %v1431_v6  ;;  %v4354_v8 = vpop.f32.mrb[90].mxu0  ;;  %v1536_v4 = vpack.c.bf16 %v1515_v53, %v1514_v55  ;;  %v4763_v6 = vld [vmem:[%s6461_s3 + $0xd8] sm:$0xff]  }
 0x486   :  { %v1443_v2 = vadd.f32 %v4354_v8, %v5481_v12  ;;  %v1434_v10 = vpop.f32.mrb[91].mxu0  ;;  %v5611_v47 = vadd.f32 %v1440_v60, %v5361_v21  ;;  %v4762_v60 = vld [vmem:[%s6461_s3 + $0xd0] sm:$0xff]   ;;  %v4765_v8 = vld [vmem:[%s6461_s3 + $0xe8] sm:$0xff]  }
 0x487   :  { %v5607_v7 = vadd.f32 %v1432_v58, %v5357_v20  ;;  %v1435_v9 = vadd.f32 %v5481_v12, %v1434_v10  ;;  %4395 = vmatprep.mubr.bf16.mxu1 %v1536_v4  ;;  %v4764_v58 = vld [vmem:[%s6461_s3 + $0xe0] sm:$0xff]   ;;  %v4766_v4 = vld [vmem:[%s6461_s3 + $0xf0] sm:$0xff]  }
 0x488   :  { %v5614_v26 = vadd.f32 %v1443_v2, %v5364_v22  ;;  %4396 = vmatmul.mubr.bf16.gmra.mrb[84].mxu1 %v1537_v16  ;;  %v1520_v30 = vmax.f32 %v5611_v47, 0.0  ;;  %v5670_v2 = vld [vmem:[%s6464_s4 + $0x2] ss:$0 sm:$0xff] }
 0x489   :  { %v5617_v61 = vadd.f32 %v1435_v9, %v5367_v46  ;;  %v1518_v24 = vmax.f32 %v5607_v7, 0.0 }
 0x48a   :  { %v1521_v27 = vmax.f32 %v5614_v26, 0.0 }
 0x48b   :  { %v1519_v20 = vmax.f32 %v5617_v61, 0.0  ;;  %v4357_v39 = vpop.f32.mrb[92].mxu0 }
 0x48c   :  { %v1456_v33 = vadd.f32 %v4357_v39, %v5481_v12  ;;  %v1447_v21 = vpop.f32.mrb[93].mxu0  ;;  %v1539_v62 = vpack.c.bf16 %v1521_v27, %v1520_v30 }
 0x48d   :  { %v1448_v25 = vadd.f32 %v5481_v12, %v1447_v21  ;;  %v4358_v22 = vpop.f32.mrb[94].mxu0  ;;  %v1538_v29 = vpack.c.bf16 %v1519_v20, %v1518_v24 }
 0x48e   :  { %v1459_v28 = vadd.f32 %v4358_v22, %v5481_v12  ;;  %v1450_v46 = vpop.f32.mrb[95].mxu0  ;;  %v5631_v37 = vadd.f32 %v1456_v33, %v5381_v5  ;;  %v4759_v5 = vld [vmem:[%s6462_s5 + $0xb8] sm:$0xff]  }
 0x48f   :  { %v5627_v32 = vadd.f32 %v1448_v25, %v5377_v34  ;;  %v1451_v44 = vadd.f32 %v5481_v12, %v1450_v46  ;;  %4399 = vmatprep.mubr.bf16.mxu1 %v1538_v29  ;;  %4421 = vmatprep.subr.bf16.mxu0 %v4759_v5 }
 0x490   :  { %v5634_v43 = vadd.f32 %v1459_v28, %v5384_v36  ;;  %4400 = vmatmul.mubr.bf16.gmra.mrb[88].mxu1 %v1539_v62  ;;  %v1524_v56 = vmax.f32 %v5631_v37, 0.0  ;;  %4422 = vmatpush3.bf16.msra.mxu0 %v4759_v5  ;;  %v4760_v36 = vld [vmem:[%s6461_s3 + $0xc0] sm:$0xff]  }
 0x491   :  { %v5637_v63 = vadd.f32 %v1451_v44, %v5387_v17  ;;  %v1522_v53 = vmax.f32 %v5627_v32, 0.0  ;;  %v4761_v17 = vld [vmem:[%s6461_s3 + $0xc8] sm:$0xff]   ;;  %4455 = vmatprep.subr.bf16.mxu1 %v4760_v36 }
 0x492   :  { %v1525_v55 = vmax.f32 %v5634_v43, 0.0  ;;  %4456 = vmatpush3.bf16.msra.mxu1 %v4760_v36 }
 0x493   :  { %v1523_v34 = vmax.f32 %v5637_v63, 0.0  ;;  %4457 = vmatprep.subr.bf16.mxu1 %v4761_v17 }
 0x494   :  { %v1541_v57 = vpack.c.bf16 %v1525_v55, %v1524_v56 }
 0x495   :  { %v1540_v12 = vpack.c.bf16 %v1523_v34, %v1522_v53 }
 0x496   :  { %4458 = vmatpush3.bf16.msra.mxu1 %v4761_v17 }
 0x497   :  { %4403 = vmatprep.mubr.bf16.mxu1 %v1540_v12  ;;  %4459 = vmatprep.subr.bf16.mxu1 %v4762_v60 }
 0x498   :  { %4404 = vmatmul.mubr.bf16.gmra.mrb[92].mxu1 %v1541_v57 }
 0x49a   :  { %4460 = vmatpush3.bf16.msra.mxu1 %v4762_v60 }
 0x49b   :  { %4461 = vmatprep.subr.bf16.mxu1 %v4763_v6 }
 0x49e   :  { %4462 = vmatpush3.bf16.msra.mxu1 %v4763_v6 }
 0x49f   :  { %4463 = vmatprep.subr.bf16.mxu1 %v4764_v58 }
 0x4a2   :  { %4464 = vmatpush3.bf16.msra.mxu1 %v4764_v58 }
 0x4a3   :  { %4465 = vmatprep.subr.bf16.mxu1 %v4765_v8 }
 0x4a6   :  { %4466 = vmatpush3.bf16.msra.mxu1 %v4765_v8 }
 0x4a7   :  { %4467 = vmatprep.subr.bf16.mxu1 %v4766_v4 }
 0x4aa   :  { %4468 = vmatpush3.bf16.msra.mxu1 %v4766_v4 }
 0x533   :  { %v4377_v10 = vpop.f32.mrb[64].mxu1 }
 0x534   :  { %v1658_v16 = vadd.f32 %v4377_v10, %v5670_v2  ;;  %v1649_v9 = vpop.f32.mrb[65].mxu1 }
 0x535   :  { %v1650_v27 = vadd.f32 %v5670_v2, %v1649_v9  ;;  %v4378_v24 = vpop.f32.mrb[66].mxu1 }
 0x536   :  { %v1661_v20 = vadd.f32 %v4378_v24, %v5670_v2  ;;  %v1652_v39 = vpop.f32.mrb[67].mxu1  ;;  %v1778_v33 = vmax.f32 %v1658_v16, 0.0 }
 0x537   :  { %v1653_v30 = vadd.f32 %v5670_v2, %v1652_v39  ;;  %v1776_v25 = vmax.f32 %v1650_v27, 0.0 }
 0x538   :  { %v1779_v21 = vmax.f32 %v1661_v20, 0.0 }
 0x539   :  { %v1777_v22 = vmax.f32 %v1653_v30, 0.0 }
 0x53a   :  { %v1809_v29 = vpack.c.bf16 %v1779_v21, %v1778_v33 }
 0x53b   :  { %v1808_v28 = vpack.c.bf16 %v1777_v22, %v1776_v25  ;;  %v4381_v46 = vpop.f32.mrb[68].mxu1 }
 0x53c   :  { %v1674_v62 = vadd.f32 %v4381_v46, %v5670_v2  ;;  %v1665_v44 = vpop.f32.mrb[69].mxu1 }
 0x53d   :  { %v1666_v55 = vadd.f32 %v5670_v2, %v1665_v44  ;;  %v4382_v53 = vpop.f32.mrb[70].mxu1  ;;  %4423 = vmatprep.mubr.bf16.mxu0 %v1808_v28 }
 0x53e   :  { %v1677_v34 = vadd.f32 %v4382_v53, %v5670_v2  ;;  %v1668_v56 = vpop.f32.mrb[71].mxu1  ;;  %4424 = vmatmul.mubr.bf16.vlgmr.msra.gmra.mrb[96].mxu0 %v1809_v29  ;;  %v1782_v57 = vmax.f32 %v1674_v62, 0.0 }
 0x53f   :  { %v1669_v12 = vadd.f32 %v5670_v2, %v1668_v56  ;;  %v1780_v36 = vmax.f32 %v1666_v55, 0.0 }
 0x540   :  { %v1783_v5 = vmax.f32 %v1677_v34, 0.0 }
 0x541   :  { %v1781_v17 = vmax.f32 %v1669_v12, 0.0 }
 0x542   :  { %v1811_v60 = vpack.c.bf16 %v1783_v5, %v1782_v57 }
 0x543   :  { %v1810_v6 = vpack.c.bf16 %v1781_v17, %v1780_v36  ;;  %v4385_v58 = vpop.f32.mrb[72].mxu1 }
 0x544   :  { %v1690_v8 = vadd.f32 %v4385_v58, %v5670_v2  ;;  %v1681_v4 = vpop.f32.mrb[73].mxu1 }
 0x545   :  { %v1682_v10 = vadd.f32 %v5670_v2, %v1681_v4  ;;  %v4386_v16 = vpop.f32.mrb[74].mxu1  ;;  %4427 = vmatprep.mubr.bf16.mxu0 %v1810_v6 }
 0x546   :  { %v1693_v9 = vadd.f32 %v4386_v16, %v5670_v2  ;;  %v1684_v27 = vpop.f32.mrb[75].mxu1  ;;  %4428 = vmatmul.mubr.bf16.gmra.mrb[100].mxu0 %v1811_v60  ;;  %v1786_v20 = vmax.f32 %v1690_v8, 0.0 }
 0x547   :  { %v1685_v24 = vadd.f32 %v5670_v2, %v1684_v27  ;;  %v1784_v30 = vmax.f32 %v1682_v10, 0.0 }
 0x548   :  { %v1787_v39 = vmax.f32 %v1693_v9, 0.0 }
 0x549   :  { %v1785_v33 = vmax.f32 %v1685_v24, 0.0 }
 0x54a   :  { %v1813_v21 = vpack.c.bf16 %v1787_v39, %v1786_v20 }
 0x54b   :  { %v1812_v25 = vpack.c.bf16 %v1785_v33, %v1784_v30  ;;  %v4389_v22 = vpop.f32.mrb[76].mxu1 }
 0x54c   :  { %v1706_v29 = vadd.f32 %v4389_v22, %v5670_v2  ;;  %v1697_v28 = vpop.f32.mrb[77].mxu1 }
 0x54d   :  { %v1698_v46 = vadd.f32 %v5670_v2, %v1697_v28  ;;  %v4390_v62 = vpop.f32.mrb[78].mxu1  ;;  %4431 = vmatprep.mubr.bf16.mxu0 %v1812_v25 }
 0x54e   :  { %v1709_v44 = vadd.f32 %v4390_v62, %v5670_v2  ;;  %v1700_v55 = vpop.f32.mrb[79].mxu1  ;;  %4432 = vmatmul.mubr.bf16.gmra.mrb[104].mxu0 %v1813_v21  ;;  %v1790_v34 = vmax.f32 %v1706_v29, 0.0 }
 0x54f   :  { %v1701_v53 = vadd.f32 %v5670_v2, %v1700_v55  ;;  %v1788_v12 = vmax.f32 %v1698_v46, 0.0 }
 0x550   :  { %v1791_v56 = vmax.f32 %v1709_v44, 0.0 }
 0x551   :  { %v1789_v57 = vmax.f32 %v1701_v53, 0.0 }
 0x552   :  { %v1815_v5 = vpack.c.bf16 %v1791_v56, %v1790_v34 }
 0x553   :  { %v1814_v36 = vpack.c.bf16 %v1789_v57, %v1788_v12  ;;  %v4393_v17 = vpop.f32.mrb[80].mxu1 }
 0x554   :  { %v1722_v60 = vadd.f32 %v4393_v17, %v5670_v2  ;;  %v1713_v6 = vpop.f32.mrb[81].mxu1 }
 0x555   :  { %v1714_v58 = vadd.f32 %v5670_v2, %v1713_v6  ;;  %v4394_v8 = vpop.f32.mrb[82].mxu1  ;;  %4435 = vmatprep.mubr.bf16.mxu0 %v1814_v36 }
 0x556   :  { %v1725_v4 = vadd.f32 %v4394_v8, %v5670_v2  ;;  %v1716_v10 = vpop.f32.mrb[83].mxu1  ;;  %4436 = vmatmul.mubr.bf16.gmra.mrb[108].mxu0 %v1815_v5  ;;  %v1794_v9 = vmax.f32 %v1722_v60, 0.0 }
 0x557   :  { %v1717_v16 = vadd.f32 %v5670_v2, %v1716_v10  ;;  %v1792_v24 = vmax.f32 %v1714_v58, 0.0 }
 0x558   :  { %v1795_v27 = vmax.f32 %v1725_v4, 0.0 }
 0x559   :  { %v1793_v20 = vmax.f32 %v1717_v16, 0.0 }
 0x55a   :  { %v1817_v39 = vpack.c.bf16 %v1795_v27, %v1794_v9 }
 0x55b   :  { %v1816_v30 = vpack.c.bf16 %v1793_v20, %v1792_v24  ;;  %v4397_v33 = vpop.f32.mrb[84].mxu1 }
 0x55c   :  { %v1738_v21 = vadd.f32 %v4397_v33, %v5670_v2  ;;  %v1729_v25 = vpop.f32.mrb[85].mxu1 }
 0x55d   :  { %v1730_v22 = vadd.f32 %v5670_v2, %v1729_v25  ;;  %v4398_v29 = vpop.f32.mrb[86].mxu1  ;;  %4439 = vmatprep.mubr.bf16.mxu0 %v1816_v30 }
 0x55e   :  { %v1741_v28 = vadd.f32 %v4398_v29, %v5670_v2  ;;  %v1732_v46 = vpop.f32.mrb[87].mxu1  ;;  %4440 = vmatmul.mubr.bf16.gmra.mrb[112].mxu0 %v1817_v39  ;;  %v1798_v44 = vmax.f32 %v1738_v21, 0.0 }
 0x55f   :  { %v1733_v62 = vadd.f32 %v5670_v2, %v1732_v46  ;;  %v1796_v53 = vmax.f32 %v1730_v22, 0.0 }
 0x560   :  { %v1799_v55 = vmax.f32 %v1741_v28, 0.0 }
 0x561   :  { %v1797_v34 = vmax.f32 %v1733_v62, 0.0 }
 0x562   :  { %v1819_v56 = vpack.c.bf16 %v1799_v55, %v1798_v44 }
 0x563   :  { %v1818_v12 = vpack.c.bf16 %v1797_v34, %v1796_v53  ;;  %v4401_v57 = vpop.f32.mrb[88].mxu1  ;;  %v4767_v34 = vld [vmem:[%s6461_s3 + $0xf8] sm:$0xff]  }
 0x564   :  { %v1754_v5 = vadd.f32 %v4401_v57, %v5670_v2  ;;  %v1745_v36 = vpop.f32.mrb[89].mxu1  ;;  %4469 = vmatprep.subr.bf16.mxu1 %v4767_v34  ;;  %v4771_v57 = vld [vmem:[%s6462_s5 + $0xd8] sm:$0xff]  }
 0x565   :  { %v1746_v17 = vadd.f32 %v5670_v2, %v1745_v36  ;;  %v4402_v60 = vpop.f32.mrb[90].mxu1  ;;  %4443 = vmatprep.mubr.bf16.mxu0 %v1818_v12  ;;  %4470 = vmatpush3.bf16.msra.mxu1 %v4767_v34  ;;  %v4770_v12 = vld [vmem:[%s6462_s5 + $0xd0] sm:$0xff]   ;;  %v4773_v36 = vld [vmem:[%s6462_s5 + $0xe8] sm:$0xff]  }
 0x566   :  { %v1757_v6 = vadd.f32 %v4402_v60, %v5670_v2  ;;  %v1748_v58 = vpop.f32.mrb[91].mxu1  ;;  %4444 = vmatmul.mubr.bf16.gmra.mrb[116].mxu0 %v1819_v56  ;;  %v1802_v4 = vmax.f32 %v1754_v5, 0.0  ;;  %v4768_v56 = vld [vmem:[%s6462_s5 + $0xc0] sm:$0xff]  }
 0x567   :  { %v1749_v8 = vadd.f32 %v5670_v2, %v1748_v58  ;;  %v1800_v16 = vmax.f32 %v1746_v17, 0.0  ;;  %4503 = vmatprep.subr.bf16.mxu0 %v4768_v56  ;;  %v4772_v5 = vld [vmem:[%s6462_s5 + $0xe0] sm:$0xff]   ;;  %v4774_v17 = vld [vmem:[%s6462_s5 + $0xf0] sm:$0xff]  }
 0x568   :  { %v1803_v10 = vmax.f32 %v1757_v6, 0.0  ;;  %4504 = vmatpush3.bf16.msra.mxu0 %v4768_v56  ;;  %v5731_v60 = vld [vmem:[%s6465_s6 + $0x2] ss:$0 sm:$0xff] }
 0x569   :  { %v1801_v9 = vmax.f32 %v1749_v8, 0.0 }
 0x56a   :  { %v1821_v27 = vpack.c.bf16 %v1803_v10, %v1802_v4 }
 0x56b   :  { %v1820_v24 = vpack.c.bf16 %v1801_v9, %v1800_v16  ;;  %v4405_v20 = vpop.f32.mrb[92].mxu1 }
 0x56c   :  { %v1770_v39 = vadd.f32 %v4405_v20, %v5670_v2  ;;  %v1761_v30 = vpop.f32.mrb[93].mxu1 }
 0x56d   :  { %v1762_v33 = vadd.f32 %v5670_v2, %v1761_v30  ;;  %v4406_v21 = vpop.f32.mrb[94].mxu1  ;;  %4447 = vmatprep.mubr.bf16.mxu0 %v1820_v24 }
 0x56e   :  { %v1773_v25 = vadd.f32 %v4406_v21, %v5670_v2  ;;  %v1764_v22 = vpop.f32.mrb[95].mxu1  ;;  %4448 = vmatmul.mubr.bf16.gmra.mrb[120].mxu0 %v1821_v27  ;;  %v1806_v28 = vmax.f32 %v1770_v39, 0.0 }
 0x56f   :  { %v1765_v29 = vadd.f32 %v5670_v2, %v1764_v22  ;;  %v1804_v62 = vmax.f32 %v1762_v33, 0.0  ;;  %v4769_v2 = vld [vmem:[%s6462_s5 + $0xc8] sm:$0xff]  }
 0x570   :  { %v1807_v46 = vmax.f32 %v1773_v25, 0.0  ;;  %4505 = vmatprep.subr.bf16.mxu0 %v4769_v2 }
 0x571   :  { %v1805_v44 = vmax.f32 %v1765_v29, 0.0  ;;  %4506 = vmatpush3.bf16.msra.mxu0 %v4769_v2 }
 0x572   :  { %v1823_v55 = vpack.c.bf16 %v1807_v46, %v1806_v28  ;;  %4507 = vmatprep.subr.bf16.mxu0 %v4770_v12 }
 0x573   :  { %v1822_v53 = vpack.c.bf16 %v1805_v44, %v1804_v62 }
 0x575   :  { %4451 = vmatprep.mubr.bf16.mxu0 %v1822_v53  ;;  %4508 = vmatpush3.bf16.msra.mxu0 %v4770_v12 }
 0x576   :  { %4452 = vmatmul.mubr.bf16.gmra.mrb[124].mxu0 %v1823_v55  ;;  %4509 = vmatprep.subr.bf16.mxu0 %v4771_v57 }
 0x579   :  { %4510 = vmatpush3.bf16.msra.mxu0 %v4771_v57 }
 0x57a   :  { %4511 = vmatprep.subr.bf16.mxu0 %v4772_v5 }
 0x57d   :  { %4512 = vmatpush3.bf16.msra.mxu0 %v4772_v5 }
 0x57e   :  { %4513 = vmatprep.subr.bf16.mxu0 %v4773_v36 }
 0x581   :  { %4514 = vmatpush3.bf16.msra.mxu0 %v4773_v36 }
 0x582   :  { %4515 = vmatprep.subr.bf16.mxu0 %v4774_v17 }
 0x585   :  { %4516 = vmatpush3.bf16.msra.mxu0 %v4774_v17 }
 0x611   :  { %v4425_v6 = vpop.f32.mrb[96].mxu0 }
 0x612   :  { %v1940_v58 = vadd.f32 %v4425_v6, %v5731_v60  ;;  %v1931_v8 = vpop.f32.mrb[97].mxu0 }
 0x613   :  { %v1932_v4 = vadd.f32 %v5731_v60, %v1931_v8  ;;  %v4426_v10 = vpop.f32.mrb[98].mxu0 }
 0x614   :  { %v1943_v16 = vadd.f32 %v4426_v10, %v5731_v60  ;;  %v1934_v9 = vpop.f32.mrb[99].mxu0  ;;  %v5741_v20 = vadd.f32 %v1940_v58, %v5491_v35 }
 0x615   :  { %v5737_v27 = vadd.f32 %v1932_v4, %v5487_v31  ;;  %v1935_v24 = vadd.f32 %v5731_v60, %v1934_v9 }
 0x616   :  { %v5744_v39 = vadd.f32 %v1943_v16, %v5494_v49  ;;  %v2092_v31 = vmax.f32 %v5741_v20, 0.0 }
 0x617   :  { %v5747_v30 = vadd.f32 %v1935_v24, %v5497_v3  ;;  %v2090_v21 = vmax.f32 %v5737_v27, 0.0 }
 0x618   :  { %v2093_v33 = vmax.f32 %v5744_v39, 0.0 }
 0x619   :  { %v2091_v25 = vmax.f32 %v5747_v30, 0.0  ;;  %v4429_v22 = vpop.f32.mrb[100].mxu0 }
 0x61a   :  { %v1956_v29 = vadd.f32 %v4429_v22, %v5731_v60  ;;  %v1947_v28 = vpop.f32.mrb[101].mxu0  ;;  %v2123_v62 = vpack.c.bf16 %v2093_v33, %v2092_v31 }
 0x61b   :  { %v1948_v35 = vadd.f32 %v5731_v60, %v1947_v28  ;;  %v4430_v46 = vpop.f32.mrb[102].mxu0  ;;  %v2122_v49 = vpack.c.bf16 %v2091_v25, %v2090_v21 }
 0x61c   :  { %v1959_v3 = vadd.f32 %v4430_v46, %v5731_v60  ;;  %v1950_v44 = vpop.f32.mrb[103].mxu0  ;;  %v5761_v34 = vadd.f32 %v1956_v29, %v5511_v54 }
 0x61d   :  { %v5757_v55 = vadd.f32 %v1948_v35, %v5507_v45  ;;  %v1951_v53 = vadd.f32 %v5731_v60, %v1950_v44  ;;  %4471 = vmatprep.mubr.bf16.mxu1 %v2122_v49 }
 0x61e   :  { %v5764_v56 = vadd.f32 %v1959_v3, %v5514_v11  ;;  %4472 = vmatmul.mubr.bf16.vlgmr.msra.gmra.mrb[96].mxu1 %v2123_v62  ;;  %v2096_v36 = vmax.f32 %v5761_v34, 0.0 }
 0x61f   :  { %v5767_v2 = vadd.f32 %v1951_v53, %v5517_v48  ;;  %v2094_v57 = vmax.f32 %v5757_v55, 0.0 }
 0x620   :  { %v2097_v12 = vmax.f32 %v5764_v56, 0.0 }
 0x621   :  { %v2095_v45 = vmax.f32 %v5767_v2, 0.0  ;;  %v4433_v5 = vpop.f32.mrb[104].mxu0 }
 0x622   :  { %v1972_v17 = vadd.f32 %v4433_v5, %v5731_v60  ;;  %v1963_v54 = vpop.f32.mrb[105].mxu0  ;;  %v2125_v4 = vpack.c.bf16 %v2097_v12, %v2096_v36 }
 0x623   :  { %v1964_v6 = vadd.f32 %v5731_v60, %v1963_v54  ;;  %v4434_v11 = vpop.f32.mrb[106].mxu0  ;;  %v2124_v58 = vpack.c.bf16 %v2095_v45, %v2094_v57 }
 0x624   :  { %v1975_v8 = vadd.f32 %v4434_v11, %v5731_v60  ;;  %v1966_v48 = vpop.f32.mrb[107].mxu0  ;;  %v5781_v9 = vadd.f32 %v1972_v17, %v5531_v50 }
 0x625   :  { %v5777_v10 = vadd.f32 %v1964_v6, %v5527_v23  ;;  %v1967_v16 = vadd.f32 %v5731_v60, %v1966_v48  ;;  %4475 = vmatprep.mubr.bf16.mxu1 %v2124_v58 }
 0x626   :  { %v5784_v24 = vadd.f32 %v1975_v8, %v5534_v59  ;;  %4476 = vmatmul.mubr.bf16.gmra.mrb[100].mxu1 %v2125_v4  ;;  %v2100_v31 = vmax.f32 %v5781_v9, 0.0 }
 0x627   :  { %v5787_v33 = vadd.f32 %v1967_v16, %v5537_v51  ;;  %v2098_v25 = vmax.f32 %v5777_v10, 0.0 }
 0x628   :  { %v2101_v21 = vmax.f32 %v5784_v24, 0.0 }
 0x629   :  { %v2099_v23 = vmax.f32 %v5787_v33, 0.0  ;;  %v4437_v22 = vpop.f32.mrb[108].mxu0 }
 0x62a   :  { %v1988_v29 = vadd.f32 %v4437_v22, %v5731_v60  ;;  %v1979_v50 = vpop.f32.mrb[109].mxu0  ;;  %v2127_v49 = vpack.c.bf16 %v2101_v21, %v2100_v31 }
 0x62b   :  { %v1980_v28 = vadd.f32 %v5731_v60, %v1979_v50  ;;  %v4438_v59 = vpop.f32.mrb[110].mxu0  ;;  %v2126_v35 = vpack.c.bf16 %v2099_v23, %v2098_v25 }
 0x62c   :  { %v1991_v46 = vadd.f32 %v4438_v59, %v5731_v60  ;;  %v1982_v51 = vpop.f32.mrb[111].mxu0  ;;  %v5801_v44 = vadd.f32 %v1988_v29, %v5551_v1 }
 0x62d   :  { %v5797_v62 = vadd.f32 %v1980_v28, %v5547_v52  ;;  %v1983_v3 = vadd.f32 %v5731_v60, %v1982_v51  ;;  %4479 = vmatprep.mubr.bf16.mxu1 %v2126_v35 }
 0x62e   :  { %v5804_v53 = vadd.f32 %v1991_v46, %v5554_v14  ;;  %4480 = vmatmul.mubr.bf16.gmra.mrb[104].mxu1 %v2127_v49  ;;  %v2104_v36 = vmax.f32 %v5801_v44, 0.0 }
 0x62f   :  { %v5807_v12 = vadd.f32 %v1983_v3, %v5557_v13  ;;  %v2102_v45 = vmax.f32 %v5797_v62, 0.0 }
 0x630   :  { %v2105_v57 = vmax.f32 %v5804_v53, 0.0 }
 0x631   :  { %v2103_v52 = vmax.f32 %v5807_v12, 0.0  ;;  %v4441_v5 = vpop.f32.mrb[112].mxu0 }
 0x632   :  { %v2004_v17 = vadd.f32 %v4441_v5, %v5731_v60  ;;  %v1995_v1 = vpop.f32.mrb[113].mxu0  ;;  %v2129_v58 = vpack.c.bf16 %v2105_v57, %v2104_v36 }
 0x633   :  { %v1996_v54 = vadd.f32 %v5731_v60, %v1995_v1  ;;  %v4442_v14 = vpop.f32.mrb[114].mxu0  ;;  %v2128_v6 = vpack.c.bf16 %v2103_v52, %v2102_v45 }
 0x634   :  { %v2007_v11 = vadd.f32 %v4442_v14, %v5731_v60  ;;  %v1998_v13 = vpop.f32.mrb[115].mxu0  ;;  %v5821_v4 = vadd.f32 %v2004_v17, %v5571_v19 }
 0x635   :  { %v5817_v8 = vadd.f32 %v1996_v54, %v5567_v18  ;;  %v1999_v48 = vadd.f32 %v5731_v60, %v1998_v13  ;;  %4483 = vmatprep.mubr.bf16.mxu1 %v2128_v6 }
 0x636   :  { %v5824_v16 = vadd.f32 %v2007_v11, %v5574_v15  ;;  %4484 = vmatmul.mubr.bf16.gmra.mrb[108].mxu1 %v2129_v58  ;;  %v2108_v31 = vmax.f32 %v5821_v4, 0.0 }
 0x637   :  { %v5827_v21 = vadd.f32 %v1999_v48, %v5577_v38  ;;  %v2106_v23 = vmax.f32 %v5817_v8, 0.0 }
 0x638   :  { %v2109_v25 = vmax.f32 %v5824_v16, 0.0 }
 0x639   :  { %v2107_v18 = vmax.f32 %v5827_v21, 0.0  ;;  %v4445_v22 = vpop.f32.mrb[116].mxu0 }
 0x63a   :  { %v2020_v29 = vadd.f32 %v4445_v22, %v5731_v60  ;;  %v2011_v19 = vpop.f32.mrb[117].mxu0  ;;  %v2131_v35 = vpack.c.bf16 %v2109_v25, %v2108_v31 }
 0x63b   :  { %v2012_v50 = vadd.f32 %v5731_v60, %v2011_v19  ;;  %v4446_v15 = vpop.f32.mrb[118].mxu0  ;;  %v2130_v28 = vpack.c.bf16 %v2107_v18, %v2106_v23 }
 0x63c   :  { %v2023_v59 = vadd.f32 %v4446_v15, %v5731_v60  ;;  %v2014_v38 = vpop.f32.mrb[119].mxu0  ;;  %v5841_v49 = vadd.f32 %v2020_v29, %v5591_v40 }
 0x63d   :  { %v5837_v46 = vadd.f32 %v2012_v50, %v5587_v41  ;;  %v2015_v51 = vadd.f32 %v5731_v60, %v2014_v38  ;;  %4487 = vmatprep.mubr.bf16.mxu1 %v2130_v28 }
 0x63e   :  { %v5844_v3 = vadd.f32 %v2023_v59, %v5594_v42  ;;  %4488 = vmatmul.mubr.bf16.gmra.mrb[112].mxu1 %v2131_v35  ;;  %v2112_v36 = vmax.f32 %v5841_v49, 0.0 }
 0x63f   :  { %v5847_v57 = vadd.f32 %v2015_v51, %v5597_v0  ;;  %v2110_v52 = vmax.f32 %v5837_v46, 0.0 }
 0x640   :  { %v2113_v45 = vmax.f32 %v5844_v3, 0.0 }
 0x641   :  { %v2111_v41 = vmax.f32 %v5847_v57, 0.0  ;;  %v4449_v5 = vpop.f32.mrb[120].mxu0 }
 0x642   :  { %v2036_v17 = vadd.f32 %v4449_v5, %v5731_v60  ;;  %v2027_v40 = vpop.f32.mrb[121].mxu0  ;;  %v2133_v6 = vpack.c.bf16 %v2113_v45, %v2112_v36 }
 0x643   :  { %v2028_v1 = vadd.f32 %v5731_v60, %v2027_v40  ;;  %v4450_v42 = vpop.f32.mrb[122].mxu0  ;;  %v2132_v54 = vpack.c.bf16 %v2111_v41, %v2110_v52  ;;  %v4779_v40 = vld [vmem:[%s6461_s3 + $0x118] sm:$0xff]  }
 0x644   :  { %v2039_v14 = vadd.f32 %v4450_v42, %v5731_v60  ;;  %v2030_v0 = vpop.f32.mrb[123].mxu0  ;;  %v5861_v58 = vadd.f32 %v2036_v17, %v5611_v47  ;;  %v4778_v17 = vld [vmem:[%s6461_s3 + $0x110] sm:$0xff]   ;;  %v4781_v42 = vld [vmem:[%s6461_s3 + $0x128] sm:$0xff]  }
 0x645   :  { %v5857_v11 = vadd.f32 %v2028_v1, %v5607_v7  ;;  %v2031_v13 = vadd.f32 %v5731_v60, %v2030_v0  ;;  %4491 = vmatprep.mubr.bf16.mxu1 %v2132_v54  ;;  %v4780_v1 = vld [vmem:[%s6461_s3 + $0x120] sm:$0xff]   ;;  %v4782_v54 = vld [vmem:[%s6461_s3 + $0x130] sm:$0xff]  }
 0x646   :  { %v5864_v48 = vadd.f32 %v2039_v14, %v5614_v26  ;;  %4492 = vmatmul.mubr.bf16.gmra.mrb[116].mxu1 %v2133_v6  ;;  %v2116_v31 = vmax.f32 %v5861_v58, 0.0  ;;  %v5920_v14 = vld [vmem:[%s6464_s4 + $0x3] ss:$0 sm:$0xff] }
 0x647   :  { %v5867_v25 = vadd.f32 %v2031_v13, %v5617_v61  ;;  %v2114_v18 = vmax.f32 %v5857_v11, 0.0 }
 0x648   :  { %v2117_v23 = vmax.f32 %v5864_v48, 0.0 }
 0x649   :  { %v2115_v7 = vmax.f32 %v5867_v25, 0.0  ;;  %v4453_v22 = vpop.f32.mrb[124].mxu0 }
 0x64a   :  { %v2052_v29 = vadd.f32 %v4453_v22, %v5731_v60  ;;  %v2043_v47 = vpop.f32.mrb[125].mxu0  ;;  %v2135_v28 = vpack.c.bf16 %v2117_v23, %v2116_v31 }
 0x64b   :  { %v2044_v19 = vadd.f32 %v5731_v60, %v2043_v47  ;;  %v4454_v26 = vpop.f32.mrb[126].mxu0  ;;  %v2134_v50 = vpack.c.bf16 %v2115_v7, %v2114_v18 }
 0x64c   :  { %v2055_v15 = vadd.f32 %v4454_v26, %v5731_v60  ;;  %v2046_v61 = vpop.f32.mrb[127].mxu0  ;;  %v5881_v35 = vadd.f32 %v2052_v29, %v5631_v37  ;;  %v4775_v37 = vld [vmem:[%s6462_s5 + $0xf8] sm:$0xff]  }
 0x64d   :  { %v5877_v59 = vadd.f32 %v2044_v19, %v5627_v32  ;;  %v2047_v38 = vadd.f32 %v5731_v60, %v2046_v61  ;;  %4495 = vmatprep.mubr.bf16.mxu1 %v2134_v50  ;;  %4517 = vmatprep.subr.bf16.mxu0 %v4775_v37 }
 0x64e   :  { %v5884_v51 = vadd.f32 %v2055_v15, %v5634_v43  ;;  %4496 = vmatmul.mubr.bf16.gmra.mrb[120].mxu1 %v2135_v28  ;;  %v2120_v5 = vmax.f32 %v5881_v35, 0.0  ;;  %4518 = vmatpush3.bf16.msra.mxu0 %v4775_v37  ;;  %v4776_v43 = vld [vmem:[%s6461_s3 + $0x100] sm:$0xff]  }
 0x64f   :  { %v5887_v45 = vadd.f32 %v2047_v38, %v5637_v63  ;;  %v2118_v41 = vmax.f32 %v5877_v59, 0.0  ;;  %v4777_v63 = vld [vmem:[%s6461_s3 + $0x108] sm:$0xff]   ;;  %4551 = vmatprep.subr.bf16.mxu1 %v4776_v43 }
 0x650   :  { %v2121_v52 = vmax.f32 %v5884_v51, 0.0  ;;  %4552 = vmatpush3.bf16.msra.mxu1 %v4776_v43 }
 0x651   :  { %v2119_v32 = vmax.f32 %v5887_v45, 0.0  ;;  %4553 = vmatprep.subr.bf16.mxu1 %v4777_v63 }
 0x652   :  { %v2137_v36 = vpack.c.bf16 %v2121_v52, %v2120_v5 }
 0x653   :  { %v2136_v60 = vpack.c.bf16 %v2119_v32, %v2118_v41 }
 0x654   :  { %4554 = vmatpush3.bf16.msra.mxu1 %v4777_v63 }
 0x655   :  { %4499 = vmatprep.mubr.bf16.mxu1 %v2136_v60  ;;  %4555 = vmatprep.subr.bf16.mxu1 %v4778_v17 }
 0x656   :  { %4500 = vmatmul.mubr.bf16.gmra.mrb[124].mxu1 %v2137_v36 }
 0x658   :  { %4556 = vmatpush3.bf16.msra.mxu1 %v4778_v17 }
 0x659   :  { %4557 = vmatprep.subr.bf16.mxu1 %v4779_v40 }
 0x65c   :  { %4558 = vmatpush3.bf16.msra.mxu1 %v4779_v40 }
 0x65d   :  { %4559 = vmatprep.subr.bf16.mxu1 %v4780_v1 }
 0x660   :  { %4560 = vmatpush3.bf16.msra.mxu1 %v4780_v1 }
 0x661   :  { %4561 = vmatprep.subr.bf16.mxu1 %v4781_v42 }
 0x664   :  { %4562 = vmatpush3.bf16.msra.mxu1 %v4781_v42 }
 0x665   :  { %4563 = vmatprep.subr.bf16.mxu1 %v4782_v54 }
 0x668   :  { %4564 = vmatpush3.bf16.msra.mxu1 %v4782_v54 }
 0x6f1   :  { %v4473_v0 = vpop.f32.mrb[96].mxu1 }
 0x6f2   :  { %v2254_v6 = vadd.f32 %v4473_v0, %v5920_v14  ;;  %v2245_v13 = vpop.f32.mrb[97].mxu1 }
 0x6f3   :  { %v2246_v23 = vadd.f32 %v5920_v14, %v2245_v13  ;;  %v4474_v18 = vpop.f32.mrb[98].mxu1 }
 0x6f4   :  { %v2257_v7 = vadd.f32 %v4474_v18, %v5920_v14  ;;  %v2248_v22 = vpop.f32.mrb[99].mxu1  ;;  %v2374_v29 = vmax.f32 %v2254_v6, 0.0 }
 0x6f5   :  { %v2249_v31 = vadd.f32 %v5920_v14, %v2248_v22  ;;  %v2372_v19 = vmax.f32 %v2246_v23, 0.0 }
 0x6f6   :  { %v2375_v47 = vmax.f32 %v2257_v7, 0.0 }
 0x6f7   :  { %v2373_v26 = vmax.f32 %v2249_v31, 0.0 }
 0x6f8   :  { %v2405_v50 = vpack.c.bf16 %v2375_v47, %v2374_v29 }
 0x6f9   :  { %v2404_v15 = vpack.c.bf16 %v2373_v26, %v2372_v19  ;;  %v4477_v61 = vpop.f32.mrb[100].mxu1 }
 0x6fa   :  { %v2270_v28 = vadd.f32 %v4477_v61, %v5920_v14  ;;  %v2261_v38 = vpop.f32.mrb[101].mxu1 }
 0x6fb   :  { %v2262_v52 = vadd.f32 %v5920_v14, %v2261_v38  ;;  %v4478_v41 = vpop.f32.mrb[102].mxu1  ;;  %4519 = vmatprep.mubr.bf16.mxu0 %v2404_v15 }
 0x6fc   :  { %v2273_v32 = vadd.f32 %v4478_v41, %v5920_v14  ;;  %v2264_v5 = vpop.f32.mrb[103].mxu1  ;;  %4520 = vmatmul.mubr.bf16.vlgmr.msra.gmra.mrb[128].mxu0 %v2405_v50  ;;  %v2378_v36 = vmax.f32 %v2270_v28, 0.0 }
 0x6fd   :  { %v2265_v60 = vadd.f32 %v5920_v14, %v2264_v5  ;;  %v2376_v43 = vmax.f32 %v2262_v52, 0.0 }
 0x6fe   :  { %v2379_v37 = vmax.f32 %v2273_v32, 0.0 }
 0x6ff   :  { %v2377_v63 = vmax.f32 %v2265_v60, 0.0 }
 0x700   :  { %v2407_v17 = vpack.c.bf16 %v2379_v37, %v2378_v36 }
 0x701   :  { %v2406_v40 = vpack.c.bf16 %v2377_v63, %v2376_v43  ;;  %v4481_v1 = vpop.f32.mrb[104].mxu1 }
 0x702   :  { %v2286_v42 = vadd.f32 %v4481_v1, %v5920_v14  ;;  %v2277_v54 = vpop.f32.mrb[105].mxu1 }
 0x703   :  { %v2278_v0 = vadd.f32 %v5920_v14, %v2277_v54  ;;  %v4482_v6 = vpop.f32.mrb[106].mxu1  ;;  %4523 = vmatprep.mubr.bf16.mxu0 %v2406_v40 }
 0x704   :  { %v2289_v13 = vadd.f32 %v4482_v6, %v5920_v14  ;;  %v2280_v23 = vpop.f32.mrb[107].mxu1  ;;  %4524 = vmatmul.mubr.bf16.gmra.mrb[132].mxu0 %v2407_v17  ;;  %v2382_v7 = vmax.f32 %v2286_v42, 0.0 }
 0x705   :  { %v2281_v18 = vadd.f32 %v5920_v14, %v2280_v23  ;;  %v2380_v31 = vmax.f32 %v2278_v0, 0.0 }
 0x706   :  { %v2383_v22 = vmax.f32 %v2289_v13, 0.0 }
 0x707   :  { %v2381_v29 = vmax.f32 %v2281_v18, 0.0 }
 0x708   :  { %v2409_v47 = vpack.c.bf16 %v2383_v22, %v2382_v7 }
 0x709   :  { %v2408_v19 = vpack.c.bf16 %v2381_v29, %v2380_v31  ;;  %v4485_v26 = vpop.f32.mrb[108].mxu1 }
 0x70a   :  { %v2302_v50 = vadd.f32 %v4485_v26, %v5920_v14  ;;  %v2293_v15 = vpop.f32.mrb[109].mxu1 }
 0x70b   :  { %v2294_v61 = vadd.f32 %v5920_v14, %v2293_v15  ;;  %v4486_v28 = vpop.f32.mrb[110].mxu1  ;;  %4527 = vmatprep.mubr.bf16.mxu0 %v2408_v19 }
 0x70c   :  { %v2305_v38 = vadd.f32 %v4486_v28, %v5920_v14  ;;  %v2296_v52 = vpop.f32.mrb[111].mxu1  ;;  %4528 = vmatmul.mubr.bf16.gmra.mrb[136].mxu0 %v2409_v47  ;;  %v2386_v32 = vmax.f32 %v2302_v50, 0.0 }
 0x70d   :  { %v2297_v41 = vadd.f32 %v5920_v14, %v2296_v52  ;;  %v2384_v60 = vmax.f32 %v2294_v61, 0.0 }
 0x70e   :  { %v2387_v5 = vmax.f32 %v2305_v38, 0.0 }
 0x70f   :  { %v2385_v36 = vmax.f32 %v2297_v41, 0.0 }
 0x710   :  { %v2411_v37 = vpack.c.bf16 %v2387_v5, %v2386_v32 }
 0x711   :  { %v2410_v43 = vpack.c.bf16 %v2385_v36, %v2384_v60  ;;  %v4489_v63 = vpop.f32.mrb[112].mxu1 }
 0x712   :  { %v2318_v17 = vadd.f32 %v4489_v63, %v5920_v14  ;;  %v2309_v40 = vpop.f32.mrb[113].mxu1 }
 0x713   :  { %v2310_v1 = vadd.f32 %v5920_v14, %v2309_v40  ;;  %v4490_v42 = vpop.f32.mrb[114].mxu1  ;;  %4531 = vmatprep.mubr.bf16.mxu0 %v2410_v43 }
 0x714   :  { %v2321_v54 = vadd.f32 %v4490_v42, %v5920_v14  ;;  %v2312_v0 = vpop.f32.mrb[115].mxu1  ;;  %4532 = vmatmul.mubr.bf16.gmra.mrb[140].mxu0 %v2411_v37  ;;  %v2390_v13 = vmax.f32 %v2318_v17, 0.0 }
 0x715   :  { %v2313_v6 = vadd.f32 %v5920_v14, %v2312_v0  ;;  %v2388_v18 = vmax.f32 %v2310_v1, 0.0 }
 0x716   :  { %v2391_v23 = vmax.f32 %v2321_v54, 0.0 }
 0x717   :  { %v2389_v7 = vmax.f32 %v2313_v6, 0.0 }
 0x718   :  { %v2413_v22 = vpack.c.bf16 %v2391_v23, %v2390_v13 }
 0x719   :  { %v2412_v31 = vpack.c.bf16 %v2389_v7, %v2388_v18  ;;  %v4493_v29 = vpop.f32.mrb[116].mxu1 }
 0x71a   :  { %v2334_v47 = vadd.f32 %v4493_v29, %v5920_v14  ;;  %v2325_v19 = vpop.f32.mrb[117].mxu1 }
 0x71b   :  { %v2326_v26 = vadd.f32 %v5920_v14, %v2325_v19  ;;  %v4494_v50 = vpop.f32.mrb[118].mxu1  ;;  %4535 = vmatprep.mubr.bf16.mxu0 %v2412_v31 }
 0x71c   :  { %v2337_v15 = vadd.f32 %v4494_v50, %v5920_v14  ;;  %v2328_v61 = vpop.f32.mrb[119].mxu1  ;;  %4536 = vmatmul.mubr.bf16.gmra.mrb[144].mxu0 %v2413_v22  ;;  %v2394_v38 = vmax.f32 %v2334_v47, 0.0 }
 0x71d   :  { %v2329_v28 = vadd.f32 %v5920_v14, %v2328_v61  ;;  %v2392_v41 = vmax.f32 %v2326_v26, 0.0 }
 0x71e   :  { %v2395_v52 = vmax.f32 %v2337_v15, 0.0 }
 0x71f   :  { %v2393_v32 = vmax.f32 %v2329_v28, 0.0 }
 0x720   :  { %v2415_v5 = vpack.c.bf16 %v2395_v52, %v2394_v38 }
 0x721   :  { %v2414_v60 = vpack.c.bf16 %v2393_v32, %v2392_v41  ;;  %v4497_v36 = vpop.f32.mrb[120].mxu1  ;;  %v4783_v32 = vld [vmem:[%s6461_s3 + $0x138] sm:$0xff]  }
 0x722   :  { %v2350_v37 = vadd.f32 %v4497_v36, %v5920_v14  ;;  %v2341_v43 = vpop.f32.mrb[121].mxu1  ;;  %4565 = vmatprep.subr.bf16.mxu1 %v4783_v32  ;;  %v4787_v36 = vld [vmem:[%s6462_s5 + $0x118] sm:$0xff]  }
 0x723   :  { %v2342_v63 = vadd.f32 %v5920_v14, %v2341_v43  ;;  %v4498_v17 = vpop.f32.mrb[122].mxu1  ;;  %4539 = vmatprep.mubr.bf16.mxu0 %v2414_v60  ;;  %4566 = vmatpush3.bf16.msra.mxu1 %v4783_v32  ;;  %v4786_v60 = vld [vmem:[%s6462_s5 + $0x110] sm:$0xff]   ;;  %v4789_v43 = vld [vmem:[%s6462_s5 + $0x128] sm:$0xff]  }
 0x724   :  { %v2353_v40 = vadd.f32 %v4498_v17, %v5920_v14  ;;  %v2344_v1 = vpop.f32.mrb[123].mxu1  ;;  %4540 = vmatmul.mubr.bf16.gmra.mrb[148].mxu0 %v2415_v5  ;;  %v2398_v54 = vmax.f32 %v2350_v37, 0.0  ;;  %v4784_v5 = vld [vmem:[%s6462_s5 + $0x100] sm:$0xff]  }
 0x725   :  { %v2345_v42 = vadd.f32 %v5920_v14, %v2344_v1  ;;  %v2396_v6 = vmax.f32 %v2342_v63, 0.0  ;;  %4599 = vmatprep.subr.bf16.mxu0 %v4784_v5  ;;  %v4788_v37 = vld [vmem:[%s6462_s5 + $0x120] sm:$0xff]   ;;  %v4790_v63 = vld [vmem:[%s6462_s5 + $0x130] sm:$0xff]  }
 0x726   :  { %v2399_v0 = vmax.f32 %v2353_v40, 0.0  ;;  %4600 = vmatpush3.bf16.msra.mxu0 %v4784_v5  ;;  %v5981_v17 = vld [vmem:[%s6465_s6 + $0x3] ss:$0 sm:$0xff] }
 0x727   :  { %v2397_v13 = vmax.f32 %v2345_v42, 0.0 }
 0x728   :  { %v2417_v23 = vpack.c.bf16 %v2399_v0, %v2398_v54 }
 0x729   :  { %v2416_v18 = vpack.c.bf16 %v2397_v13, %v2396_v6  ;;  %v4501_v7 = vpop.f32.mrb[124].mxu1 }
 0x72a   :  { %v2366_v22 = vadd.f32 %v4501_v7, %v5920_v14  ;;  %v2357_v31 = vpop.f32.mrb[125].mxu1 }
 0x72b   :  { %v2358_v29 = vadd.f32 %v5920_v14, %v2357_v31  ;;  %v4502_v47 = vpop.f32.mrb[126].mxu1  ;;  %4543 = vmatprep.mubr.bf16.mxu0 %v2416_v18 }
 0x72c   :  { %v2369_v19 = vadd.f32 %v4502_v47, %v5920_v14  ;;  %v2360_v26 = vpop.f32.mrb[127].mxu1  ;;  %4544 = vmatmul.mubr.bf16.gmra.mrb[152].mxu0 %v2417_v23  ;;  %v2402_v15 = vmax.f32 %v2366_v22, 0.0 }
 0x72d   :  { %v2361_v50 = vadd.f32 %v5920_v14, %v2360_v26  ;;  %v2400_v28 = vmax.f32 %v2358_v29, 0.0  ;;  %v4785_v14 = vld [vmem:[%s6462_s5 + $0x108] sm:$0xff]  }
 0x72e   :  { %v2403_v61 = vmax.f32 %v2369_v19, 0.0  ;;  %4601 = vmatprep.subr.bf16.mxu0 %v4785_v14 }
 0x72f   :  { %v2401_v38 = vmax.f32 %v2361_v50, 0.0  ;;  %4602 = vmatpush3.bf16.msra.mxu0 %v4785_v14 }
 0x730   :  { %v2419_v52 = vpack.c.bf16 %v2403_v61, %v2402_v15  ;;  %4603 = vmatprep.subr.bf16.mxu0 %v4786_v60 }
 0x731   :  { %v2418_v41 = vpack.c.bf16 %v2401_v38, %v2400_v28 }
 0x733   :  { %4547 = vmatprep.mubr.bf16.mxu0 %v2418_v41  ;;  %4604 = vmatpush3.bf16.msra.mxu0 %v4786_v60 }
 0x734   :  { %4548 = vmatmul.mubr.bf16.gmra.mrb[156].mxu0 %v2419_v52  ;;  %4605 = vmatprep.subr.bf16.mxu0 %v4787_v36 }
 0x737   :  { %4606 = vmatpush3.bf16.msra.mxu0 %v4787_v36 }
 0x738   :  { %4607 = vmatprep.subr.bf16.mxu0 %v4788_v37 }
 0x73b   :  { %4608 = vmatpush3.bf16.msra.mxu0 %v4788_v37 }
 0x73c   :  { %4609 = vmatprep.subr.bf16.mxu0 %v4789_v43 }
 0x73f   :  { %4610 = vmatpush3.bf16.msra.mxu0 %v4789_v43 }
 0x740   :  { %4611 = vmatprep.subr.bf16.mxu0 %v4790_v63 }
 0x743   :  { %4612 = vmatpush3.bf16.msra.mxu0 %v4790_v63 }
 0x7cf   :  { %v4521_v40 = vpop.f32.mrb[128].mxu0 }
 0x7d0   :  { %v2536_v1 = vadd.f32 %v4521_v40, %v5981_v17  ;;  %v2527_v42 = vpop.f32.mrb[129].mxu0 }
 0x7d1   :  { %v2528_v54 = vadd.f32 %v5981_v17, %v2527_v42  ;;  %v4522_v0 = vpop.f32.mrb[130].mxu0 }
 0x7d2   :  { %v2539_v6 = vadd.f32 %v4522_v0, %v5981_v17  ;;  %v2530_v13 = vpop.f32.mrb[131].mxu0  ;;  %v5991_v7 = vadd.f32 %v2536_v1, %v5741_v20 }
 0x7d3   :  { %v5987_v23 = vadd.f32 %v2528_v54, %v5737_v27  ;;  %v2531_v18 = vadd.f32 %v5981_v17, %v2530_v13 }
 0x7d4   :  { %v5994_v22 = vadd.f32 %v2539_v6, %v5744_v39  ;;  %v2688_v27 = vmax.f32 %v5991_v7, 0.0 }
 0x7d5   :  { %v5997_v31 = vadd.f32 %v2531_v18, %v5747_v30  ;;  %v2686_v47 = vmax.f32 %v5987_v23, 0.0 }
 0x7d6   :  { %v2689_v29 = vmax.f32 %v5994_v22, 0.0 }
 0x7d7   :  { %v2687_v19 = vmax.f32 %v5997_v31, 0.0  ;;  %v4525_v26 = vpop.f32.mrb[132].mxu0 }
 0x7d8   :  { %v2552_v50 = vadd.f32 %v4525_v26, %v5981_v17  ;;  %v2543_v15 = vpop.f32.mrb[133].mxu0  ;;  %v2719_v28 = vpack.c.bf16 %v2689_v29, %v2688_v27 }
 0x7d9   :  { %v2544_v20 = vadd.f32 %v5981_v17, %v2543_v15  ;;  %v4526_v61 = vpop.f32.mrb[134].mxu0  ;;  %v2718_v39 = vpack.c.bf16 %v2687_v19, %v2686_v47 }
 0x7da   :  { %v2555_v30 = vadd.f32 %v4526_v61, %v5981_v17  ;;  %v2546_v38 = vpop.f32.mrb[135].mxu0  ;;  %v6011_v32 = vadd.f32 %v2552_v50, %v5761_v34 }
 0x7db   :  { %v6007_v52 = vadd.f32 %v2544_v20, %v5757_v55  ;;  %v2547_v41 = vadd.f32 %v5981_v17, %v2546_v38  ;;  %4567 = vmatprep.mubr.bf16.mxu1 %v2718_v39 }
 0x7dc   :  { %v6014_v5 = vadd.f32 %v2555_v30, %v5764_v56  ;;  %4568 = vmatmul.mubr.bf16.vlgmr.msra.gmra.mrb[128].mxu1 %v2719_v28  ;;  %v2692_v43 = vmax.f32 %v6011_v32, 0.0 }
 0x7dd   :  { %v6017_v14 = vadd.f32 %v2547_v41, %v5767_v2  ;;  %v2690_v36 = vmax.f32 %v6007_v52, 0.0 }
 0x7de   :  { %v2693_v60 = vmax.f32 %v6014_v5, 0.0 }
 0x7df   :  { %v2691_v55 = vmax.f32 %v6017_v14, 0.0  ;;  %v4529_v37 = vpop.f32.mrb[136].mxu0 }
 0x7e0   :  { %v2568_v63 = vadd.f32 %v4529_v37, %v5981_v17  ;;  %v2559_v34 = vpop.f32.mrb[137].mxu0  ;;  %v2721_v54 = vpack.c.bf16 %v2693_v60, %v2692_v43 }
 0x7e1   :  { %v2560_v40 = vadd.f32 %v5981_v17, %v2559_v34  ;;  %v4530_v56 = vpop.f32.mrb[138].mxu0  ;;  %v2720_v1 = vpack.c.bf16 %v2691_v55, %v2690_v36 }
 0x7e2   :  { %v2571_v42 = vadd.f32 %v4530_v56, %v5981_v17  ;;  %v2562_v2 = vpop.f32.mrb[139].mxu0  ;;  %v6031_v13 = vadd.f32 %v2568_v63, %v5781_v9 }
 0x7e3   :  { %v6027_v0 = vadd.f32 %v2560_v40, %v5777_v10  ;;  %v2563_v6 = vadd.f32 %v5981_v17, %v2562_v2  ;;  %4571 = vmatprep.mubr.bf16.mxu1 %v2720_v1 }
 0x7e4   :  { %v6034_v18 = vadd.f32 %v2571_v42, %v5784_v24  ;;  %4572 = vmatmul.mubr.bf16.gmra.mrb[132].mxu1 %v2721_v54  ;;  %v2696_v27 = vmax.f32 %v6031_v13, 0.0 }
 0x7e5   :  { %v6037_v29 = vadd.f32 %v2563_v6, %v5787_v33  ;;  %v2694_v19 = vmax.f32 %v6027_v0, 0.0 }
 0x7e6   :  { %v2697_v47 = vmax.f32 %v6034_v18, 0.0 }
 0x7e7   :  { %v2695_v10 = vmax.f32 %v6037_v29, 0.0  ;;  %v4533_v26 = vpop.f32.mrb[140].mxu0 }
 0x7e8   :  { %v2584_v50 = vadd.f32 %v4533_v26, %v5981_v17  ;;  %v2575_v9 = vpop.f32.mrb[141].mxu0  ;;  %v2723_v39 = vpack.c.bf16 %v2697_v47, %v2696_v27 }
 0x7e9   :  { %v2576_v15 = vadd.f32 %v5981_v17, %v2575_v9  ;;  %v4534_v24 = vpop.f32.mrb[142].mxu0  ;;  %v2722_v20 = vpack.c.bf16 %v2695_v10, %v2694_v19 }
 0x7ea   :  { %v2587_v61 = vadd.f32 %v4534_v24, %v5981_v17  ;;  %v2578_v33 = vpop.f32.mrb[143].mxu0  ;;  %v6051_v38 = vadd.f32 %v2584_v50, %v5801_v44 }
 0x7eb   :  { %v6047_v28 = vadd.f32 %v2576_v15, %v5797_v62  ;;  %v2579_v30 = vadd.f32 %v5981_v17, %v2578_v33  ;;  %4575 = vmatprep.mubr.bf16.mxu1 %v2722_v20 }
 0x7ec   :  { %v6054_v41 = vadd.f32 %v2587_v61, %v5804_v53  ;;  %4576 = vmatmul.mubr.bf16.gmra.mrb[136].mxu1 %v2723_v39  ;;  %v2700_v43 = vmax.f32 %v6051_v38, 0.0 }
 0x7ed   :  { %v6057_v60 = vadd.f32 %v2579_v30, %v5807_v12  ;;  %v2698_v55 = vmax.f32 %v6047_v28, 0.0 }
 0x7ee   :  { %v2701_v36 = vmax.f32 %v6054_v41, 0.0 }
 0x7ef   :  { %v2699_v62 = vmax.f32 %v6057_v60, 0.0  ;;  %v4537_v37 = vpop.f32.mrb[144].mxu0 }
 0x7f0   :  { %v2600_v63 = vadd.f32 %v4537_v37, %v5981_v17  ;;  %v2591_v44 = vpop.f32.mrb[145].mxu0  ;;  %v2725_v1 = vpack.c.bf16 %v2701_v36, %v2700_v43 }
 0x7f1   :  { %v2592_v34 = vadd.f32 %v5981_v17, %v2591_v44  ;;  %v4538_v53 = vpop.f32.mrb[146].mxu0  ;;  %v2724_v40 = vpack.c.bf16 %v2699_v62, %v2698_v55 }
 0x7f2   :  { %v2603_v56 = vadd.f32 %v4538_v53, %v5981_v17  ;;  %v2594_v12 = vpop.f32.mrb[147].mxu0  ;;  %v6071_v54 = vadd.f32 %v2600_v63, %v5821_v4 }
 0x7f3   :  { %v6067_v42 = vadd.f32 %v2592_v34, %v5817_v8  ;;  %v2595_v2 = vadd.f32 %v5981_v17, %v2594_v12  ;;  %4579 = vmatprep.mubr.bf16.mxu1 %v2724_v40 }
 0x7f4   :  { %v6074_v6 = vadd.f32 %v2603_v56, %v5824_v16  ;;  %4580 = vmatmul.mubr.bf16.gmra.mrb[140].mxu1 %v2725_v1  ;;  %v2704_v27 = vmax.f32 %v6071_v54, 0.0 }
 0x7f5   :  { %v6077_v47 = vadd.f32 %v2595_v2, %v5827_v21  ;;  %v2702_v10 = vmax.f32 %v6067_v42, 0.0 }
 0x7f6   :  { %v2705_v19 = vmax.f32 %v6074_v6, 0.0 }
 0x7f7   :  { %v2703_v8 = vmax.f32 %v6077_v47, 0.0  ;;  %v4541_v26 = vpop.f32.mrb[148].mxu0 }
 0x7f8   :  { %v2616_v50 = vadd.f32 %v4541_v26, %v5981_v17  ;;  %v2607_v4 = vpop.f32.mrb[149].mxu0  ;;  %v2727_v20 = vpack.c.bf16 %v2705_v19, %v2704_v27 }
 0x7f9   :  { %v2608_v9 = vadd.f32 %v5981_v17, %v2607_v4  ;;  %v4542_v16 = vpop.f32.mrb[150].mxu0  ;;  %v2726_v15 = vpack.c.bf16 %v2703_v8, %v2702_v10 }
 0x7fa   :  { %v2619_v24 = vadd.f32 %v4542_v16, %v5981_v17  ;;  %v2610_v21 = vpop.f32.mrb[151].mxu0  ;;  %v6091_v39 = vadd.f32 %v2616_v50, %v5841_v49 }
 0x7fb   :  { %v6087_v61 = vadd.f32 %v2608_v9, %v5837_v46  ;;  %v2611_v33 = vadd.f32 %v5981_v17, %v2610_v21  ;;  %4583 = vmatprep.mubr.bf16.mxu1 %v2726_v15 }
 0x7fc   :  { %v6094_v30 = vadd.f32 %v2619_v24, %v5844_v3  ;;  %4584 = vmatmul.mubr.bf16.gmra.mrb[144].mxu1 %v2727_v20  ;;  %v2708_v43 = vmax.f32 %v6091_v39, 0.0 }
 0x7fd   :  { %v6097_v36 = vadd.f32 %v2611_v33, %v5847_v57  ;;  %v2706_v62 = vmax.f32 %v6087_v61, 0.0 }
 0x7fe   :  { %v2709_v55 = vmax.f32 %v6094_v30, 0.0 }
 0x7ff   :  { %v2707_v46 = vmax.f32 %v6097_v36, 0.0  ;;  %v4545_v37 = vpop.f32.mrb[152].mxu0 }
 0x800   :  { %v2632_v63 = vadd.f32 %v4545_v37, %v5981_v17  ;;  %v2623_v49 = vpop.f32.mrb[153].mxu0  ;;  %v2729_v40 = vpack.c.bf16 %v2709_v55, %v2708_v43 }
 0x801   :  { %v2624_v44 = vadd.f32 %v5981_v17, %v2623_v49  ;;  %v4546_v3 = vpop.f32.mrb[154].mxu0  ;;  %v2728_v34 = vpack.c.bf16 %v2707_v46, %v2706_v62  ;;  %v6158_v49 = vld [vmem:[%s6466_s7 + $0x18] sm:$0xff]  }
 0x802   :  { %v2635_v53 = vadd.f32 %v4546_v3, %v5981_v17  ;;  %v2626_v57 = vpop.f32.mrb[155].mxu0  ;;  %v6111_v1 = vadd.f32 %v2632_v63, %v5861_v58  ;;  %v4794_v63 = vld [vmem:[%s6466_s7 + $0x10] sm:$0xff]   ;;  %v6171_v3 = vld [vmem:[%s6466_s7 + $0x28] sm:$0xff]  }
 0x803   :  { %v6107_v56 = vadd.f32 %v2624_v44, %v5857_v11  ;;  %v2627_v12 = vadd.f32 %v5981_v17, %v2626_v57  ;;  %4587 = vmatprep.mubr.bf16.mxu1 %v2728_v34  ;;  %v6164_v44 = vld [vmem:[%s6466_s7 + $0x20] sm:$0xff]  }
 0x804   :  { %v6114_v2 = vadd.f32 %v2635_v53, %v5864_v48  ;;  %4588 = vmatmul.mubr.bf16.gmra.mrb[148].mxu1 %v2729_v40  ;;  %v2712_v27 = vmax.f32 %v6111_v1, 0.0  ;;  %v6179_v34 = vld [vmem:[%s6464_s4 + $0x4] ss:$0 sm:$0xff] }
 0x805   :  { %v6117_v19 = vadd.f32 %v2627_v12, %v5867_v25  ;;  %v2710_v8 = vmax.f32 %v6107_v56, 0.0 }
 0x806   :  { %v2713_v10 = vmax.f32 %v6114_v2, 0.0 }
 0x807   :  { %v2711_v11 = vmax.f32 %v6117_v19, 0.0  ;;  %v4549_v26 = vpop.f32.mrb[156].mxu0 }
 0x808   :  { %v2648_v50 = vadd.f32 %v4549_v26, %v5981_v17  ;;  %v2639_v58 = vpop.f32.mrb[157].mxu0  ;;  %v2731_v15 = vpack.c.bf16 %v2713_v10, %v2712_v27 }
 0x809   :  { %v2640_v4 = vadd.f32 %v5981_v17, %v2639_v58  ;;  %v4550_v48 = vpop.f32.mrb[158].mxu0  ;;  %v2730_v9 = vpack.c.bf16 %v2711_v11, %v2710_v8 }
 0x80a   :  { %v2651_v16 = vadd.f32 %v4550_v48, %v5981_v17  ;;  %v2642_v25 = vpop.f32.mrb[159].mxu0  ;;  %v6131_v20 = vadd.f32 %v2648_v50, %v5881_v35  ;;  %v4791_v35 = vld [vmem:[%s6462_s5 + $0x138] sm:$0xff]  }
 0x80b   :  { %v6127_v24 = vadd.f32 %v2640_v4, %v5877_v59  ;;  %v2643_v21 = vadd.f32 %v5981_v17, %v2642_v25  ;;  %4591 = vmatprep.mubr.bf16.mxu1 %v2730_v9  ;;  %4613 = vmatprep.subr.bf16.mxu0 %v4791_v35 }
 0x80c   :  { %v6134_v33 = vadd.f32 %v2651_v16, %v5884_v51  ;;  %4592 = vmatmul.mubr.bf16.gmra.mrb[152].mxu1 %v2731_v15  ;;  %v2716_v37 = vmax.f32 %v6131_v20, 0.0  ;;  %4614 = vmatpush3.bf16.msra.mxu0 %v4791_v35  ;;  %v4792_v51 = vld [vmem:[%s6466_s7] sm:$0xff]  }
 0x80d   :  { %v6137_v55 = vadd.f32 %v2643_v21, %v5887_v45  ;;  %v2714_v46 = vmax.f32 %v6127_v24, 0.0  ;;  %4695 = vmatprep.subr.bf16.mxu1 %v4792_v51  ;;  %v4793_v45 = vld [vmem:[%s6466_s7 + $0x8] sm:$0xff]   ;;  %4647 = vmatprep.subr.bf16.mxu0 %v4792_v51 }
 0x80e   :  { %v2717_v62 = vmax.f32 %v6134_v33, 0.0  ;;  %4703 = vmatpush3.bf16.msra.mxu1 %v4792_v51 }
 0x80f   :  { %v2715_v59 = vmax.f32 %v6137_v55, 0.0  ;;  %4696 = vmatprep.subr.bf16.mxu1 %v4793_v45 }
 0x810   :  { %v2733_v43 = vpack.c.bf16 %v2717_v62, %v2716_v37 }
 0x811   :  { %v2732_v17 = vpack.c.bf16 %v2715_v59, %v2714_v46 }
 0x812   :  { %4704 = vmatpush3.bf16.msra.mxu1 %v4793_v45 }
 0x813   :  { %4595 = vmatprep.mubr.bf16.mxu1 %v2732_v17  ;;  %4697 = vmatprep.subr.bf16.mxu1 %v4794_v63 }
 0x814   :  { %4596 = vmatmul.mubr.bf16.gmra.mrb[156].mxu1 %v2733_v43 }
 0x816   :  { %4705 = vmatpush3.bf16.msra.mxu1 %v4794_v63 }
 0x817   :  { %4698 = vmatprep.subr.bf16.mxu1 %v6158_v49 }
 0x81a   :  { %4706 = vmatpush3.bf16.msra.mxu1 %v6158_v49 }
 0x81b   :  { %4699 = vmatprep.subr.bf16.mxu1 %v6164_v44 }
 0x81e   :  { %4707 = vmatpush3.bf16.msra.mxu1 %v6164_v44 }
 0x81f   :  { %4700 = vmatprep.subr.bf16.mxu1 %v6171_v3 }
 0x822   :  { %4708 = vmatpush3.bf16.msra.mxu1 %v6171_v3 }
 0x8af   :  { %v4569_v53 = vpop.f32.mrb[128].mxu1 }
 0x8b0   :  { %v2850_v57 = vadd.f32 %v4569_v53, %v6179_v34  ;;  %v2841_v40 = vpop.f32.mrb[129].mxu1 }
 0x8b1   :  { %v2842_v12 = vadd.f32 %v6179_v34, %v2841_v40  ;;  %v4570_v10 = vpop.f32.mrb[130].mxu1 }
 0x8b2   :  { %v2853_v8 = vadd.f32 %v4570_v10, %v6179_v34  ;;  %v2844_v11 = vpop.f32.mrb[131].mxu1  ;;  %v2970_v27 = vmax.f32 %v2850_v57, 0.0 }
 0x8b3   :  { %v2845_v26 = vadd.f32 %v6179_v34, %v2844_v11  ;;  %v2968_v58 = vmax.f32 %v2842_v12, 0.0 }
 0x8b4   :  { %v2971_v50 = vmax.f32 %v2853_v8, 0.0 }
 0x8b5   :  { %v2969_v4 = vmax.f32 %v2845_v26, 0.0 }
 0x8b6   :  { %v3001_v48 = vpack.c.bf16 %v2971_v50, %v2970_v27 }
 0x8b7   :  { %v3000_v9 = vpack.c.bf16 %v2969_v4, %v2968_v58  ;;  %v4573_v16 = vpop.f32.mrb[132].mxu1 }
 0x8b8   :  { %v2866_v25 = vadd.f32 %v4573_v16, %v6179_v34  ;;  %v2857_v15 = vpop.f32.mrb[133].mxu1 }
 0x8b9   :  { %v2858_v21 = vadd.f32 %v6179_v34, %v2857_v15  ;;  %v4574_v62 = vpop.f32.mrb[134].mxu1  ;;  %4615 = vmatprep.mubr.bf16.mxu0 %v3000_v9 }
 0x8ba   :  { %v2869_v46 = vadd.f32 %v4574_v62, %v6179_v34  ;;  %v2860_v59 = vpop.f32.mrb[135].mxu1  ;;  %4616 = vmatmul.mubr.bf16.vlgmr.msra.gmra.mrb[160].mxu0 %v3001_v48  ;;  %v2974_v17 = vmax.f32 %v2866_v25, 0.0 }
 0x8bb   :  { %v2861_v37 = vadd.f32 %v6179_v34, %v2860_v59  ;;  %4648 = vmatpush3.bf16.msra.mxu0 %v4792_v51  ;;  %v2972_v35 = vmax.f32 %v2858_v21, 0.0 }
 0x8bc   :  { %v2975_v43 = vmax.f32 %v2869_v46, 0.0  ;;  %4649 = vmatprep.subr.bf16.mxu0 %v4793_v45 }
 0x8bd   :  { %v2973_v53 = vmax.f32 %v2861_v37, 0.0 }
 0x8be   :  { %v3003_v57 = vpack.c.bf16 %v2975_v43, %v2974_v17 }
 0x8bf   :  { %v3002_v40 = vpack.c.bf16 %v2973_v53, %v2972_v35  ;;  %v4577_v12 = vpop.f32.mrb[136].mxu1  ;;  %4650 = vmatpush3.bf16.msra.mxu0 %v4793_v45 }
 0x8c0   :  { %v2882_v10 = vadd.f32 %v4577_v12, %v6179_v34  ;;  %v2873_v8 = vpop.f32.mrb[137].mxu1  ;;  %4651 = vmatprep.subr.bf16.mxu0 %v4794_v63 }
 0x8c1   :  { %v2874_v11 = vadd.f32 %v6179_v34, %v2873_v8  ;;  %v4578_v26 = vpop.f32.mrb[138].mxu1  ;;  %4619 = vmatprep.mubr.bf16.mxu0 %v3002_v40 }
 0x8c2   :  { %v2885_v27 = vadd.f32 %v4578_v26, %v6179_v34  ;;  %v2876_v51 = vpop.f32.mrb[139].mxu1  ;;  %4620 = vmatmul.mubr.bf16.gmra.mrb[164].mxu0 %v3003_v57  ;;  %v2978_v58 = vmax.f32 %v2882_v10, 0.0 }
 0x8c3   :  { %v2877_v50 = vadd.f32 %v6179_v34, %v2876_v51  ;;  %4652 = vmatpush3.bf16.msra.mxu0 %v4794_v63  ;;  %v2976_v45 = vmax.f32 %v2874_v11, 0.0 }
 0x8c4   :  { %v2979_v4 = vmax.f32 %v2885_v27, 0.0  ;;  %4653 = vmatprep.subr.bf16.mxu0 %v6158_v49 }
 0x8c5   :  { %v2977_v48 = vmax.f32 %v2877_v50, 0.0 }
 0x8c6   :  { %v3005_v9 = vpack.c.bf16 %v2979_v4, %v2978_v58 }
 0x8c7   :  { %v3004_v16 = vpack.c.bf16 %v2977_v48, %v2976_v45  ;;  %v4581_v25 = vpop.f32.mrb[140].mxu1  ;;  %4654 = vmatpush3.bf16.msra.mxu0 %v6158_v49 }
 0x8c8   :  { %v2898_v15 = vadd.f32 %v4581_v25, %v6179_v34  ;;  %v2889_v21 = vpop.f32.mrb[141].mxu1  ;;  %4655 = vmatprep.subr.bf16.mxu0 %v6164_v44 }
 0x8c9   :  { %v2890_v62 = vadd.f32 %v6179_v34, %v2889_v21  ;;  %v4582_v46 = vpop.f32.mrb[142].mxu1  ;;  %4623 = vmatprep.mubr.bf16.mxu0 %v3004_v16 }
 0x8ca   :  { %v2901_v63 = vadd.f32 %v4582_v46, %v6179_v34  ;;  %v2892_v59 = vpop.f32.mrb[143].mxu1  ;;  %4624 = vmatmul.mubr.bf16.gmra.mrb[168].mxu0 %v3005_v9  ;;  %v2982_v17 = vmax.f32 %v2898_v15, 0.0 }
 0x8cb   :  { %v2893_v37 = vadd.f32 %v6179_v34, %v2892_v59  ;;  %4656 = vmatpush3.bf16.msra.mxu0 %v6164_v44  ;;  %v2980_v49 = vmax.f32 %v2890_v62, 0.0 }
 0x8cc   :  { %v2983_v43 = vmax.f32 %v2901_v63, 0.0  ;;  %4657 = vmatprep.subr.bf16.mxu0 %v6171_v3 }
 0x8cd   :  { %v2981_v35 = vmax.f32 %v2893_v37, 0.0 }
 0x8ce   :  { %v3007_v53 = vpack.c.bf16 %v2983_v43, %v2982_v17 }
 0x8cf   :  { %v3006_v57 = vpack.c.bf16 %v2981_v35, %v2980_v49  ;;  %v4585_v40 = vpop.f32.mrb[144].mxu1  ;;  %4658 = vmatpush3.bf16.msra.mxu0 %v6171_v3 }
 0x8d0   :  { %v2914_v12 = vadd.f32 %v4585_v40, %v6179_v34  ;;  %v2905_v10 = vpop.f32.mrb[145].mxu1 }
 0x8d1   :  { %v2906_v8 = vadd.f32 %v6179_v34, %v2905_v10  ;;  %v4586_v11 = vpop.f32.mrb[146].mxu1  ;;  %4627 = vmatprep.mubr.bf16.mxu0 %v3006_v57 }
 0x8d2   :  { %v2917_v44 = vadd.f32 %v4586_v11, %v6179_v34  ;;  %v2908_v26 = vpop.f32.mrb[147].mxu1  ;;  %4628 = vmatmul.mubr.bf16.gmra.mrb[172].mxu0 %v3007_v53  ;;  %v2986_v51 = vmax.f32 %v2914_v12, 0.0 }
 0x8d3   :  { %v2909_v27 = vadd.f32 %v6179_v34, %v2908_v26  ;;  %v2984_v58 = vmax.f32 %v2906_v8, 0.0 }
 0x8d4   :  { %v2987_v50 = vmax.f32 %v2917_v44, 0.0 }
 0x8d5   :  { %v2985_v4 = vmax.f32 %v2909_v27, 0.0 }
 0x8d6   :  { %v3009_v45 = vpack.c.bf16 %v2987_v50, %v2986_v51 }
 0x8d7   :  { %v3008_v48 = vpack.c.bf16 %v2985_v4, %v2984_v58  ;;  %v4589_v3 = vpop.f32.mrb[148].mxu1 }
 0x8d8   :  { %v2930_v9 = vadd.f32 %v4589_v3, %v6179_v34  ;;  %v2921_v16 = vpop.f32.mrb[149].mxu1 }
 0x8d9   :  { %v2922_v25 = vadd.f32 %v6179_v34, %v2921_v16  ;;  %v4590_v15 = vpop.f32.mrb[150].mxu1  ;;  %4631 = vmatprep.mubr.bf16.mxu0 %v3008_v48 }
 0x8da   :  { %v2933_v21 = vadd.f32 %v4590_v15, %v6179_v34  ;;  %v2924_v62 = vpop.f32.mrb[151].mxu1  ;;  %4632 = vmatmul.mubr.bf16.gmra.mrb[176].mxu0 %v3009_v45  ;;  %v2990_v63 = vmax.f32 %v2930_v9, 0.0 }
 0x8db   :  { %v2925_v46 = vadd.f32 %v6179_v34, %v2924_v62  ;;  %v2988_v37 = vmax.f32 %v2922_v25, 0.0 }
 0x8dc   :  { %v2991_v59 = vmax.f32 %v2933_v21, 0.0 }
 0x8dd   :  { %v2989_v17 = vmax.f32 %v2925_v46, 0.0 }
 0x8de   :  { %v3011_v43 = vpack.c.bf16 %v2991_v59, %v2990_v63 }
 0x8df   :  { %v3010_v49 = vpack.c.bf16 %v2989_v17, %v2988_v37  ;;  %v4593_v35 = vpop.f32.mrb[152].mxu1  ;;  %v4798_v17 = vld [vmem:[%s6466_s7 + $0x30] sm:$0xff]  }
 0x8e0   :  { %v2946_v53 = vadd.f32 %v4593_v35, %v6179_v34  ;;  %v2937_v57 = vpop.f32.mrb[153].mxu1  ;;  %4701 = vmatprep.subr.bf16.mxu1 %v4798_v17  ;;  %4659 = vmatprep.subr.bf16.mxu0 %v4798_v17 }
 0x8e1   :  { %v2938_v40 = vadd.f32 %v6179_v34, %v2937_v57  ;;  %v4594_v12 = vpop.f32.mrb[154].mxu1  ;;  %4635 = vmatprep.mubr.bf16.mxu0 %v3010_v49  ;;  %4709 = vmatpush3.bf16.msra.mxu1 %v4798_v17 }
 0x8e2   :  { %v2949_v10 = vadd.f32 %v4594_v12, %v6179_v34  ;;  %v2940_v8 = vpop.f32.mrb[155].mxu1  ;;  %4636 = vmatmul.mubr.bf16.gmra.mrb[180].mxu0 %v3011_v43  ;;  %v2994_v44 = vmax.f32 %v2946_v53, 0.0  ;;  %v6228_v43 = vld [vmem:[%s6465_s6 + $0x4] ss:$0 sm:$0xff] }
 0x8e3   :  { %v2941_v11 = vadd.f32 %v6179_v34, %v2940_v8  ;;  %v2992_v27 = vmax.f32 %v2938_v40, 0.0  ;;  %4660 = vmatpush3.bf16.msra.mxu0 %v4798_v17 }
 0x8e4   :  { %v2995_v26 = vmax.f32 %v2949_v10, 0.0 }
 0x8e5   :  { %v2993_v51 = vmax.f32 %v2941_v11, 0.0 }
 0x8e6   :  { %v3013_v50 = vpack.c.bf16 %v2995_v26, %v2994_v44 }
 0x8e7   :  { %v3012_v58 = vpack.c.bf16 %v2993_v51, %v2992_v27  ;;  %v4597_v4 = vpop.f32.mrb[156].mxu1 }
 0x8e8   :  { %v2962_v45 = vadd.f32 %v4597_v4, %v6179_v34  ;;  %v2953_v48 = vpop.f32.mrb[157].mxu1 }
 0x8e9   :  { %v2954_v3 = vadd.f32 %v6179_v34, %v2953_v48  ;;  %v4598_v9 = vpop.f32.mrb[158].mxu1  ;;  %4639 = vmatprep.mubr.bf16.mxu0 %v3012_v58 }
 0x8ea   :  { %v2965_v16 = vadd.f32 %v4598_v9, %v6179_v34  ;;  %v2956_v25 = vpop.f32.mrb[159].mxu1  ;;  %4640 = vmatmul.mubr.bf16.gmra.mrb[184].mxu0 %v3013_v50  ;;  %v2998_v21 = vmax.f32 %v2962_v45, 0.0 }
 0x8eb   :  { %v2957_v15 = vadd.f32 %v6179_v34, %v2956_v25  ;;  %v2996_v46 = vmax.f32 %v2954_v3, 0.0  ;;  %v4799_v34 = vld [vmem:[%s6466_s7 + $0x38] sm:$0xff]  }
 0x8ec   :  { %v2999_v62 = vmax.f32 %v2965_v16, 0.0  ;;  %4661 = vmatprep.subr.bf16.mxu0 %v4799_v34  ;;  %4702 = vmatprep.subr.bf16.mxu1 %v4799_v34 }
 0x8ed   :  { %v2997_v63 = vmax.f32 %v2957_v15, 0.0  ;;  %4662 = vmatpush3.bf16.msra.mxu0 %v4799_v34  ;;  %4710 = vmatpush3.bf16.msra.mxu1 %v4799_v34 }
 0x8ee   :  { %v3015_v59 = vpack.c.bf16 %v2999_v62, %v2998_v21 }
 0x8ef   :  { %v3014_v37 = vpack.c.bf16 %v2997_v63, %v2996_v46 }
 0x8f1   :  { %4643 = vmatprep.mubr.bf16.mxu0 %v3014_v37 }
 0x8f2   :  { %4644 = vmatmul.mubr.bf16.gmra.mrb[188].mxu0 %v3015_v59 }
 0x98d   :  { %v4617_v49 = vpop.f32.mrb[160].mxu0 }
 0x98e   :  { %v3132_v35 = vadd.f32 %v4617_v49, %v6228_v43  ;;  %v3123_v53 = vpop.f32.mrb[161].mxu0 }
 0x98f   :  { %v3124_v57 = vadd.f32 %v6228_v43, %v3123_v53  ;;  %v4618_v40 = vpop.f32.mrb[162].mxu0 }
 0x990   :  { %v3252_v12 = vadd.f32 %v3132_v35, %v5991_v7  ;;  %v3135_v10 = vadd.f32 %v4618_v40, %v6228_v43  ;;  %v3126_v8 = vpop.f32.mrb[163].mxu0 }
 0x991   :  { %v3250_v11 = vadd.f32 %v3124_v57, %v5987_v23  ;;  %v3127_v44 = vadd.f32 %v6228_v43, %v3126_v8 }
 0x992   :  { %v3253_v26 = vadd.f32 %v3135_v10, %v5994_v22  ;;  %v3284_v51 = vmax.f32 %v3252_v12, 0.0 }
 0x993   :  { %v3251_v27 = vadd.f32 %v3127_v44, %v5997_v31  ;;  %v3282_v58 = vmax.f32 %v3250_v11, 0.0 }
 0x994   :  { %v3285_v50 = vmax.f32 %v3253_v26, 0.0 }
 0x995   :  { %v3283_v4 = vmax.f32 %v3251_v27, 0.0  ;;  %v4621_v45 = vpop.f32.mrb[164].mxu0 }
 0x996   :  { %v3315_v48 = vpack.c.bf16 %v3285_v50, %v3284_v51  ;;  %v3148_v3 = vadd.f32 %v4621_v45, %v6228_v43  ;;  %v3139_v7 = vpop.f32.mrb[165].mxu0 }
 0x997   :  { %v3140_v9 = vadd.f32 %v6228_v43, %v3139_v7  ;;  %v4622_v16 = vpop.f32.mrb[166].mxu0  ;;  %v3314_v25 = vpack.c.bf16 %v3283_v4, %v3282_v58 }
 0x998   :  { %v3256_v23 = vadd.f32 %v3148_v3, %v6011_v32  ;;  %v3151_v15 = vadd.f32 %v4622_v16, %v6228_v43  ;;  %v3142_v22 = vpop.f32.mrb[167].mxu0 }
 0x999   :  { %v3254_v31 = vadd.f32 %v3140_v9, %v6007_v52  ;;  %v3143_v21 = vadd.f32 %v6228_v43, %v3142_v22  ;;  %4663 = vmatprep.mubr.bf16.mxu0 %v3314_v25 }
 0x99a   :  { %v3257_v62 = vadd.f32 %v3151_v15, %v6014_v5  ;;  %4664 = vmatmul.mubr.bf16.vlgmr.msra.gmra.mrb[192].mxu0 %v3315_v48  ;;  %v3288_v63 = vmax.f32 %v3256_v23, 0.0 }
 0x99b   :  { %v3255_v46 = vadd.f32 %v3143_v21, %v6017_v14  ;;  %v3286_v37 = vmax.f32 %v3254_v31, 0.0 }
 0x99c   :  { %v3289_v59 = vmax.f32 %v3257_v62, 0.0 }
 0x99d   :  { %v3287_v17 = vmax.f32 %v3255_v46, 0.0  ;;  %v4625_v34 = vpop.f32.mrb[168].mxu0 }
 0x99e   :  { %v3317_v49 = vpack.c.bf16 %v3289_v59, %v3288_v63  ;;  %v3164_v32 = vadd.f32 %v4625_v34, %v6228_v43  ;;  %v3155_v35 = vpop.f32.mrb[169].mxu0 }
 0x99f   :  { %v3156_v53 = vadd.f32 %v6228_v43, %v3155_v35  ;;  %v4626_v52 = vpop.f32.mrb[170].mxu0  ;;  %v3316_v57 = vpack.c.bf16 %v3287_v17, %v3286_v37 }
 0x9a0   :  { %v3260_v40 = vadd.f32 %v3164_v32, %v6031_v13  ;;  %v3167_v5 = vadd.f32 %v4626_v52, %v6228_v43  ;;  %v3158_v12 = vpop.f32.mrb[171].mxu0 }
 0x9a1   :  { %v3258_v14 = vadd.f32 %v3156_v53, %v6027_v0  ;;  %v3159_v10 = vadd.f32 %v6228_v43, %v3158_v12  ;;  %4667 = vmatprep.mubr.bf16.mxu1 %v3316_v57 }
 0x9a2   :  { %v3261_v8 = vadd.f32 %v3167_v5, %v6034_v18  ;;  %4668 = vmatmul.mubr.bf16.vlgmr.msra.gmra.mrb[160].mxu1 %v3317_v49  ;;  %v3292_v44 = vmax.f32 %v3260_v40, 0.0 }
 0x9a3   :  { %v3259_v11 = vadd.f32 %v3159_v10, %v6037_v29  ;;  %v3290_v27 = vmax.f32 %v3258_v14, 0.0 }
 0x9a4   :  { %v3293_v26 = vmax.f32 %v3261_v8, 0.0 }
 0x9a5   :  { %v3291_v51 = vmax.f32 %v3259_v11, 0.0  ;;  %v4629_v50 = vpop.f32.mrb[172].mxu0 }
 0x9a6   :  { %v3180_v13 = vadd.f32 %v4629_v50, %v6228_v43  ;;  %v3171_v58 = vpop.f32.mrb[173].mxu0  ;;  %v3319_v4 = vpack.c.bf16 %v3293_v26, %v3292_v44 }
 0x9a7   :  { %v3172_v45 = vadd.f32 %v6228_v43, %v3171_v58  ;;  %v4630_v0 = vpop.f32.mrb[174].mxu0  ;;  %v3318_v48 = vpack.c.bf16 %v3291_v51, %v3290_v27 }
 0x9a8   :  { %v3264_v3 = vadd.f32 %v3180_v13, %v6051_v38  ;;  %v3183_v18 = vadd.f32 %v4630_v0, %v6228_v43  ;;  %v3174_v7 = vpop.f32.mrb[175].mxu0 }
 0x9a9   :  { %v3262_v29 = vadd.f32 %v3172_v45, %v6047_v28  ;;  %v3175_v9 = vadd.f32 %v6228_v43, %v3174_v7  ;;  %4671 = vmatprep.mubr.bf16.mxu1 %v3318_v48 }
 0x9aa   :  { %v3265_v16 = vadd.f32 %v3183_v18, %v6054_v41  ;;  %4672 = vmatmul.mubr.bf16.gmra.mrb[164].mxu1 %v3319_v4  ;;  %v3296_v23 = vmax.f32 %v3264_v3, 0.0 }
 0x9ab   :  { %v3263_v25 = vadd.f32 %v3175_v9, %v6057_v60  ;;  %v3294_v22 = vmax.f32 %v3262_v29, 0.0 }
 0x9ac   :  { %v3297_v15 = vmax.f32 %v3265_v16, 0.0 }
 0x9ad   :  { %v3295_v31 = vmax.f32 %v3263_v25, 0.0  ;;  %v4633_v21 = vpop.f32.mrb[176].mxu0 }
 0x9ae   :  { %v3196_v38 = vadd.f32 %v4633_v21, %v6228_v43  ;;  %v3187_v62 = vpop.f32.mrb[177].mxu0  ;;  %v3321_v46 = vpack.c.bf16 %v3297_v15, %v3296_v23 }
 0x9af   :  { %v3188_v63 = vadd.f32 %v6228_v43, %v3187_v62  ;;  %v4634_v28 = vpop.f32.mrb[178].mxu0  ;;  %v3320_v59 = vpack.c.bf16 %v3295_v31, %v3294_v22 }
 0x9b0   :  { %v3268_v37 = vadd.f32 %v3196_v38, %v6071_v54  ;;  %v3199_v41 = vadd.f32 %v4634_v28, %v6228_v43  ;;  %v3190_v17 = vpop.f32.mrb[179].mxu0 }
 0x9b1   :  { %v3266_v60 = vadd.f32 %v3188_v63, %v6067_v42  ;;  %v3191_v34 = vadd.f32 %v6228_v43, %v3190_v17  ;;  %4675 = vmatprep.mubr.bf16.mxu1 %v3320_v59 }
 0x9b2   :  { %v3269_v49 = vadd.f32 %v3199_v41, %v6074_v6  ;;  %4676 = vmatmul.mubr.bf16.gmra.mrb[168].mxu1 %v3321_v46  ;;  %v3300_v35 = vmax.f32 %v3268_v37, 0.0 }
 0x9b3   :  { %v3267_v32 = vadd.f32 %v3191_v34, %v6077_v47  ;;  %v3298_v52 = vmax.f32 %v3266_v60, 0.0 }
 0x9b4   :  { %v3301_v53 = vmax.f32 %v3269_v49, 0.0 }
 0x9b5   :  { %v3299_v57 = vmax.f32 %v3267_v32, 0.0  ;;  %v4637_v40 = vpop.f32.mrb[180].mxu0 }
 0x9b6   :  { %v3212_v54 = vadd.f32 %v4637_v40, %v6228_v43  ;;  %v3203_v5 = vpop.f32.mrb[181].mxu0  ;;  %v3323_v12 = vpack.c.bf16 %v3301_v53, %v3300_v35 }
 0x9b7   :  { %v3204_v14 = vadd.f32 %v6228_v43, %v3203_v5  ;;  %v4638_v42 = vpop.f32.mrb[182].mxu0  ;;  %v3322_v10 = vpack.c.bf16 %v3299_v57, %v3298_v52 }
 0x9b8   :  { %v3272_v8 = vadd.f32 %v3212_v54, %v6091_v39  ;;  %v3215_v6 = vadd.f32 %v4638_v42, %v6228_v43  ;;  %v3206_v11 = vpop.f32.mrb[183].mxu0 }
 0x9b9   :  { %v3270_v47 = vadd.f32 %v3204_v14, %v6087_v61  ;;  %v3207_v44 = vadd.f32 %v6228_v43, %v3206_v11  ;;  %4679 = vmatprep.mubr.bf16.mxu1 %v3322_v10 }
 0x9ba   :  { %v3273_v26 = vadd.f32 %v3215_v6, %v6094_v30  ;;  %4680 = vmatmul.mubr.bf16.gmra.mrb[172].mxu1 %v3323_v12  ;;  %v3304_v51 = vmax.f32 %v3272_v8, 0.0 }
 0x9bb   :  { %v3271_v27 = vadd.f32 %v3207_v44, %v6097_v36  ;;  %v3302_v13 = vmax.f32 %v3270_v47, 0.0 }
 0x9bc   :  { %v3305_v50 = vmax.f32 %v3273_v26, 0.0 }
 0x9bd   :  { %v3303_v58 = vmax.f32 %v3271_v27, 0.0  ;;  %v4641_v4 = vpop.f32.mrb[184].mxu0 }
 0x9be   :  { %v3228_v39 = vadd.f32 %v4641_v4, %v6228_v43  ;;  %v3219_v45 = vpop.f32.mrb[185].mxu0  ;;  %v3325_v0 = vpack.c.bf16 %v3305_v50, %v3304_v51 }
 0x9bf   :  { %v3220_v48 = vadd.f32 %v6228_v43, %v3219_v45  ;;  %v4642_v61 = vpop.f32.mrb[186].mxu0  ;;  %v3324_v3 = vpack.c.bf16 %v3303_v58, %v3302_v13 }
 0x9c0   :  { %v3276_v18 = vadd.f32 %v3228_v39, %v6111_v1  ;;  %v3231_v30 = vadd.f32 %v4642_v61, %v6228_v43  ;;  %v3222_v7 = vpop.f32.mrb[187].mxu0 }
 0x9c1   :  { %v3274_v36 = vadd.f32 %v3220_v48, %v6107_v56  ;;  %v3223_v29 = vadd.f32 %v6228_v43, %v3222_v7  ;;  %4683 = vmatprep.mubr.bf16.mxu1 %v3324_v3 }
 0x9c2   :  { %v3277_v9 = vadd.f32 %v3231_v30, %v6114_v2  ;;  %4684 = vmatmul.mubr.bf16.gmra.mrb[176].mxu1 %v3325_v0  ;;  %v3308_v25 = vmax.f32 %v3276_v18, 0.0 }
 0x9c3   :  { %v3275_v16 = vadd.f32 %v3223_v29, %v6117_v19  ;;  %v3306_v15 = vmax.f32 %v3274_v36, 0.0 }
 0x9c4   :  { %v3309_v23 = vmax.f32 %v3277_v9, 0.0 }
 0x9c5   :  { %v3307_v22 = vmax.f32 %v3275_v16, 0.0  ;;  %v4645_v31 = vpop.f32.mrb[188].mxu0 }
 0x9c6   :  { %v3244_v1 = vadd.f32 %v4645_v31, %v6228_v43  ;;  %v3235_v21 = vpop.f32.mrb[189].mxu0  ;;  %v3327_v38 = vpack.c.bf16 %v3309_v23, %v3308_v25 }
 0x9c7   :  { %v3236_v62 = vadd.f32 %v6228_v43, %v3235_v21  ;;  %v4646_v56 = vpop.f32.mrb[190].mxu0  ;;  %v3326_v46 = vpack.c.bf16 %v3307_v22, %v3306_v15 }
 0x9c8   :  { %v3280_v63 = vadd.f32 %v3244_v1, %v6131_v20  ;;  %v3247_v2 = vadd.f32 %v4646_v56, %v6228_v43  ;;  %v3238_v28 = vpop.f32.mrb[191].mxu0 }
 0x9c9   :  { %v3278_v19 = vadd.f32 %v3236_v62, %v6127_v24  ;;  %v3239_v59 = vadd.f32 %v6228_v43, %v3238_v28  ;;  %4687 = vmatprep.mubr.bf16.mxu1 %v3326_v46  ;;  %v6297_v24 = vld [vmem:[%s6467_s8] ss:$0 sm:$0xff] }
 0x9ca   :  { %v3281_v37 = vadd.f32 %v3247_v2, %v6134_v33  ;;  %4688 = vmatmul.mubr.bf16.gmra.mrb[180].mxu1 %v3327_v38  ;;  %v3312_v17 = vmax.f32 %v3280_v63, 0.0 }
 0x9cb   :  { %v3279_v41 = vadd.f32 %v3239_v59, %v6137_v55  ;;  %v3310_v34 = vmax.f32 %v3278_v19, 0.0 }
 0x9cc   :  { %v3313_v60 = vmax.f32 %v3281_v37, 0.0 }
 0x9cd   :  { %v3311_v49 = vmax.f32 %v3279_v41, 0.0 }
 0x9ce   :  { %v3329_v32 = vpack.c.bf16 %v3313_v60, %v3312_v17 }
 0x9cf   :  { %v3328_v35 = vpack.c.bf16 %v3311_v49, %v3310_v34 }
 0x9d1   :  { %4691 = vmatprep.mubr.bf16.mxu1 %v3328_v35 }
 0x9d2   :  { %4692 = vmatmul.mubr.bf16.gmra.mrb[184].mxu1 %v3329_v32 }
 0xa6d   :  { %v4665_v20 = vpop.f32.mrb[192].mxu0 }
 0xa6e   :  { %v3444_v33 = vadd.f32 %v4665_v20, %v6297_v24  ;;  %v3435_v43 = vpop.f32.mrb[193].mxu0 }
 0xa6f   :  { %v3436_v55 = vadd.f32 %v6297_v24, %v3435_v43  ;;  %v4666_v53 = vpop.f32.mrb[194].mxu0 }
 0xa70   :  { %3565 = vst.msk [vmem:[%s6468_s9 + $0x10] sm:$0xff] %vm3562_vm1, %v3444_v33  ;;  %v3447_v52 = vadd.f32 %v4666_v53, %v6297_v24  ;;  %v3438_v57 = vpop.f32.mrb[195].mxu0 }
 0xa71   :  { %3563 = vst.msk [vmem:[%s6468_s9] sm:$0xff] %vm3562_vm1, %v3436_v55  ;;  %v3439_v40 = vadd.f32 %v6297_v24, %v3438_v57 }
 0xa72   :  { %3566 = vst.msk [vmem:[%s6468_s9 + $0x18] sm:$0xff] %vm3562_vm1, %v3447_v52 }
 0xa73   :  { %3564 = vst.msk [vmem:[%s6468_s9 + $0x8] sm:$0xff] %vm3562_vm1, %v3439_v40 }
 0xa75   :  { %v4669_v54 = vpop.f32.mrb[160].mxu1 }
 0xa76   :  { %v3460_v5 = vadd.f32 %v4669_v54, %v6297_v24  ;;  %v3451_v12 = vpop.f32.mrb[161].mxu1 }
 0xa77   :  { %v3452_v14 = vadd.f32 %v6297_v24, %v3451_v12  ;;  %v4670_v42 = vpop.f32.mrb[162].mxu1 }
 0xa78   :  { %3569 = vst.msk [vmem:[%s6468_s9 + $0x30] sm:$0xff] %vm3562_vm1, %v3460_v5  ;;  %v3463_v10 = vadd.f32 %v4670_v42, %v6297_v24  ;;  %v3454_v8 = vpop.f32.mrb[163].mxu1 }
 0xa79   :  { %3567 = vst.msk [vmem:[%s6468_s9 + $0x20] sm:$0xff] %vm3562_vm1, %v3452_v14  ;;  %v3455_v6 = vadd.f32 %v6297_v24, %v3454_v8 }
 0xa7a   :  { %3570 = vst.msk [vmem:[%s6468_s9 + $0x38] sm:$0xff] %vm3562_vm1, %v3463_v10 }
 0xa7b   :  { %3568 = vst.msk [vmem:[%s6468_s9 + $0x28] sm:$0xff] %vm3562_vm1, %v3455_v6 }
 0xa7d   :  { %v4673_v11 = vpop.f32.mrb[164].mxu1 }
 0xa7e   :  { %v3476_v47 = vadd.f32 %v4673_v11, %v6297_v24  ;;  %v3467_v44 = vpop.f32.mrb[165].mxu1 }
 0xa7f   :  { %v3468_v26 = vadd.f32 %v6297_v24, %v3467_v44  ;;  %v4674_v27 = vpop.f32.mrb[166].mxu1 }
 0xa80   :  { %3573 = vst.msk [vmem:[%s6468_s9 + $0x50] sm:$0xff] %vm3562_vm1, %v3476_v47  ;;  %v3479_v51 = vadd.f32 %v4674_v27, %v6297_v24  ;;  %v3470_v50 = vpop.f32.mrb[167].mxu1 }
 0xa81   :  { %3571 = vst.msk [vmem:[%s6468_s9 + $0x40] sm:$0xff] %vm3562_vm1, %v3468_v26  ;;  %v3471_v13 = vadd.f32 %v6297_v24, %v3470_v50 }
 0xa82   :  { %3574 = vst.msk [vmem:[%s6468_s9 + $0x58] sm:$0xff] %vm3562_vm1, %v3479_v51 }
 0xa83   :  { %3572 = vst.msk [vmem:[%s6468_s9 + $0x48] sm:$0xff] %vm3562_vm1, %v3471_v13 }
 0xa85   :  { %v4677_v58 = vpop.f32.mrb[168].mxu1 }
 0xa86   :  { %v3492_v4 = vadd.f32 %v4677_v58, %v6297_v24  ;;  %v3483_v39 = vpop.f32.mrb[169].mxu1 }
 0xa87   :  { %v3484_v45 = vadd.f32 %v6297_v24, %v3483_v39  ;;  %v4678_v0 = vpop.f32.mrb[170].mxu1 }
 0xa88   :  { %3577 = vst.msk [vmem:[%s6468_s9 + $0x70] sm:$0xff] %vm3562_vm1, %v3492_v4  ;;  %v3495_v48 = vadd.f32 %v4678_v0, %v6297_v24  ;;  %v3486_v61 = vpop.f32.mrb[171].mxu1 }
 0xa89   :  { %3575 = vst.msk [vmem:[%s6468_s9 + $0x60] sm:$0xff] %vm3562_vm1, %v3484_v45  ;;  %v3487_v3 = vadd.f32 %v6297_v24, %v3486_v61 }
 0xa8a   :  { %3578 = vst.msk [vmem:[%s6468_s9 + $0x78] sm:$0xff] %vm3562_vm1, %v3495_v48 }
 0xa8b   :  { %3576 = vst.msk [vmem:[%s6468_s9 + $0x68] sm:$0xff] %vm3562_vm1, %v3487_v3 }
 0xa8d   :  { %v4681_v18 = vpop.f32.mrb[172].mxu1 }
 0xa8e   :  { %v3508_v30 = vadd.f32 %v4681_v18, %v6297_v24  ;;  %v3499_v7 = vpop.f32.mrb[173].mxu1 }
 0xa8f   :  { %v3500_v36 = vadd.f32 %v6297_v24, %v3499_v7  ;;  %v4682_v29 = vpop.f32.mrb[174].mxu1 }
 0xa90   :  { %3581 = vst.msk [vmem:[%s6468_s9 + $0x90] sm:$0xff] %vm3562_vm1, %v3508_v30  ;;  %v3511_v9 = vadd.f32 %v4682_v29, %v6297_v24  ;;  %v3502_v16 = vpop.f32.mrb[175].mxu1 }
 0xa91   :  { %3579 = vst.msk [vmem:[%s6468_s9 + $0x80] sm:$0xff] %vm3562_vm1, %v3500_v36  ;;  %v3503_v25 = vadd.f32 %v6297_v24, %v3502_v16 }
 0xa92   :  { %3582 = vst.msk [vmem:[%s6468_s9 + $0x98] sm:$0xff] %vm3562_vm1, %v3511_v9 }
 0xa93   :  { %3580 = vst.msk [vmem:[%s6468_s9 + $0x88] sm:$0xff] %vm3562_vm1, %v3503_v25 }
 0xa95   :  { %v4685_v23 = vpop.f32.mrb[176].mxu1 }
 0xa96   :  { %v3524_v15 = vadd.f32 %v4685_v23, %v6297_v24  ;;  %v3515_v22 = vpop.f32.mrb[177].mxu1 }
 0xa97   :  { %v3516_v31 = vadd.f32 %v6297_v24, %v3515_v22  ;;  %v4686_v1 = vpop.f32.mrb[178].mxu1 }
 0xa98   :  { %3585 = vst.msk [vmem:[%s6468_s9 + $0xb0] sm:$0xff] %vm3562_vm1, %v3524_v15  ;;  %v3527_v21 = vadd.f32 %v4686_v1, %v6297_v24  ;;  %v3518_v38 = vpop.f32.mrb[179].mxu1 }
 0xa99   :  { %3583 = vst.msk [vmem:[%s6468_s9 + $0xa0] sm:$0xff] %vm3562_vm1, %v3516_v31  ;;  %v3519_v62 = vadd.f32 %v6297_v24, %v3518_v38 }
 0xa9a   :  { %3586 = vst.msk [vmem:[%s6468_s9 + $0xb8] sm:$0xff] %vm3562_vm1, %v3527_v21 }
 0xa9b   :  { %3584 = vst.msk [vmem:[%s6468_s9 + $0xa8] sm:$0xff] %vm3562_vm1, %v3519_v62 }
 0xa9d   :  { %v4689_v56 = vpop.f32.mrb[180].mxu1 }
 0xa9e   :  { %v3540_v46 = vadd.f32 %v4689_v56, %v6297_v24  ;;  %v3531_v63 = vpop.f32.mrb[181].mxu1 }
 0xa9f   :  { %v3532_v2 = vadd.f32 %v6297_v24, %v3531_v63  ;;  %v4690_v28 = vpop.f32.mrb[182].mxu1 }
 0xaa0   :  { %3589 = vst.msk [vmem:[%s6468_s9 + $0xd0] sm:$0xff] %vm3562_vm1, %v3540_v46  ;;  %v3543_v19 = vadd.f32 %v4690_v28, %v6297_v24  ;;  %v3534_v59 = vpop.f32.mrb[183].mxu1 }
 0xaa1   :  { %3587 = vst.msk [vmem:[%s6468_s9 + $0xc0] sm:$0xff] %vm3562_vm1, %v3532_v2  ;;  %v3535_v37 = vadd.f32 %v6297_v24, %v3534_v59 }
 0xaa2   :  { %3590 = vst.msk [vmem:[%s6468_s9 + $0xd8] sm:$0xff] %vm3562_vm1, %v3543_v19 }
 0xaa3   :  { %3588 = vst.msk [vmem:[%s6468_s9 + $0xc8] sm:$0xff] %vm3562_vm1, %v3535_v37 }
 0xaa5   :  { %v4693_v41 = vpop.f32.mrb[184].mxu1 }
 0xaa6   :  { %v3556_v17 = vadd.f32 %v4693_v41, %v6297_v24  ;;  %v3547_v60 = vpop.f32.mrb[185].mxu1 }
 0xaa7   :  { %v3548_v34 = vadd.f32 %v6297_v24, %v3547_v60  ;;  %v4694_v49 = vpop.f32.mrb[186].mxu1 }
 0xaa8   :  { %3593 = vst.msk [vmem:[%s6468_s9 + $0xf0] sm:$0xff] %vm3562_vm1, %v3556_v17  ;;  %v3559_v32 = vadd.f32 %v4694_v49, %v6297_v24  ;;  %v3550_v35 = vpop.f32.mrb[187].mxu1 }
 0xaa9   :  { %3591 = vst.msk [vmem:[%s6468_s9 + $0xe0] sm:$0xff] %vm3562_vm1, %v3548_v34  ;;  %v3551_v20 = vadd.f32 %v6297_v24, %v3550_v35 }
 0xaaa   :  { %3594 = vst.msk [vmem:[%s6468_s9 + $0xf8] sm:$0xff] %vm3562_vm1, %v3559_v32 }
 0xaab   :  { %3592 = vst.msk [vmem:[%s6468_s9 + $0xe8] sm:$0xff] %vm3562_vm1, %v3551_v20 }

</bundles_post_ra>
